<compile_context>
chip_gen: v5e
topology: v5e:2x2
jax: 0.10.0
libtpu: 0.0.40
codegen_flags: <defaults>
</compile_context>

<pallas_src>
import functools

import numpy as np

import jax
import jax.numpy as jnp
from jax import lax
from jax.experimental import pallas as pl
from jax.experimental.pallas import tpu as pltpu

# ----------------------------- model config ---------------------------------
B = 2                   # batch
S_PROMPT = 8            # prompt tokens
MAX_S = 16              # prompt + generated tokens (static KV-cache length)
NROWS = B * MAX_S       # KV-cache rows, position-major: row = pos * B + b
NP_ROWS = B * S_PROMPT  # prefill rows
H = 128                 # hidden size
NH = 4                  # attention heads
DH = H // NH            # head dim = 32
FF = 4 * H              # MLP intermediate = 512
V = 256                 # vocab size
EPS = 1e-5
W_DTYPE = jnp.bfloat16  # MXU-operand dtype for the big weight slabs
NEG_INF = -1e30         # additive mask constant (softmax path stays f32)
SCALE = 1.0 / (DH ** 0.5)


# ----------------------------- fused Pallas kernel ---------------------------
def _layernorm(x, g_ref, b_ref):
    # x: [R, H] f32; g/b refs: [1, H] f32
    mu = jnp.mean(x, axis=-1, keepdims=True)
    var = jnp.mean(jnp.square(x - mu), axis=-1, keepdims=True)
    return (x - mu) * lax.rsqrt(var + EPS) * g_ref[...] + b_ref[...]


def _gen_kernel(
    tok_ref, mask_ref, embed_ref,
    ln1_g_ref, ln1_b_ref, ln2_g_ref, ln2_b_ref, lnf_g_ref, lnf_b_ref,
    wqkv_ref, bqkv_ref, wo_ref, bo_ref,
    wup_ref, bup_ref, wdn_ref, bdn_ref,
    lmw_ref, lmb_ref,
    out_ref,
    k_cache, v_cache,
    *, n_props,
):
    """Whole generation (prefill + n_props greedy decode steps) in one call.

    tok_ref : [NP_ROWS, 1] int32   prompt tokens, position-major rows
    mask_ref: [n_props, B, NROWS]  f32 additive attention masks (0 / -1e30)
    out_ref : [n_props, B, 1] int32 generated token ids
    k_cache / v_cache: [NROWS, H] f32 VMEM scratch (KV cache, position-major)
    """
    # Zero-init the caches: unwritten rows are masked out of the softmax, but
    # uninitialized VMEM could hold NaN/Inf bit patterns that would poison it.
    k_cache[...] = jnp.zeros_like(k_cache)
    v_cache[...] = jnp.zeros_like(v_cache)

    def forward_rows(x_rows, pos, step, write_cache):
        """Single-layer forward for the B rows at position `pos` (static).

        Returns greedy next-token ids [B, 1] int32.
        """
        # ----- attention branch (GPT-NeoX parallel residual) ----------------
        h1 = _layernorm(x_rows, ln1_g_ref, ln1_b_ref)
        qkv = jnp.dot(h1.astype(W_DTYPE), wqkv_ref[...],
                      preferred_element_type=jnp.float32) + bqkv_ref[...]  # [B, 3H]
        q = qkv[:, :H]
        if write_cache:
            r0 = pos * B                               # static row offset
            k_cache[r0:r0 + B, :] = qkv[:, H:2 * H]
            v_cache[r0:r0 + B, :] = qkv[:, 2 * H:3 * H]

        k_all = k_cache[...]                           # [NROWS, H]
        v_all = v_cache[...]
        mask_add = mask_ref[step]                      # [B, NROWS] precomputed

        # TODO(synk): rotary position embeddings (GPT-NeoX) omitted in this
        # mini model.
        # NOTE: the per-head loop issues small matmuls, but operands are only
        # B=2 query rows (KV-cached decode) and this path dominates nothing
        # at this size; prefill runs it exactly once per generation.
        attn = jnp.zeros((B, H), jnp.float32)
        for h in range(NH):                            # static unroll, NH=4
            lo = h * DH
            q_h = q[:, lo:lo + DH]                     # [B, DH]
            k_h = k_all[:, lo:lo + DH]                 # [NROWS, DH]
            v_h = v_all[:, lo:lo + DH]                 # [NROWS, DH]
            s = jnp.dot(q_h, k_h.T, preferred_element_type=jnp.float32) * SCALE
            s = s + mask_add                           # additive static mask
            mx = jnp.max(s, axis=-1, keepdims=True)
            p = jnp.exp(s - mx)
            denom = jnp.sum(p, axis=-1, keepdims=True)
            o_h = jnp.dot(p, v_h, preferred_element_type=jnp.float32)
            o_h = o_h * pl.reciprocal(denom, approx=True)   # EUP slot
            # head-h rows of the output projection (== concat_heads(o) @ W_o)
            attn = attn + jnp.dot(o_h.astype(W_DTYPE), wo_ref[lo:lo + DH, :],
                                  preferred_element_type=jnp.float32)
        attn = attn + bo_ref[...]

        # ----- MLP branch ----------------------------------------------------
        h2 = _layernorm(x_rows, ln2_g_ref, ln2_b_ref)
        up = jnp.dot(h2.astype(W_DTYPE), wup_ref[...],
                     preferred_element_type=jnp.float32) + bup_ref[...]   # [B, FF]
        # TODO(synk): HF GPT-NeoX uses exact (erf) gelu; tanh approximation here.
        up = jax.nn.gelu(up, approximate=True)
        mlp = jnp.dot(up.astype(W_DTYPE), wdn_ref[...],
                      preferred_element_type=jnp.float32) + bdn_ref[...]

        # ----- residual + final LN + lm_head (current rows only) -------------
        y = x_rows + attn + mlp
        hf = _layernorm(y, lnf_g_ref, lnf_b_ref)
        logits = jnp.dot(hf.astype(W_DTYPE), lmw_ref[...],
                         preferred_element_type=jnp.float32) + lmb_ref[...]  # [B, V]

        # Greedy argmax in-kernel (first occurrence on ties, like jnp.argmax).
        mxl = jnp.max(logits, axis=-1, keepdims=True)
        vid = lax.broadcasted_iota(jnp.int32, (B, V), 1)
        nxt = jnp.min(jnp.where(logits == mxl, vid, V), axis=-1, keepdims=True)
        return nxt.astype(jnp.int32)                   # [B, 1]

    # ---------------- prefill: K/V for all prompt positions, once ------------
    tok = tok_ref[...]                                               # [NP_ROWS, 1]
    onehot = (tok == lax.broadcasted_iota(jnp.int32, (NP_ROWS, V), 1)
              ).astype(W_DTYPE)                                      # [NP_ROWS, V]
    x_all = jnp.dot(onehot, embed_ref[...],
                    preferred_element_type=jnp.float32)              # [NP_ROWS, H]
    h1 = _layernorm(x_all, ln1_g_ref, ln1_b_ref)
    qkv_all = jnp.dot(h1.astype(W_DTYPE), wqkv_ref[...],
                      preferred_element_type=jnp.float32) + bqkv_ref[...]
    k_cache[0:NP_ROWS, :] = qkv_all[:, H:2 * H]
    v_cache[0:NP_ROWS, :] = qkv_all[:, 2 * H:3 * H]

    # First generated token: forward of the last prompt position (its K/V are
    # already in the cache, so no cache write needed here).
    x_last = x_all[(S_PROMPT - 1) * B:S_PROMPT * B, :]               # [B, H]
    nxt = forward_rows(x_last, pos=S_PROMPT - 1, step=0, write_cache=False)
    out_ref[0, :, :] = nxt

    # ---------------- decode steps (KV-cached, static unroll) ----------------
    for step in range(1, n_props):
        oh_new = (nxt == lax.broadcasted_iota(jnp.int32, (B, V), 1)
                  ).astype(W_DTYPE)                                  # [B, V]
        x_new = jnp.dot(oh_new, embed_ref[...],
                        preferred_element_type=jnp.float32)          # [B, H]
        nxt = forward_rows(x_new, pos=S_PROMPT - 1 + step, step=step,
                           write_cache=True)
        out_ref[step, :, :] = nxt


# ----------------------------- host-side helpers -----------------------------
def _build_masks(n_props):
    """Additive attention masks per decode step: [n_props, B, NROWS] f32.

    Step `s` queries position pos = S_PROMPT-1+s; key row r (position-major)
    is valid iff it belongs to the same batch and its position is <= pos.
    """
    r = np.arange(NROWS)
    b = np.arange(B)
    masks = []
    for step in range(n_props):
        pos = S_PROMPT - 1 + step
        valid = (r[None, :] % B == b[:, None]) & (r[None, :] // B <= pos)
        masks.append(np.where(valid, 0.0, NEG_INF).astype(np.float32))
    return jnp.asarray(np.stack(masks, axis=0))


@functools.partial(jax.jit, static_argnames=("n_props",))
def _generate(prompt_tokens, params, n_props):
    """prompt_tokens: [B, S_PROMPT] int32 -> generated ids [n_props, B] int32."""
    # Position-major flattened prompt rows: row p*B + b  <-  prompt[b, p].
    tok = prompt_tokens.T.reshape(NP_ROWS, 1).astype(jnp.int32)
    masks = _build_masks(n_props)

    args = (
        tok, masks, params["embed"],
        params["ln1_g"], params["ln1_b"], params["ln2_g"], params["ln2_b"],
        params["lnf_g"], params["lnf_b"],
        params["wqkv"], params["bqkv"], params["wo"], params["bo"],
        params["w_up"], params["b_up"], params["w_dn"], params["b_dn"],
        params["lm_head"], params["lm_b"],
    )
    out = pl.pallas_call(
        functools.partial(_gen_kernel, n_props=n_props),
        out_shape=jax.ShapeDtypeStruct((n_props, B, 1), jnp.int32),
        # Whole-array VMEM-resident blocks; no grid -> weights DMA'd exactly
        # once and zero per-step pipeline overhead.  (v7x second TensorCore is
        # intentionally left idle: at this size the kernel is not compute-bound.)
        in_specs=[pl.BlockSpec(memory_space=pltpu.MemorySpace.VMEM)
                  for _ in args],
        out_specs=pl.BlockSpec(memory_space=pltpu.MemorySpace.VMEM),
        scratch_shapes=[pltpu.VMEM((NROWS, H), jnp.float32),   # K cache
                        pltpu.VMEM((NROWS, H), jnp.float32)],  # V cache
    )(*args)
    return out.reshape(n_props, B)


# ----------------------------- params ----------------------------------------
def init_params(key):
    ks = jax.random.split(key, 6)

    def n(k, shape, dtype):
        return (0.02 * jax.random.normal(k, shape, dtype=jnp.float32)).astype(dtype)

    f32 = jnp.float32
    return {
        # embedding table is an MXU operand now (one-hot lookup in-kernel)
        "embed": n(ks[0], (V, H), W_DTYPE),
        "ln1_g": jnp.ones((1, H), f32), "ln1_b": jnp.zeros((1, H), f32),
        "ln2_g": jnp.ones((1, H), f32), "ln2_b": jnp.zeros((1, H), f32),
        "lnf_g": jnp.ones((1, H), f32), "lnf_b": jnp.zeros((1, H), f32),
        # big weight slabs in bf16 (MXU operands); biases/LN params stay f32
        "wqkv": n(ks[1], (H, 3 * H), W_DTYPE), "bqkv": jnp.zeros((1, 3 * H), f32),
        "wo":   n(ks[2], (H, H), W_DTYPE),     "bo":   jnp.zeros((1, H), f32),
        "w_up": n(ks[3], (H, FF), W_DTYPE),    "b_up": jnp.zeros((1, FF), f32),
        "w_dn": n(ks[4], (FF, H), W_DTYPE),    "b_dn": jnp.zeros((1, H), f32),
        "lm_head": n(ks[5], (H, V), W_DTYPE),  "lm_b": jnp.zeros((1, V), f32),
    }


# ----------------------------- Jsonformer-style forward ----------------------
def custom_jsonformer_forward(prompt_tokens, json_schema, params):
    """Mimics CustomJsonformer.forward: greedy-generate one value per schema
    property with the Pallas-backed LM (no_grad semantics implicit in JAX)."""
    # TODO(synk): tokenizer, HF dolly-v2-3b weights, and Jsonformer's
    # string-level constrained-JSON decoding loop have no Pallas equivalent;
    # we emit one greedy token id (appended to the context) per property.
    props = list(json_schema["properties"])
    assert S_PROMPT + len(props) <= MAX_S, "token / KV-cache buffer too small"
    toks = _generate(prompt_tokens, params, n_props=len(props))
    return {prop: toks[i] for i, prop in enumerate(props)}


# ----------------------------------- main ------------------------------------
if __name__ == "__main__":
    key = jax.random.PRNGKey(0)
    pkey, tkey = jax.random.split(key)
    params = init_params(pkey)

    prompt_tokens = jax.random.randint(tkey, (B, S_PROMPT), 0, V, dtype=jnp.int32)
    json_schema = {
        "type": "object",
        "properties": {"value": {"type": "number"}, "name": {"type": "string"}},
    }

    out = custom_jsonformer_forward(prompt_tokens, json_schema, params)
    for v in out.values():
        jax.block_until_ready(v)
    print("KERNEL_OK")
</pallas_src>

<mosaic_0001>
module attributes {stable_mosaic.version = 11 : i64} {
  func.func @_gen_kernel(%arg0: memref<16x1xi32, #tpu.memory_space<vmem>>, %arg1: memref<2x2x32xf32, #tpu.memory_space<vmem>>, %arg2: memref<256x128xbf16, #tpu.memory_space<vmem>>, %arg3: memref<1x128xf32, #tpu.memory_space<vmem>>, %arg4: memref<1x128xf32, #tpu.memory_space<vmem>>, %arg5: memref<1x128xf32, #tpu.memory_space<vmem>>, %arg6: memref<1x128xf32, #tpu.memory_space<vmem>>, %arg7: memref<1x128xf32, #tpu.memory_space<vmem>>, %arg8: memref<1x128xf32, #tpu.memory_space<vmem>>, %arg9: memref<128x384xbf16, #tpu.memory_space<vmem>>, %arg10: memref<1x384xf32, #tpu.memory_space<vmem>>, %arg11: memref<128x128xbf16, #tpu.memory_space<vmem>>, %arg12: memref<1x128xf32, #tpu.memory_space<vmem>>, %arg13: memref<128x512xbf16, #tpu.memory_space<vmem>>, %arg14: memref<1x512xf32, #tpu.memory_space<vmem>>, %arg15: memref<512x128xbf16, #tpu.memory_space<vmem>>, %arg16: memref<1x128xf32, #tpu.memory_space<vmem>>, %arg17: memref<128x256xbf16, #tpu.memory_space<vmem>>, %arg18: memref<1x256xf32, #tpu.memory_space<vmem>>, %arg19: memref<2x2x1xi32, #tpu.memory_space<vmem>>, %arg20: memref<32x128xf32, #tpu.memory_space<vmem>>, %arg21: memref<32x128xf32, #tpu.memory_space<vmem>>) attributes {dimension_semantics = [], scalar_prefetch = 0 : i64, scratch_operands = 2 : i64, tpu.core_type = #tpu.core_type<tc>} {
    %cst = arith.constant 0.000000e+00 : f32
    %0 = vector.broadcast %cst : f32 to vector<32x128xf32>
    %c0 = arith.constant 0 : index
    %c0_0 = arith.constant 0 : index
    %1 = vector.load %arg20[%c0, %c0_0] : memref<32x128xf32, #tpu.memory_space<vmem>>, vector<32x128xf32>
    tpu.vector_store %arg20[%c0, %c0_0], %0 {strides = array<i32>} : memref<32x128xf32, #tpu.memory_space<vmem>>, vector<32x128xf32>,
    %cst_1 = arith.constant 0.000000e+00 : f32
    %2 = vector.broadcast %cst_1 : f32 to vector<32x128xf32>
    %c0_2 = arith.constant 0 : index
    %c0_3 = arith.constant 0 : index
    %3 = vector.load %arg21[%c0_2, %c0_3] : memref<32x128xf32, #tpu.memory_space<vmem>>, vector<32x128xf32>
    tpu.vector_store %arg21[%c0_2, %c0_3], %2 {strides = array<i32>} : memref<32x128xf32, #tpu.memory_space<vmem>>, vector<32x128xf32>,
    %c0_4 = arith.constant 0 : index
    %c0_5 = arith.constant 0 : index
    %4 = vector.load %arg0[%c0_4, %c0_5] : memref<16x1xi32, #tpu.memory_space<vmem>>, vector<16x1xi32>
    %5 = tpu.iota {dimensions = array<i32: 1>} : vector<16x256xi32>
    %6 = vector.broadcast %4 : vector<16x1xi32> to vector<16x256xi32>
    %7 = arith.cmpi eq, %6, %5 : vector<16x256xi32>
    %8 = arith.extui %7 : vector<16x256xi1> to vector<16x256xi32>
    %9 = arith.sitofp %8 : vector<16x256xi32> to vector<16x256xf32>
    %10 = arith.truncf %9 : vector<16x256xf32> to vector<16x256xbf16>
    %c0_6 = arith.constant 0 : index
    %c0_7 = arith.constant 0 : index
    %11 = vector.load %arg2[%c0_6, %c0_7] : memref<256x128xbf16, #tpu.memory_space<vmem>>, vector<256x128xbf16>
    %cst_8 = arith.constant dense<0.000000e+00> : vector<16x128xf32>
    %12 = tpu.matmul %10, %11, %cst_8 {dimension_numbers = #tpu.dot_dimension_numbers<[1], [0], [0], [1], [0, 0, 1, 1], [], []>} : vector<16x256xbf16>, vector<256x128xbf16>, vector<16x128xf32> -> vector<16x128xf32>
    %cst_9 = arith.constant dense<0.000000e+00> : vector<16xf32>
    %13 = vector.multi_reduction <add>, %12, %cst_9 [1] : vector<16x128xf32> to vector<16xf32>
    %14 = vector.shape_cast %13 : vector<16xf32> to vector<16x1xf32>
    %cst_10 = arith.constant 1.280000e+02 : f32
    %15 = vector.broadcast %cst_10 : f32 to vector<16x1xf32>
    %16 = arith.divf %14, %15 : vector<16x1xf32>
    %17 = vector.broadcast %16 : vector<16x1xf32> to vector<16x128xf32>
    %18 = arith.subf %12, %17 : vector<16x128xf32>
    %19 = arith.mulf %18, %18 : vector<16x128xf32>
    %cst_11 = arith.constant dense<0.000000e+00> : vector<16xf32>
    %20 = vector.multi_reduction <add>, %19, %cst_11 [1] : vector<16x128xf32> to vector<16xf32>
    %21 = vector.shape_cast %20 : vector<16xf32> to vector<16x1xf32>
    %cst_12 = arith.constant 1.280000e+02 : f32
    %22 = vector.broadcast %cst_12 : f32 to vector<16x1xf32>
    %23 = arith.divf %21, %22 : vector<16x1xf32>
    %24 = vector.broadcast %16 : vector<16x1xf32> to vector<16x128xf32>
    %25 = arith.subf %12, %24 : vector<16x128xf32>
    %cst_13 = arith.constant 9.99999974E-6 : f32
    %26 = vector.broadcast %cst_13 : f32 to vector<16x1xf32>
    %27 = arith.addf %23, %26 : vector<16x1xf32>
    %28 = math.rsqrt %27 : vector<16x1xf32>
    %29 = vector.broadcast %28 : vector<16x1xf32> to vector<16x128xf32>
    %30 = arith.mulf %25, %29 : vector<16x128xf32>
    %c0_14 = arith.constant 0 : index
    %c0_15 = arith.constant 0 : index
    %31 = vector.load %arg3[%c0_14, %c0_15] : memref<1x128xf32, #tpu.memory_space<vmem>>, vector<1x128xf32>
    %32 = vector.broadcast %31 : vector<1x128xf32> to vector<16x128xf32>
    %33 = arith.mulf %30, %32 : vector<16x128xf32>
    %c0_16 = arith.constant 0 : index
    %c0_17 = arith.constant 0 : index
    %34 = vector.load %arg4[%c0_16, %c0_17] : memref<1x128xf32, #tpu.memory_space<vmem>>, vector<1x128xf32>
    %35 = vector.broadcast %34 : vector<1x128xf32> to vector<16x128xf32>
    %36 = arith.addf %33, %35 : vector<16x128xf32>
    %37 = arith.truncf %36 : vector<16x128xf32> to vector<16x128xbf16>
    %c0_18 = arith.constant 0 : index
    %c0_19 = arith.constant 0 : index
    %38 = vector.load %arg9[%c0_18, %c0_19] : memref<128x384xbf16, #tpu.memory_space<vmem>>, vector<128x384xbf16>
    %cst_20 = arith.constant dense<0.000000e+00> : vector<16x384xf32>
    %39 = tpu.matmul %37, %38, %cst_20 {dimension_numbers = #tpu.dot_dimension_numbers<[1], [0], [0], [1], [0, 0, 1, 1], [], []>} : vector<16x128xbf16>, vector<128x384xbf16>, vector<16x384xf32> -> vector<16x384xf32>
    %c0_21 = arith.constant 0 : index
    %c0_22 = arith.constant 0 : index
    %40 = vector.load %arg10[%c0_21, %c0_22] : memref<1x384xf32, #tpu.memory_space<vmem>>, vector<1x384xf32>
    %41 = vector.broadcast %40 : vector<1x384xf32> to vector<16x384xf32>
    %42 = arith.addf %39, %41 : vector<16x384xf32>
    %43 = vector.extract_strided_slice %42 {offsets = [0, 128], sizes = [16, 128], strides = [1, 1]} : vector<16x384xf32> to vector<16x128xf32>
    %c0_23 = arith.constant 0 : index
    %c0_24 = arith.constant 0 : index
    %44 = vector.load %arg20[%c0_23, %c0_24] : memref<32x128xf32, #tpu.memory_space<vmem>>, vector<16x128xf32>
    tpu.vector_store %arg20[%c0_23, %c0_24], %43 {strides = array<i32>} : memref<32x128xf32, #tpu.memory_space<vmem>>, vector<16x128xf32>,
    %45 = vector.extract_strided_slice %42 {offsets = [0, 256], sizes = [16, 128], strides = [1, 1]} : vector<16x384xf32> to vector<16x128xf32>
    %c0_25 = arith.constant 0 : index
    %c0_26 = arith.constant 0 : index
    %46 = vector.load %arg21[%c0_25, %c0_26] : memref<32x128xf32, #tpu.memory_space<vmem>>, vector<16x128xf32>
    tpu.vector_store %arg21[%c0_25, %c0_26], %45 {strides = array<i32>} : memref<32x128xf32, #tpu.memory_space<vmem>>, vector<16x128xf32>,
    %47 = vector.extract_strided_slice %12 {offsets = [14, 0], sizes = [2, 128], strides = [1, 1]} : vector<16x128xf32> to vector<2x128xf32>
    %cst_27 = arith.constant dense<0.000000e+00> : vector<2xf32>
    %48 = vector.multi_reduction <add>, %47, %cst_27 [1] : vector<2x128xf32> to vector<2xf32>
    %49 = vector.shape_cast %48 : vector<2xf32> to vector<2x1xf32>
    %cst_28 = arith.constant 1.280000e+02 : f32
    %50 = vector.broadcast %cst_28 : f32 to vector<2x1xf32>
    %51 = arith.divf %49, %50 : vector<2x1xf32>
    %52 = vector.broadcast %51 : vector<2x1xf32> to vector<2x128xf32>
    %53 = arith.subf %47, %52 : vector<2x128xf32>
    %54 = arith.mulf %53, %53 : vector<2x128xf32>
    %cst_29 = arith.constant dense<0.000000e+00> : vector<2xf32>
    %55 = vector.multi_reduction <add>, %54, %cst_29 [1] : vector<2x128xf32> to vector<2xf32>
    %56 = vector.shape_cast %55 : vector<2xf32> to vector<2x1xf32>
    %cst_30 = arith.constant 1.280000e+02 : f32
    %57 = vector.broadcast %cst_30 : f32 to vector<2x1xf32>
    %58 = arith.divf %56, %57 : vector<2x1xf32>
    %59 = vector.broadcast %51 : vector<2x1xf32> to vector<2x128xf32>
    %60 = arith.subf %47, %59 : vector<2x128xf32>
    %cst_31 = arith.constant 9.99999974E-6 : f32
    %61 = vector.broadcast %cst_31 : f32 to vector<2x1xf32>
    %62 = arith.addf %58, %61 : vector<2x1xf32>
    %63 = math.rsqrt %62 : vector<2x1xf32>
    %64 = vector.broadcast %63 : vector<2x1xf32> to vector<2x128xf32>
    %65 = arith.mulf %60, %64 : vector<2x128xf32>
    %c0_32 = arith.constant 0 : index
    %c0_33 = arith.constant 0 : index
    %66 = vector.load %arg3[%c0_32, %c0_33] : memref<1x128xf32, #tpu.memory_space<vmem>>, vector<1x128xf32>
    %67 = vector.broadcast %66 : vector<1x128xf32> to vector<2x128xf32>
    %68 = arith.mulf %65, %67 : vector<2x128xf32>
    %c0_34 = arith.constant 0 : index
    %c0_35 = arith.constant 0 : index
    %69 = vector.load %arg4[%c0_34, %c0_35] : memref<1x128xf32, #tpu.memory_space<vmem>>, vector<1x128xf32>
    %70 = vector.broadcast %69 : vector<1x128xf32> to vector<2x128xf32>
    %71 = arith.addf %68, %70 : vector<2x128xf32>
    %72 = arith.truncf %71 : vector<2x128xf32> to vector<2x128xbf16>
    %c0_36 = arith.constant 0 : index
    %c0_37 = arith.constant 0 : index
    %73 = vector.load %arg9[%c0_36, %c0_37] : memref<128x384xbf16, #tpu.memory_space<vmem>>, vector<128x384xbf16>
    %cst_38 = arith.constant dense<0.000000e+00> : vector<2x384xf32>
    %74 = tpu.matmul %72, %73, %cst_38 {dimension_numbers = #tpu.dot_dimension_numbers<[1], [0], [0], [1], [0, 0, 1, 1], [], []>} : vector<2x128xbf16>, vector<128x384xbf16>, vector<2x384xf32> -> vector<2x384xf32>
    %c0_39 = arith.constant 0 : index
    %c0_40 = arith.constant 0 : index
    %75 = vector.load %arg10[%c0_39, %c0_40] : memref<1x384xf32, #tpu.memory_space<vmem>>, vector<1x384xf32>
    %76 = vector.broadcast %75 : vector<1x384xf32> to vector<2x384xf32>
    %77 = arith.addf %74, %76 : vector<2x384xf32>
    %78 = vector.extract_strided_slice %77 {offsets = [0, 0], sizes = [2, 128], strides = [1, 1]} : vector<2x384xf32> to vector<2x128xf32>
    %c0_41 = arith.constant 0 : index
    %c0_42 = arith.constant 0 : index
    %79 = vector.load %arg20[%c0_41, %c0_42] : memref<32x128xf32, #tpu.memory_space<vmem>>, vector<32x128xf32>
    %c0_43 = arith.constant 0 : index
    %c0_44 = arith.constant 0 : index
    %80 = vector.load %arg21[%c0_43, %c0_44] : memref<32x128xf32, #tpu.memory_space<vmem>>, vector<32x128xf32>
    %c0_45 = arith.constant 0 : index
    %c0_46 = arith.constant 0 : index
    %c0_47 = arith.constant 0 : index
    %81 = vector.load %arg1[%c0_45, %c0_46, %c0_47] : memref<2x2x32xf32, #tpu.memory_space<vmem>>, vector<1x2x32xf32>
    %82 = vector.shape_cast %81 : vector<1x2x32xf32> to vector<2x32xf32>
    %cst_48 = arith.constant 0.000000e+00 : f32
    %83 = vector.broadcast %cst_48 : f32 to vector<2x128xf32>
    %84 = vector.extract_strided_slice %78 {offsets = [0, 0], sizes = [2, 32], strides = [1, 1]} : vector<2x128xf32> to vector<2x32xf32>
    %85 = vector.extract_strided_slice %79 {offsets = [0, 0], sizes = [32, 32], strides = [1, 1]} : vector<32x128xf32> to vector<32x32xf32>
    %86 = vector.extract_strided_slice %80 {offsets = [0, 0], sizes = [32, 32], strides = [1, 1]} : vector<32x128xf32> to vector<32x32xf32>
    %87 = tpu.transpose %85, [1, 0] : vector<32x32xf32> -> vector<32x32xf32>
    %cst_49 = arith.constant dense<0.000000e+00> : vector<2x32xf32>
    %88 = tpu.matmul %84, %87, %cst_49 {dimension_numbers = #tpu.dot_dimension_numbers<[1], [0], [0], [1], [0, 0, 1, 1], [], []>} : vector<2x32xf32>, vector<32x32xf32>, vector<2x32xf32> -> vector<2x32xf32>
    %cst_50 = arith.constant 0.176776692 : f32
    %89 = vector.broadcast %cst_50 : f32 to vector<2x32xf32>
    %90 = arith.mulf %88, %89 : vector<2x32xf32>
    %91 = arith.addf %90, %82 : vector<2x32xf32>
    %cst_51 = arith.constant dense<0xFF800000> : vector<2xf32>
    %92 = vector.multi_reduction <maximumf>, %91, %cst_51 [1] : vector<2x32xf32> to vector<2xf32>
    %93 = vector.shape_cast %92 : vector<2xf32> to vector<2x1xf32>
    %94 = vector.broadcast %93 : vector<2x1xf32> to vector<2x32xf32>
    %95 = arith.subf %91, %94 : vector<2x32xf32>
    %96 = math.exp %95 : vector<2x32xf32>
    %cst_52 = arith.constant dense<0.000000e+00> : vector<2xf32>
    %97 = vector.multi_reduction <add>, %96, %cst_52 [1] : vector<2x32xf32> to vector<2xf32>
    %98 = vector.shape_cast %97 : vector<2xf32> to vector<2x1xf32>
    %cst_53 = arith.constant dense<0.000000e+00> : vector<2x32xf32>
    %99 = tpu.matmul %96, %86, %cst_53 {dimension_numbers = #tpu.dot_dimension_numbers<[1], [0], [0], [1], [0, 0, 1, 1], [], []>} : vector<2x32xf32>, vector<32x32xf32>, vector<2x32xf32> -> vector<2x32xf32>
    %100 = tpu.reciprocal %98 {approx = true} : vector<2x1xf32> -> vector<2x1xf32>
    %101 = vector.broadcast %100 : vector<2x1xf32> to vector<2x32xf32>
    %102 = arith.mulf %99, %101 : vector<2x32xf32>
    %103 = arith.truncf %102 : vector<2x32xf32> to vector<2x32xbf16>
    %c0_54 = arith.constant 0 : index
    %c0_55 = arith.constant 0 : index
    %104 = vector.load %arg11[%c0_54, %c0_55] : memref<128x128xbf16, #tpu.memory_space<vmem>>, vector<32x128xbf16>
    %cst_56 = arith.constant dense<0.000000e+00> : vector<2x128xf32>
    %105 = tpu.matmul %103, %104, %cst_56 {dimension_numbers = #tpu.dot_dimension_numbers<[1], [0], [0], [1], [0, 0, 1, 1], [], []>} : vector<2x32xbf16>, vector<32x128xbf16>, vector<2x128xf32> -> vector<2x128xf32>
    %106 = arith.addf %83, %105 : vector<2x128xf32>
    %107 = vector.extract_strided_slice %78 {offsets = [0, 32], sizes = [2, 32], strides = [1, 1]} : vector<2x128xf32> to vector<2x32xf32>
    %108 = vector.extract_strided_slice %79 {offsets = [0, 32], sizes = [32, 32], strides = [1, 1]} : vector<32x128xf32> to vector<32x32xf32>
    %109 = vector.extract_strided_slice %80 {offsets = [0, 32], sizes = [32, 32], strides = [1, 1]} : vector<32x128xf32> to vector<32x32xf32>
    %110 = tpu.transpose %108, [1, 0] : vector<32x32xf32> -> vector<32x32xf32>
    %cst_57 = arith.constant dense<0.000000e+00> : vector<2x32xf32>
    %111 = tpu.matmul %107, %110, %cst_57 {dimension_numbers = #tpu.dot_dimension_numbers<[1], [0], [0], [1], [0, 0, 1, 1], [], []>} : vector<2x32xf32>, vector<32x32xf32>, vector<2x32xf32> -> vector<2x32xf32>
    %cst_58 = arith.constant 0.176776692 : f32
    %112 = vector.broadcast %cst_58 : f32 to vector<2x32xf32>
    %113 = arith.mulf %111, %112 : vector<2x32xf32>
    %114 = arith.addf %113, %82 : vector<2x32xf32>
    %cst_59 = arith.constant dense<0xFF800000> : vector<2xf32>
    %115 = vector.multi_reduction <maximumf>, %114, %cst_59 [1] : vector<2x32xf32> to vector<2xf32>
    %116 = vector.shape_cast %115 : vector<2xf32> to vector<2x1xf32>
    %117 = vector.broadcast %116 : vector<2x1xf32> to vector<2x32xf32>
    %118 = arith.subf %114, %117 : vector<2x32xf32>
    %119 = math.exp %118 : vector<2x32xf32>
    %cst_60 = arith.constant dense<0.000000e+00> : vector<2xf32>
    %120 = vector.multi_reduction <add>, %119, %cst_60 [1] : vector<2x32xf32> to vector<2xf32>
    %121 = vector.shape_cast %120 : vector<2xf32> to vector<2x1xf32>
    %cst_61 = arith.constant dense<0.000000e+00> : vector<2x32xf32>
    %122 = tpu.matmul %119, %109, %cst_61 {dimension_numbers = #tpu.dot_dimension_numbers<[1], [0], [0], [1], [0, 0, 1, 1], [], []>} : vector<2x32xf32>, vector<32x32xf32>, vector<2x32xf32> -> vector<2x32xf32>
    %123 = tpu.reciprocal %121 {approx = true} : vector<2x1xf32> -> vector<2x1xf32>
    %124 = vector.broadcast %123 : vector<2x1xf32> to vector<2x32xf32>
    %125 = arith.mulf %122, %124 : vector<2x32xf32>
    %126 = arith.truncf %125 : vector<2x32xf32> to vector<2x32xbf16>
    %c32 = arith.constant 32 : index
    %c0_62 = arith.constant 0 : index
    %127 = vector.load %arg11[%c32, %c0_62] : memref<128x128xbf16, #tpu.memory_space<vmem>>, vector<32x128xbf16>
    %cst_63 = arith.constant dense<0.000000e+00> : vector<2x128xf32>
    %128 = tpu.matmul %126, %127, %cst_63 {dimension_numbers = #tpu.dot_dimension_numbers<[1], [0], [0], [1], [0, 0, 1, 1], [], []>} : vector<2x32xbf16>, vector<32x128xbf16>, vector<2x128xf32> -> vector<2x128xf32>
    %129 = arith.addf %106, %128 : vector<2x128xf32>
    %130 = vector.extract_strided_slice %78 {offsets = [0, 64], sizes = [2, 32], strides = [1, 1]} : vector<2x128xf32> to vector<2x32xf32>
    %131 = vector.extract_strided_slice %79 {offsets = [0, 64], sizes = [32, 32], strides = [1, 1]} : vector<32x128xf32> to vector<32x32xf32>
    %132 = vector.extract_strided_slice %80 {offsets = [0, 64], sizes = [32, 32], strides = [1, 1]} : vector<32x128xf32> to vector<32x32xf32>
    %133 = tpu.transpose %131, [1, 0] : vector<32x32xf32> -> vector<32x32xf32>
    %cst_64 = arith.constant dense<0.000000e+00> : vector<2x32xf32>
    %134 = tpu.matmul %130, %133, %cst_64 {dimension_numbers = #tpu.dot_dimension_numbers<[1], [0], [0], [1], [0, 0, 1, 1], [], []>} : vector<2x32xf32>, vector<32x32xf32>, vector<2x32xf32> -> vector<2x32xf32>
    %cst_65 = arith.constant 0.176776692 : f32
    %135 = vector.broadcast %cst_65 : f32 to vector<2x32xf32>
    %136 = arith.mulf %134, %135 : vector<2x32xf32>
    %137 = arith.addf %136, %82 : vector<2x32xf32>
    %cst_66 = arith.constant dense<0xFF800000> : vector<2xf32>
    %138 = vector.multi_reduction <maximumf>, %137, %cst_66 [1] : vector<2x32xf32> to vector<2xf32>
    %139 = vector.shape_cast %138 : vector<2xf32> to vector<2x1xf32>
    %140 = vector.broadcast %139 : vector<2x1xf32> to vector<2x32xf32>
    %141 = arith.subf %137, %140 : vector<2x32xf32>
    %142 = math.exp %141 : vector<2x32xf32>
    %cst_67 = arith.constant dense<0.000000e+00> : vector<2xf32>
    %143 = vector.multi_reduction <add>, %142, %cst_67 [1] : vector<2x32xf32> to vector<2xf32>
    %144 = vector.shape_cast %143 : vector<2xf32> to vector<2x1xf32>
    %cst_68 = arith.constant dense<0.000000e+00> : vector<2x32xf32>
    %145 = tpu.matmul %142, %132, %cst_68 {dimension_numbers = #tpu.dot_dimension_numbers<[1], [0], [0], [1], [0, 0, 1, 1], [], []>} : vector<2x32xf32>, vector<32x32xf32>, vector<2x32xf32> -> vector<2x32xf32>
    %146 = tpu.reciprocal %144 {approx = true} : vector<2x1xf32> -> vector<2x1xf32>
    %147 = vector.broadcast %146 : vector<2x1xf32> to vector<2x32xf32>
    %148 = arith.mulf %145, %147 : vector<2x32xf32>
    %149 = arith.truncf %148 : vector<2x32xf32> to vector<2x32xbf16>
    %c64 = arith.constant 64 : index
    %c0_69 = arith.constant 0 : index
    %150 = vector.load %arg11[%c64, %c0_69] : memref<128x128xbf16, #tpu.memory_space<vmem>>, vector<32x128xbf16>
    %cst_70 = arith.constant dense<0.000000e+00> : vector<2x128xf32>
    %151 = tpu.matmul %149, %150, %cst_70 {dimension_numbers = #tpu.dot_dimension_numbers<[1], [0], [0], [1], [0, 0, 1, 1], [], []>} : vector<2x32xbf16>, vector<32x128xbf16>, vector<2x128xf32> -> vector<2x128xf32>
    %152 = arith.addf %129, %151 : vector<2x128xf32>
    %153 = vector.extract_strided_slice %78 {offsets = [0, 96], sizes = [2, 32], strides = [1, 1]} : vector<2x128xf32> to vector<2x32xf32>
    %154 = vector.extract_strided_slice %79 {offsets = [0, 96], sizes = [32, 32], strides = [1, 1]} : vector<32x128xf32> to vector<32x32xf32>
    %155 = vector.extract_strided_slice %80 {offsets = [0, 96], sizes = [32, 32], strides = [1, 1]} : vector<32x128xf32> to vector<32x32xf32>
    %156 = tpu.transpose %154, [1, 0] : vector<32x32xf32> -> vector<32x32xf32>
    %cst_71 = arith.constant dense<0.000000e+00> : vector<2x32xf32>
    %157 = tpu.matmul %153, %156, %cst_71 {dimension_numbers = #tpu.dot_dimension_numbers<[1], [0], [0], [1], [0, 0, 1, 1], [], []>} : vector<2x32xf32>, vector<32x32xf32>, vector<2x32xf32> -> vector<2x32xf32>
    %cst_72 = arith.constant 0.176776692 : f32
    %158 = vector.broadcast %cst_72 : f32 to vector<2x32xf32>
    %159 = arith.mulf %157, %158 : vector<2x32xf32>
    %160 = arith.addf %159, %82 : vector<2x32xf32>
    %cst_73 = arith.constant dense<0xFF800000> : vector<2xf32>
    %161 = vector.multi_reduction <maximumf>, %160, %cst_73 [1] : vector<2x32xf32> to vector<2xf32>
    %162 = vector.shape_cast %161 : vector<2xf32> to vector<2x1xf32>
    %163 = vector.broadcast %162 : vector<2x1xf32> to vector<2x32xf32>
    %164 = arith.subf %160, %163 : vector<2x32xf32>
    %165 = math.exp %164 : vector<2x32xf32>
    %cst_74 = arith.constant dense<0.000000e+00> : vector<2xf32>
    %166 = vector.multi_reduction <add>, %165, %cst_74 [1] : vector<2x32xf32> to vector<2xf32>
    %167 = vector.shape_cast %166 : vector<2xf32> to vector<2x1xf32>
    %cst_75 = arith.constant dense<0.000000e+00> : vector<2x32xf32>
    %168 = tpu.matmul %165, %155, %cst_75 {dimension_numbers = #tpu.dot_dimension_numbers<[1], [0], [0], [1], [0, 0, 1, 1], [], []>} : vector<2x32xf32>, vector<32x32xf32>, vector<2x32xf32> -> vector<2x32xf32>
    %169 = tpu.reciprocal %167 {approx = true} : vector<2x1xf32> -> vector<2x1xf32>
    %170 = vector.broadcast %169 : vector<2x1xf32> to vector<2x32xf32>
    %171 = arith.mulf %168, %170 : vector<2x32xf32>
    %172 = arith.truncf %171 : vector<2x32xf32> to vector<2x32xbf16>
    %c96 = arith.constant 96 : index
    %c0_76 = arith.constant 0 : index
    %173 = vector.load %arg11[%c96, %c0_76] : memref<128x128xbf16, #tpu.memory_space<vmem>>, vector<32x128xbf16>
    %cst_77 = arith.constant dense<0.000000e+00> : vector<2x128xf32>
    %174 = tpu.matmul %172, %173, %cst_77 {dimension_numbers = #tpu.dot_dimension_numbers<[1], [0], [0], [1], [0, 0, 1, 1], [], []>} : vector<2x32xbf16>, vector<32x128xbf16>, vector<2x128xf32> -> vector<2x128xf32>
    %175 = arith.addf %152, %174 : vector<2x128xf32>
    %c0_78 = arith.constant 0 : index
    %c0_79 = arith.constant 0 : index
    %176 = vector.load %arg12[%c0_78, %c0_79] : memref<1x128xf32, #tpu.memory_space<vmem>>, vector<1x128xf32>
    %177 = vector.broadcast %176 : vector<1x128xf32> to vector<2x128xf32>
    %178 = arith.addf %175, %177 : vector<2x128xf32>
    %cst_80 = arith.constant dense<0.000000e+00> : vector<2xf32>
    %179 = vector.multi_reduction <add>, %47, %cst_80 [1] : vector<2x128xf32> to vector<2xf32>
    %180 = vector.shape_cast %179 : vector<2xf32> to vector<2x1xf32>
    %cst_81 = arith.constant 1.280000e+02 : f32
    %181 = vector.broadcast %cst_81 : f32 to vector<2x1xf32>
    %182 = arith.divf %180, %181 : vector<2x1xf32>
    %183 = vector.broadcast %182 : vector<2x1xf32> to vector<2x128xf32>
    %184 = arith.subf %47, %183 : vector<2x128xf32>
    %185 = arith.mulf %184, %184 : vector<2x128xf32>
    %cst_82 = arith.constant dense<0.000000e+00> : vector<2xf32>
    %186 = vector.multi_reduction <add>, %185, %cst_82 [1] : vector<2x128xf32> to vector<2xf32>
    %187 = vector.shape_cast %186 : vector<2xf32> to vector<2x1xf32>
    %cst_83 = arith.constant 1.280000e+02 : f32
    %188 = vector.broadcast %cst_83 : f32 to vector<2x1xf32>
    %189 = arith.divf %187, %188 : vector<2x1xf32>
    %190 = vector.broadcast %182 : vector<2x1xf32> to vector<2x128xf32>
    %191 = arith.subf %47, %190 : vector<2x128xf32>
    %cst_84 = arith.constant 9.99999974E-6 : f32
    %192 = vector.broadcast %cst_84 : f32 to vector<2x1xf32>
    %193 = arith.addf %189, %192 : vector<2x1xf32>
    %194 = math.rsqrt %193 : vector<2x1xf32>
    %195 = vector.broadcast %194 : vector<2x1xf32> to vector<2x128xf32>
    %196 = arith.mulf %191, %195 : vector<2x128xf32>
    %c0_85 = arith.constant 0 : index
    %c0_86 = arith.constant 0 : index
    %197 = vector.load %arg5[%c0_85, %c0_86] : memref<1x128xf32, #tpu.memory_space<vmem>>, vector<1x128xf32>
    %198 = vector.broadcast %197 : vector<1x128xf32> to vector<2x128xf32>
    %199 = arith.mulf %196, %198 : vector<2x128xf32>
    %c0_87 = arith.constant 0 : index
    %c0_88 = arith.constant 0 : index
    %200 = vector.load %arg6[%c0_87, %c0_88] : memref<1x128xf32, #tpu.memory_space<vmem>>, vector<1x128xf32>
    %201 = vector.broadcast %200 : vector<1x128xf32> to vector<2x128xf32>
    %202 = arith.addf %199, %201 : vector<2x128xf32>
    %203 = arith.truncf %202 : vector<2x128xf32> to vector<2x128xbf16>
    %c0_89 = arith.constant 0 : index
    %c0_90 = arith.constant 0 : index
    %204 = vector.load %arg13[%c0_89, %c0_90] : memref<128x512xbf16, #tpu.memory_space<vmem>>, vector<128x512xbf16>
    %cst_91 = arith.constant dense<0.000000e+00> : vector<2x512xf32>
    %205 = tpu.matmul %203, %204, %cst_91 {dimension_numbers = #tpu.dot_dimension_numbers<[1], [0], [0], [1], [0, 0, 1, 1], [], []>} : vector<2x128xbf16>, vector<128x512xbf16>, vector<2x512xf32> -> vector<2x512xf32>
    %c0_92 = arith.constant 0 : index
    %c0_93 = arith.constant 0 : index
    %206 = vector.load %arg14[%c0_92, %c0_93] : memref<1x512xf32, #tpu.memory_space<vmem>>, vector<1x512xf32>
    %207 = vector.broadcast %206 : vector<1x512xf32> to vector<2x512xf32>
    %208 = arith.addf %205, %207 : vector<2x512xf32>
    %209 = arith.mulf %208, %208 : vector<2x512xf32>
    %210 = arith.mulf %208, %209 : vector<2x512xf32>
    %cst_94 = arith.constant 4.471500e-02 : f32
    %211 = vector.broadcast %cst_94 : f32 to vector<2x512xf32>
    %212 = arith.mulf %211, %210 : vector<2x512xf32>
    %213 = arith.addf %208, %212 : vector<2x512xf32>
    %cst_95 = arith.constant 0.797884583 : f32
    %214 = vector.broadcast %cst_95 : f32 to vector<2x512xf32>
    %215 = arith.mulf %214, %213 : vector<2x512xf32>
    %216 = math.tanh %215 : vector<2x512xf32>
    %cst_96 = arith.constant 1.000000e+00 : f32
    %217 = vector.broadcast %cst_96 : f32 to vector<2x512xf32>
    %218 = arith.addf %217, %216 : vector<2x512xf32>
    %cst_97 = arith.constant 5.000000e-01 : f32
    %219 = vector.broadcast %cst_97 : f32 to vector<2x512xf32>
    %220 = arith.mulf %219, %218 : vector<2x512xf32>
    %221 = arith.mulf %208, %220 : vector<2x512xf32>
    %222 = arith.truncf %221 : vector<2x512xf32> to vector<2x512xbf16>
    %c0_98 = arith.constant 0 : index
    %c0_99 = arith.constant 0 : index
    %223 = vector.load %arg15[%c0_98, %c0_99] : memref<512x128xbf16, #tpu.memory_space<vmem>>, vector<512x128xbf16>
    %cst_100 = arith.constant dense<0.000000e+00> : vector<2x128xf32>
    %224 = tpu.matmul %222, %223, %cst_100 {dimension_numbers = #tpu.dot_dimension_numbers<[1], [0], [0], [1], [0, 0, 1, 1], [], []>} : vector<2x512xbf16>, vector<512x128xbf16>, vector<2x128xf32> -> vector<2x128xf32>
    %c0_101 = arith.constant 0 : index
    %c0_102 = arith.constant 0 : index
    %225 = vector.load %arg16[%c0_101, %c0_102] : memref<1x128xf32, #tpu.memory_space<vmem>>, vector<1x128xf32>
    %226 = vector.broadcast %225 : vector<1x128xf32> to vector<2x128xf32>
    %227 = arith.addf %224, %226 : vector<2x128xf32>
    %228 = arith.addf %47, %178 : vector<2x128xf32>
    %229 = arith.addf %228, %227 : vector<2x128xf32>
    %cst_103 = arith.constant dense<0.000000e+00> : vector<2xf32>
    %230 = vector.multi_reduction <add>, %229, %cst_103 [1] : vector<2x128xf32> to vector<2xf32>
    %231 = vector.shape_cast %230 : vector<2xf32> to vector<2x1xf32>
    %cst_104 = arith.constant 1.280000e+02 : f32
    %232 = vector.broadcast %cst_104 : f32 to vector<2x1xf32>
    %233 = arith.divf %231, %232 : vector<2x1xf32>
    %234 = vector.broadcast %233 : vector<2x1xf32> to vector<2x128xf32>
    %235 = arith.subf %229, %234 : vector<2x128xf32>
    %236 = arith.mulf %235, %235 : vector<2x128xf32>
    %cst_105 = arith.constant dense<0.000000e+00> : vector<2xf32>
    %237 = vector.multi_reduction <add>, %236, %cst_105 [1] : vector<2x128xf32> to vector<2xf32>
    %238 = vector.shape_cast %237 : vector<2xf32> to vector<2x1xf32>
    %cst_106 = arith.constant 1.280000e+02 : f32
    %239 = vector.broadcast %cst_106 : f32 to vector<2x1xf32>
    %240 = arith.divf %238, %239 : vector<2x1xf32>
    %241 = vector.broadcast %233 : vector<2x1xf32> to vector<2x128xf32>
    %242 = arith.subf %229, %241 : vector<2x128xf32>
    %cst_107 = arith.constant 9.99999974E-6 : f32
    %243 = vector.broadcast %cst_107 : f32 to vector<2x1xf32>
    %244 = arith.addf %240, %243 : vector<2x1xf32>
    %245 = math.rsqrt %244 : vector<2x1xf32>
    %246 = vector.broadcast %245 : vector<2x1xf32> to vector<2x128xf32>
    %247 = arith.mulf %242, %246 : vector<2x128xf32>
    %c0_108 = arith.constant 0 : index
    %c0_109 = arith.constant 0 : index
    %248 = vector.load %arg7[%c0_108, %c0_109] : memref<1x128xf32, #tpu.memory_space<vmem>>, vector<1x128xf32>
    %249 = vector.broadcast %248 : vector<1x128xf32> to vector<2x128xf32>
    %250 = arith.mulf %247, %249 : vector<2x128xf32>
    %c0_110 = arith.constant 0 : index
    %c0_111 = arith.constant 0 : index
    %251 = vector.load %arg8[%c0_110, %c0_111] : memref<1x128xf32, #tpu.memory_space<vmem>>, vector<1x128xf32>
    %252 = vector.broadcast %251 : vector<1x128xf32> to vector<2x128xf32>
    %253 = arith.addf %250, %252 : vector<2x128xf32>
    %254 = arith.truncf %253 : vector<2x128xf32> to vector<2x128xbf16>
    %c0_112 = arith.constant 0 : index
    %c0_113 = arith.constant 0 : index
    %255 = vector.load %arg17[%c0_112, %c0_113] : memref<128x256xbf16, #tpu.memory_space<vmem>>, vector<128x256xbf16>
    %cst_114 = arith.constant dense<0.000000e+00> : vector<2x256xf32>
    %256 = tpu.matmul %254, %255, %cst_114 {dimension_numbers = #tpu.dot_dimension_numbers<[1], [0], [0], [1], [0, 0, 1, 1], [], []>} : vector<2x128xbf16>, vector<128x256xbf16>, vector<2x256xf32> -> vector<2x256xf32>
    %c0_115 = arith.constant 0 : index
    %c0_116 = arith.constant 0 : index
    %257 = vector.load %arg18[%c0_115, %c0_116] : memref<1x256xf32, #tpu.memory_space<vmem>>, vector<1x256xf32>
    %258 = vector.broadcast %257 : vector<1x256xf32> to vector<2x256xf32>
    %259 = arith.addf %256, %258 : vector<2x256xf32>
    %cst_117 = arith.constant dense<0xFF800000> : vector<2xf32>
    %260 = vector.multi_reduction <maximumf>, %259, %cst_117 [1] : vector<2x256xf32> to vector<2xf32>
    %261 = vector.shape_cast %260 : vector<2xf32> to vector<2x1xf32>
    %262 = tpu.iota {dimensions = array<i32: 1>} : vector<2x256xi32>
    %263 = vector.broadcast %261 : vector<2x1xf32> to vector<2x256xf32>
    %264 = arith.cmpf oeq, %259, %263 : vector<2x256xf32>
    %c256_i32 = arith.constant 256 : i32
    %265 = vector.broadcast %c256_i32 : i32 to vector<2x256xi32>
    %266 = arith.select %264, %262, %265 : vector<2x256xi1>, vector<2x256xi32>
    %cst_118 = arith.constant dense<2147483647> : vector<2xi32>
    %267 = vector.multi_reduction <minsi>, %266, %cst_118 [1] : vector<2x256xi32> to vector<2xi32>
    %268 = vector.shape_cast %267 : vector<2xi32> to vector<2x1xi32>
    %c0_119 = arith.constant 0 : index
    %c0_120 = arith.constant 0 : index
    %c0_121 = arith.constant 0 : index
    %269 = vector.load %arg19[%c0_119, %c0_120, %c0_121] : memref<2x2x1xi32, #tpu.memory_space<vmem>>, vector<1x2x1xi32>
    %270 = vector.shape_cast %269 : vector<1x2x1xi32> to vector<2x1xi32>
    %271 = vector.shape_cast %268 : vector<2x1xi32> to vector<1x2x1xi32>
    tpu.vector_store %arg19[%c0_119, %c0_120, %c0_121], %271 {strides = array<i32>} : memref<2x2x1xi32, #tpu.memory_space<vmem>>, vector<1x2x1xi32>,
    %272 = tpu.iota {dimensions = array<i32: 1>} : vector<2x256xi32>
    %273 = vector.broadcast %268 : vector<2x1xi32> to vector<2x256xi32>
    %274 = arith.cmpi eq, %273, %272 : vector<2x256xi32>
    %275 = arith.extui %274 : vector<2x256xi1> to vector<2x256xi32>
    %276 = arith.sitofp %275 : vector<2x256xi32> to vector<2x256xf32>
    %277 = arith.truncf %276 : vector<2x256xf32> to vector<2x256xbf16>
    %c0_122 = arith.constant 0 : index
    %c0_123 = arith.constant 0 : index
    %278 = vector.load %arg2[%c0_122, %c0_123] : memref<256x128xbf16, #tpu.memory_space<vmem>>, vector<256x128xbf16>
    %cst_124 = arith.constant dense<0.000000e+00> : vector<2x128xf32>
    %279 = tpu.matmul %277, %278, %cst_124 {dimension_numbers = #tpu.dot_dimension_numbers<[1], [0], [0], [1], [0, 0, 1, 1], [], []>} : vector<2x256xbf16>, vector<256x128xbf16>, vector<2x128xf32> -> vector<2x128xf32>
    %cst_125 = arith.constant dense<0.000000e+00> : vector<2xf32>
    %280 = vector.multi_reduction <add>, %279, %cst_125 [1] : vector<2x128xf32> to vector<2xf32>
    %281 = vector.shape_cast %280 : vector<2xf32> to vector<2x1xf32>
    %cst_126 = arith.constant 1.280000e+02 : f32
    %282 = vector.broadcast %cst_126 : f32 to vector<2x1xf32>
    %283 = arith.divf %281, %282 : vector<2x1xf32>
    %284 = vector.broadcast %283 : vector<2x1xf32> to vector<2x128xf32>
    %285 = arith.subf %279, %284 : vector<2x128xf32>
    %286 = arith.mulf %285, %285 : vector<2x128xf32>
    %cst_127 = arith.constant dense<0.000000e+00> : vector<2xf32>
    %287 = vector.multi_reduction <add>, %286, %cst_127 [1] : vector<2x128xf32> to vector<2xf32>
    %288 = vector.shape_cast %287 : vector<2xf32> to vector<2x1xf32>
    %cst_128 = arith.constant 1.280000e+02 : f32
    %289 = vector.broadcast %cst_128 : f32 to vector<2x1xf32>
    %290 = arith.divf %288, %289 : vector<2x1xf32>
    %291 = vector.broadcast %283 : vector<2x1xf32> to vector<2x128xf32>
    %292 = arith.subf %279, %291 : vector<2x128xf32>
    %cst_129 = arith.constant 9.99999974E-6 : f32
    %293 = vector.broadcast %cst_129 : f32 to vector<2x1xf32>
    %294 = arith.addf %290, %293 : vector<2x1xf32>
    %295 = math.rsqrt %294 : vector<2x1xf32>
    %296 = vector.broadcast %295 : vector<2x1xf32> to vector<2x128xf32>
    %297 = arith.mulf %292, %296 : vector<2x128xf32>
    %c0_130 = arith.constant 0 : index
    %c0_131 = arith.constant 0 : index
    %298 = vector.load %arg3[%c0_130, %c0_131] : memref<1x128xf32, #tpu.memory_space<vmem>>, vector<1x128xf32>
    %299 = vector.broadcast %298 : vector<1x128xf32> to vector<2x128xf32>
    %300 = arith.mulf %297, %299 : vector<2x128xf32>
    %c0_132 = arith.constant 0 : index
    %c0_133 = arith.constant 0 : index
    %301 = vector.load %arg4[%c0_132, %c0_133] : memref<1x128xf32, #tpu.memory_space<vmem>>, vector<1x128xf32>
    %302 = vector.broadcast %301 : vector<1x128xf32> to vector<2x128xf32>
    %303 = arith.addf %300, %302 : vector<2x128xf32>
    %304 = arith.truncf %303 : vector<2x128xf32> to vector<2x128xbf16>
    %c0_134 = arith.constant 0 : index
    %c0_135 = arith.constant 0 : index
    %305 = vector.load %arg9[%c0_134, %c0_135] : memref<128x384xbf16, #tpu.memory_space<vmem>>, vector<128x384xbf16>
    %cst_136 = arith.constant dense<0.000000e+00> : vector<2x384xf32>
    %306 = tpu.matmul %304, %305, %cst_136 {dimension_numbers = #tpu.dot_dimension_numbers<[1], [0], [0], [1], [0, 0, 1, 1], [], []>} : vector<2x128xbf16>, vector<128x384xbf16>, vector<2x384xf32> -> vector<2x384xf32>
    %c0_137 = arith.constant 0 : index
    %c0_138 = arith.constant 0 : index
    %307 = vector.load %arg10[%c0_137, %c0_138] : memref<1x384xf32, #tpu.memory_space<vmem>>, vector<1x384xf32>
    %308 = vector.broadcast %307 : vector<1x384xf32> to vector<2x384xf32>
    %309 = arith.addf %306, %308 : vector<2x384xf32>
    %310 = vector.extract_strided_slice %309 {offsets = [0, 0], sizes = [2, 128], strides = [1, 1]} : vector<2x384xf32> to vector<2x128xf32>
    %311 = vector.extract_strided_slice %309 {offsets = [0, 128], sizes = [2, 128], strides = [1, 1]} : vector<2x384xf32> to vector<2x128xf32>
    %c16 = arith.constant 16 : index
    %c0_139 = arith.constant 0 : index
    %312 = vector.load %arg20[%c16, %c0_139] : memref<32x128xf32, #tpu.memory_space<vmem>>, vector<2x128xf32>
    tpu.vector_store %arg20[%c16, %c0_139], %311 {strides = array<i32>} : memref<32x128xf32, #tpu.memory_space<vmem>>, vector<2x128xf32>,
    %313 = vector.extract_strided_slice %309 {offsets = [0, 256], sizes = [2, 128], strides = [1, 1]} : vector<2x384xf32> to vector<2x128xf32>
    %c16_140 = arith.constant 16 : index
    %c0_141 = arith.constant 0 : index
    %314 = vector.load %arg21[%c16_140, %c0_141] : memref<32x128xf32, #tpu.memory_space<vmem>>, vector<2x128xf32>
    tpu.vector_store %arg21[%c16_140, %c0_141], %313 {strides = array<i32>} : memref<32x128xf32, #tpu.memory_space<vmem>>, vector<2x128xf32>,
    %c0_142 = arith.constant 0 : index
    %c0_143 = arith.constant 0 : index
    %315 = vector.load %arg20[%c0_142, %c0_143] : memref<32x128xf32, #tpu.memory_space<vmem>>, vector<32x128xf32>
    %c0_144 = arith.constant 0 : index
    %c0_145 = arith.constant 0 : index
    %316 = vector.load %arg21[%c0_144, %c0_145] : memref<32x128xf32, #tpu.memory_space<vmem>>, vector<32x128xf32>
    %c1 = arith.constant 1 : index
    %c0_146 = arith.constant 0 : index
    %c0_147 = arith.constant 0 : index
    %317 = vector.load %arg1[%c1, %c0_146, %c0_147] : memref<2x2x32xf32, #tpu.memory_space<vmem>>, vector<1x2x32xf32>
    %318 = vector.shape_cast %317 : vector<1x2x32xf32> to vector<2x32xf32>
    %cst_148 = arith.constant 0.000000e+00 : f32
    %319 = vector.broadcast %cst_148 : f32 to vector<2x128xf32>
    %320 = vector.extract_strided_slice %310 {offsets = [0, 0], sizes = [2, 32], strides = [1, 1]} : vector<2x128xf32> to vector<2x32xf32>
    %321 = vector.extract_strided_slice %315 {offsets = [0, 0], sizes = [32, 32], strides = [1, 1]} : vector<32x128xf32> to vector<32x32xf32>
    %322 = vector.extract_strided_slice %316 {offsets = [0, 0], sizes = [32, 32], strides = [1, 1]} : vector<32x128xf32> to vector<32x32xf32>
    %323 = tpu.transpose %321, [1, 0] : vector<32x32xf32> -> vector<32x32xf32>
    %cst_149 = arith.constant dense<0.000000e+00> : vector<2x32xf32>
    %324 = tpu.matmul %320, %323, %cst_149 {dimension_numbers = #tpu.dot_dimension_numbers<[1], [0], [0], [1], [0, 0, 1, 1], [], []>} : vector<2x32xf32>, vector<32x32xf32>, vector<2x32xf32> -> vector<2x32xf32>
    %cst_150 = arith.constant 0.176776692 : f32
    %325 = vector.broadcast %cst_150 : f32 to vector<2x32xf32>
    %326 = arith.mulf %324, %325 : vector<2x32xf32>
    %327 = arith.addf %326, %318 : vector<2x32xf32>
    %cst_151 = arith.constant dense<0xFF800000> : vector<2xf32>
    %328 = vector.multi_reduction <maximumf>, %327, %cst_151 [1] : vector<2x32xf32> to vector<2xf32>
    %329 = vector.shape_cast %328 : vector<2xf32> to vector<2x1xf32>
    %330 = vector.broadcast %329 : vector<2x1xf32> to vector<2x32xf32>
    %331 = arith.subf %327, %330 : vector<2x32xf32>
    %332 = math.exp %331 : vector<2x32xf32>
    %cst_152 = arith.constant dense<0.000000e+00> : vector<2xf32>
    %333 = vector.multi_reduction <add>, %332, %cst_152 [1] : vector<2x32xf32> to vector<2xf32>
    %334 = vector.shape_cast %333 : vector<2xf32> to vector<2x1xf32>
    %cst_153 = arith.constant dense<0.000000e+00> : vector<2x32xf32>
    %335 = tpu.matmul %332, %322, %cst_153 {dimension_numbers = #tpu.dot_dimension_numbers<[1], [0], [0], [1], [0, 0, 1, 1], [], []>} : vector<2x32xf32>, vector<32x32xf32>, vector<2x32xf32> -> vector<2x32xf32>
    %336 = tpu.reciprocal %334 {approx = true} : vector<2x1xf32> -> vector<2x1xf32>
    %337 = vector.broadcast %336 : vector<2x1xf32> to vector<2x32xf32>
    %338 = arith.mulf %335, %337 : vector<2x32xf32>
    %339 = arith.truncf %338 : vector<2x32xf32> to vector<2x32xbf16>
    %c0_154 = arith.constant 0 : index
    %c0_155 = arith.constant 0 : index
    %340 = vector.load %arg11[%c0_154, %c0_155] : memref<128x128xbf16, #tpu.memory_space<vmem>>, vector<32x128xbf16>
    %cst_156 = arith.constant dense<0.000000e+00> : vector<2x128xf32>
    %341 = tpu.matmul %339, %340, %cst_156 {dimension_numbers = #tpu.dot_dimension_numbers<[1], [0], [0], [1], [0, 0, 1, 1], [], []>} : vector<2x32xbf16>, vector<32x128xbf16>, vector<2x128xf32> -> vector<2x128xf32>
    %342 = arith.addf %319, %341 : vector<2x128xf32>
    %343 = vector.extract_strided_slice %310 {offsets = [0, 32], sizes = [2, 32], strides = [1, 1]} : vector<2x128xf32> to vector<2x32xf32>
    %344 = vector.extract_strided_slice %315 {offsets = [0, 32], sizes = [32, 32], strides = [1, 1]} : vector<32x128xf32> to vector<32x32xf32>
    %345 = vector.extract_strided_slice %316 {offsets = [0, 32], sizes = [32, 32], strides = [1, 1]} : vector<32x128xf32> to vector<32x32xf32>
    %346 = tpu.transpose %344, [1, 0] : vector<32x32xf32> -> vector<32x32xf32>
    %cst_157 = arith.constant dense<0.000000e+00> : vector<2x32xf32>
    %347 = tpu.matmul %343, %346, %cst_157 {dimension_numbers = #tpu.dot_dimension_numbers<[1], [0], [0], [1], [0, 0, 1, 1], [], []>} : vector<2x32xf32>, vector<32x32xf32>, vector<2x32xf32> -> vector<2x32xf32>
    %cst_158 = arith.constant 0.176776692 : f32
    %348 = vector.broadcast %cst_158 : f32 to vector<2x32xf32>
    %349 = arith.mulf %347, %348 : vector<2x32xf32>
    %350 = arith.addf %349, %318 : vector<2x32xf32>
    %cst_159 = arith.constant dense<0xFF800000> : vector<2xf32>
    %351 = vector.multi_reduction <maximumf>, %350, %cst_159 [1] : vector<2x32xf32> to vector<2xf32>
    %352 = vector.shape_cast %351 : vector<2xf32> to vector<2x1xf32>
    %353 = vector.broadcast %352 : vector<2x1xf32> to vector<2x32xf32>
    %354 = arith.subf %350, %353 : vector<2x32xf32>
    %355 = math.exp %354 : vector<2x32xf32>
    %cst_160 = arith.constant dense<0.000000e+00> : vector<2xf32>
    %356 = vector.multi_reduction <add>, %355, %cst_160 [1] : vector<2x32xf32> to vector<2xf32>
    %357 = vector.shape_cast %356 : vector<2xf32> to vector<2x1xf32>
    %cst_161 = arith.constant dense<0.000000e+00> : vector<2x32xf32>
    %358 = tpu.matmul %355, %345, %cst_161 {dimension_numbers = #tpu.dot_dimension_numbers<[1], [0], [0], [1], [0, 0, 1, 1], [], []>} : vector<2x32xf32>, vector<32x32xf32>, vector<2x32xf32> -> vector<2x32xf32>
    %359 = tpu.reciprocal %357 {approx = true} : vector<2x1xf32> -> vector<2x1xf32>
    %360 = vector.broadcast %359 : vector<2x1xf32> to vector<2x32xf32>
    %361 = arith.mulf %358, %360 : vector<2x32xf32>
    %362 = arith.truncf %361 : vector<2x32xf32> to vector<2x32xbf16>
    %c32_162 = arith.constant 32 : index
    %c0_163 = arith.constant 0 : index
    %363 = vector.load %arg11[%c32_162, %c0_163] : memref<128x128xbf16, #tpu.memory_space<vmem>>, vector<32x128xbf16>
    %cst_164 = arith.constant dense<0.000000e+00> : vector<2x128xf32>
    %364 = tpu.matmul %362, %363, %cst_164 {dimension_numbers = #tpu.dot_dimension_numbers<[1], [0], [0], [1], [0, 0, 1, 1], [], []>} : vector<2x32xbf16>, vector<32x128xbf16>, vector<2x128xf32> -> vector<2x128xf32>
    %365 = arith.addf %342, %364 : vector<2x128xf32>
    %366 = vector.extract_strided_slice %310 {offsets = [0, 64], sizes = [2, 32], strides = [1, 1]} : vector<2x128xf32> to vector<2x32xf32>
    %367 = vector.extract_strided_slice %315 {offsets = [0, 64], sizes = [32, 32], strides = [1, 1]} : vector<32x128xf32> to vector<32x32xf32>
    %368 = vector.extract_strided_slice %316 {offsets = [0, 64], sizes = [32, 32], strides = [1, 1]} : vector<32x128xf32> to vector<32x32xf32>
    %369 = tpu.transpose %367, [1, 0] : vector<32x32xf32> -> vector<32x32xf32>
    %cst_165 = arith.constant dense<0.000000e+00> : vector<2x32xf32>
    %370 = tpu.matmul %366, %369, %cst_165 {dimension_numbers = #tpu.dot_dimension_numbers<[1], [0], [0], [1], [0, 0, 1, 1], [], []>} : vector<2x32xf32>, vector<32x32xf32>, vector<2x32xf32> -> vector<2x32xf32>
    %cst_166 = arith.constant 0.176776692 : f32
    %371 = vector.broadcast %cst_166 : f32 to vector<2x32xf32>
    %372 = arith.mulf %370, %371 : vector<2x32xf32>
    %373 = arith.addf %372, %318 : vector<2x32xf32>
    %cst_167 = arith.constant dense<0xFF800000> : vector<2xf32>
    %374 = vector.multi_reduction <maximumf>, %373, %cst_167 [1] : vector<2x32xf32> to vector<2xf32>
    %375 = vector.shape_cast %374 : vector<2xf32> to vector<2x1xf32>
    %376 = vector.broadcast %375 : vector<2x1xf32> to vector<2x32xf32>
    %377 = arith.subf %373, %376 : vector<2x32xf32>
    %378 = math.exp %377 : vector<2x32xf32>
    %cst_168 = arith.constant dense<0.000000e+00> : vector<2xf32>
    %379 = vector.multi_reduction <add>, %378, %cst_168 [1] : vector<2x32xf32> to vector<2xf32>
    %380 = vector.shape_cast %379 : vector<2xf32> to vector<2x1xf32>
    %cst_169 = arith.constant dense<0.000000e+00> : vector<2x32xf32>
    %381 = tpu.matmul %378, %368, %cst_169 {dimension_numbers = #tpu.dot_dimension_numbers<[1], [0], [0], [1], [0, 0, 1, 1], [], []>} : vector<2x32xf32>, vector<32x32xf32>, vector<2x32xf32> -> vector<2x32xf32>
    %382 = tpu.reciprocal %380 {approx = true} : vector<2x1xf32> -> vector<2x1xf32>
    %383 = vector.broadcast %382 : vector<2x1xf32> to vector<2x32xf32>
    %384 = arith.mulf %381, %383 : vector<2x32xf32>
    %385 = arith.truncf %384 : vector<2x32xf32> to vector<2x32xbf16>
    %c64_170 = arith.constant 64 : index
    %c0_171 = arith.constant 0 : index
    %386 = vector.load %arg11[%c64_170, %c0_171] : memref<128x128xbf16, #tpu.memory_space<vmem>>, vector<32x128xbf16>
    %cst_172 = arith.constant dense<0.000000e+00> : vector<2x128xf32>
    %387 = tpu.matmul %385, %386, %cst_172 {dimension_numbers = #tpu.dot_dimension_numbers<[1], [0], [0], [1], [0, 0, 1, 1], [], []>} : vector<2x32xbf16>, vector<32x128xbf16>, vector<2x128xf32> -> vector<2x128xf32>
    %388 = arith.addf %365, %387 : vector<2x128xf32>
    %389 = vector.extract_strided_slice %310 {offsets = [0, 96], sizes = [2, 32], strides = [1, 1]} : vector<2x128xf32> to vector<2x32xf32>
    %390 = vector.extract_strided_slice %315 {offsets = [0, 96], sizes = [32, 32], strides = [1, 1]} : vector<32x128xf32> to vector<32x32xf32>
    %391 = vector.extract_strided_slice %316 {offsets = [0, 96], sizes = [32, 32], strides = [1, 1]} : vector<32x128xf32> to vector<32x32xf32>
    %392 = tpu.transpose %390, [1, 0] : vector<32x32xf32> -> vector<32x32xf32>
    %cst_173 = arith.constant dense<0.000000e+00> : vector<2x32xf32>
    %393 = tpu.matmul %389, %392, %cst_173 {dimension_numbers = #tpu.dot_dimension_numbers<[1], [0], [0], [1], [0, 0, 1, 1], [], []>} : vector<2x32xf32>, vector<32x32xf32>, vector<2x32xf32> -> vector<2x32xf32>
    %cst_174 = arith.constant 0.176776692 : f32
    %394 = vector.broadcast %cst_174 : f32 to vector<2x32xf32>
    %395 = arith.mulf %393, %394 : vector<2x32xf32>
    %396 = arith.addf %395, %318 : vector<2x32xf32>
    %cst_175 = arith.constant dense<0xFF800000> : vector<2xf32>
    %397 = vector.multi_reduction <maximumf>, %396, %cst_175 [1] : vector<2x32xf32> to vector<2xf32>
    %398 = vector.shape_cast %397 : vector<2xf32> to vector<2x1xf32>
    %399 = vector.broadcast %398 : vector<2x1xf32> to vector<2x32xf32>
    %400 = arith.subf %396, %399 : vector<2x32xf32>
    %401 = math.exp %400 : vector<2x32xf32>
    %cst_176 = arith.constant dense<0.000000e+00> : vector<2xf32>
    %402 = vector.multi_reduction <add>, %401, %cst_176 [1] : vector<2x32xf32> to vector<2xf32>
    %403 = vector.shape_cast %402 : vector<2xf32> to vector<2x1xf32>
    %cst_177 = arith.constant dense<0.000000e+00> : vector<2x32xf32>
    %404 = tpu.matmul %401, %391, %cst_177 {dimension_numbers = #tpu.dot_dimension_numbers<[1], [0], [0], [1], [0, 0, 1, 1], [], []>} : vector<2x32xf32>, vector<32x32xf32>, vector<2x32xf32> -> vector<2x32xf32>
    %405 = tpu.reciprocal %403 {approx = true} : vector<2x1xf32> -> vector<2x1xf32>
    %406 = vector.broadcast %405 : vector<2x1xf32> to vector<2x32xf32>
    %407 = arith.mulf %404, %406 : vector<2x32xf32>
    %408 = arith.truncf %407 : vector<2x32xf32> to vector<2x32xbf16>
    %c96_178 = arith.constant 96 : index
    %c0_179 = arith.constant 0 : index
    %409 = vector.load %arg11[%c96_178, %c0_179] : memref<128x128xbf16, #tpu.memory_space<vmem>>, vector<32x128xbf16>
    %cst_180 = arith.constant dense<0.000000e+00> : vector<2x128xf32>
    %410 = tpu.matmul %408, %409, %cst_180 {dimension_numbers = #tpu.dot_dimension_numbers<[1], [0], [0], [1], [0, 0, 1, 1], [], []>} : vector<2x32xbf16>, vector<32x128xbf16>, vector<2x128xf32> -> vector<2x128xf32>
    %411 = arith.addf %388, %410 : vector<2x128xf32>
    %c0_181 = arith.constant 0 : index
    %c0_182 = arith.constant 0 : index
    %412 = vector.load %arg12[%c0_181, %c0_182] : memref<1x128xf32, #tpu.memory_space<vmem>>, vector<1x128xf32>
    %413 = vector.broadcast %412 : vector<1x128xf32> to vector<2x128xf32>
    %414 = arith.addf %411, %413 : vector<2x128xf32>
    %cst_183 = arith.constant dense<0.000000e+00> : vector<2xf32>
    %415 = vector.multi_reduction <add>, %279, %cst_183 [1] : vector<2x128xf32> to vector<2xf32>
    %416 = vector.shape_cast %415 : vector<2xf32> to vector<2x1xf32>
    %cst_184 = arith.constant 1.280000e+02 : f32
    %417 = vector.broadcast %cst_184 : f32 to vector<2x1xf32>
    %418 = arith.divf %416, %417 : vector<2x1xf32>
    %419 = vector.broadcast %418 : vector<2x1xf32> to vector<2x128xf32>
    %420 = arith.subf %279, %419 : vector<2x128xf32>
    %421 = arith.mulf %420, %420 : vector<2x128xf32>
    %cst_185 = arith.constant dense<0.000000e+00> : vector<2xf32>
    %422 = vector.multi_reduction <add>, %421, %cst_185 [1] : vector<2x128xf32> to vector<2xf32>
    %423 = vector.shape_cast %422 : vector<2xf32> to vector<2x1xf32>
    %cst_186 = arith.constant 1.280000e+02 : f32
    %424 = vector.broadcast %cst_186 : f32 to vector<2x1xf32>
    %425 = arith.divf %423, %424 : vector<2x1xf32>
    %426 = vector.broadcast %418 : vector<2x1xf32> to vector<2x128xf32>
    %427 = arith.subf %279, %426 : vector<2x128xf32>
    %cst_187 = arith.constant 9.99999974E-6 : f32
    %428 = vector.broadcast %cst_187 : f32 to vector<2x1xf32>
    %429 = arith.addf %425, %428 : vector<2x1xf32>
    %430 = math.rsqrt %429 : vector<2x1xf32>
    %431 = vector.broadcast %430 : vector<2x1xf32> to vector<2x128xf32>
    %432 = arith.mulf %427, %431 : vector<2x128xf32>
    %c0_188 = arith.constant 0 : index
    %c0_189 = arith.constant 0 : index
    %433 = vector.load %arg5[%c0_188, %c0_189] : memref<1x128xf32, #tpu.memory_space<vmem>>, vector<1x128xf32>
    %434 = vector.broadcast %433 : vector<1x128xf32> to vector<2x128xf32>
    %435 = arith.mulf %432, %434 : vector<2x128xf32>
    %c0_190 = arith.constant 0 : index
    %c0_191 = arith.constant 0 : index
    %436 = vector.load %arg6[%c0_190, %c0_191] : memref<1x128xf32, #tpu.memory_space<vmem>>, vector<1x128xf32>
    %437 = vector.broadcast %436 : vector<1x128xf32> to vector<2x128xf32>
    %438 = arith.addf %435, %437 : vector<2x128xf32>
    %439 = arith.truncf %438 : vector<2x128xf32> to vector<2x128xbf16>
    %c0_192 = arith.constant 0 : index
    %c0_193 = arith.constant 0 : index
    %440 = vector.load %arg13[%c0_192, %c0_193] : memref<128x512xbf16, #tpu.memory_space<vmem>>, vector<128x512xbf16>
    %cst_194 = arith.constant dense<0.000000e+00> : vector<2x512xf32>
    %441 = tpu.matmul %439, %440, %cst_194 {dimension_numbers = #tpu.dot_dimension_numbers<[1], [0], [0], [1], [0, 0, 1, 1], [], []>} : vector<2x128xbf16>, vector<128x512xbf16>, vector<2x512xf32> -> vector<2x512xf32>
    %c0_195 = arith.constant 0 : index
    %c0_196 = arith.constant 0 : index
    %442 = vector.load %arg14[%c0_195, %c0_196] : memref<1x512xf32, #tpu.memory_space<vmem>>, vector<1x512xf32>
    %443 = vector.broadcast %442 : vector<1x512xf32> to vector<2x512xf32>
    %444 = arith.addf %441, %443 : vector<2x512xf32>
    %445 = arith.mulf %444, %444 : vector<2x512xf32>
    %446 = arith.mulf %444, %445 : vector<2x512xf32>
    %cst_197 = arith.constant 4.471500e-02 : f32
    %447 = vector.broadcast %cst_197 : f32 to vector<2x512xf32>
    %448 = arith.mulf %447, %446 : vector<2x512xf32>
    %449 = arith.addf %444, %448 : vector<2x512xf32>
    %cst_198 = arith.constant 0.797884583 : f32
    %450 = vector.broadcast %cst_198 : f32 to vector<2x512xf32>
    %451 = arith.mulf %450, %449 : vector<2x512xf32>
    %452 = math.tanh %451 : vector<2x512xf32>
    %cst_199 = arith.constant 1.000000e+00 : f32
    %453 = vector.broadcast %cst_199 : f32 to vector<2x512xf32>
    %454 = arith.addf %453, %452 : vector<2x512xf32>
    %cst_200 = arith.constant 5.000000e-01 : f32
    %455 = vector.broadcast %cst_200 : f32 to vector<2x512xf32>
    %456 = arith.mulf %455, %454 : vector<2x512xf32>
    %457 = arith.mulf %444, %456 : vector<2x512xf32>
    %458 = arith.truncf %457 : vector<2x512xf32> to vector<2x512xbf16>
    %c0_201 = arith.constant 0 : index
    %c0_202 = arith.constant 0 : index
    %459 = vector.load %arg15[%c0_201, %c0_202] : memref<512x128xbf16, #tpu.memory_space<vmem>>, vector<512x128xbf16>
    %cst_203 = arith.constant dense<0.000000e+00> : vector<2x128xf32>
    %460 = tpu.matmul %458, %459, %cst_203 {dimension_numbers = #tpu.dot_dimension_numbers<[1], [0], [0], [1], [0, 0, 1, 1], [], []>} : vector<2x512xbf16>, vector<512x128xbf16>, vector<2x128xf32> -> vector<2x128xf32>
    %c0_204 = arith.constant 0 : index
    %c0_205 = arith.constant 0 : index
    %461 = vector.load %arg16[%c0_204, %c0_205] : memref<1x128xf32, #tpu.memory_space<vmem>>, vector<1x128xf32>
    %462 = vector.broadcast %461 : vector<1x128xf32> to vector<2x128xf32>
    %463 = arith.addf %460, %462 : vector<2x128xf32>
    %464 = arith.addf %279, %414 : vector<2x128xf32>
    %465 = arith.addf %464, %463 : vector<2x128xf32>
    %cst_206 = arith.constant dense<0.000000e+00> : vector<2xf32>
    %466 = vector.multi_reduction <add>, %465, %cst_206 [1] : vector<2x128xf32> to vector<2xf32>
    %467 = vector.shape_cast %466 : vector<2xf32> to vector<2x1xf32>
    %cst_207 = arith.constant 1.280000e+02 : f32
    %468 = vector.broadcast %cst_207 : f32 to vector<2x1xf32>
    %469 = arith.divf %467, %468 : vector<2x1xf32>
    %470 = vector.broadcast %469 : vector<2x1xf32> to vector<2x128xf32>
    %471 = arith.subf %465, %470 : vector<2x128xf32>
    %472 = arith.mulf %471, %471 : vector<2x128xf32>
    %cst_208 = arith.constant dense<0.000000e+00> : vector<2xf32>
    %473 = vector.multi_reduction <add>, %472, %cst_208 [1] : vector<2x128xf32> to vector<2xf32>
    %474 = vector.shape_cast %473 : vector<2xf32> to vector<2x1xf32>
    %cst_209 = arith.constant 1.280000e+02 : f32
    %475 = vector.broadcast %cst_209 : f32 to vector<2x1xf32>
    %476 = arith.divf %474, %475 : vector<2x1xf32>
    %477 = vector.broadcast %469 : vector<2x1xf32> to vector<2x128xf32>
    %478 = arith.subf %465, %477 : vector<2x128xf32>
    %cst_210 = arith.constant 9.99999974E-6 : f32
    %479 = vector.broadcast %cst_210 : f32 to vector<2x1xf32>
    %480 = arith.addf %476, %479 : vector<2x1xf32>
    %481 = math.rsqrt %480 : vector<2x1xf32>
    %482 = vector.broadcast %481 : vector<2x1xf32> to vector<2x128xf32>
    %483 = arith.mulf %478, %482 : vector<2x128xf32>
    %c0_211 = arith.constant 0 : index
    %c0_212 = arith.constant 0 : index
    %484 = vector.load %arg7[%c0_211, %c0_212] : memref<1x128xf32, #tpu.memory_space<vmem>>, vector<1x128xf32>
    %485 = vector.broadcast %484 : vector<1x128xf32> to vector<2x128xf32>
    %486 = arith.mulf %483, %485 : vector<2x128xf32>
    %c0_213 = arith.constant 0 : index
    %c0_214 = arith.constant 0 : index
    %487 = vector.load %arg8[%c0_213, %c0_214] : memref<1x128xf32, #tpu.memory_space<vmem>>, vector<1x128xf32>
    %488 = vector.broadcast %487 : vector<1x128xf32> to vector<2x128xf32>
    %489 = arith.addf %486, %488 : vector<2x128xf32>
    %490 = arith.truncf %489 : vector<2x128xf32> to vector<2x128xbf16>
    %c0_215 = arith.constant 0 : index
    %c0_216 = arith.constant 0 : index
    %491 = vector.load %arg17[%c0_215, %c0_216] : memref<128x256xbf16, #tpu.memory_space<vmem>>, vector<128x256xbf16>
    %cst_217 = arith.constant dense<0.000000e+00> : vector<2x256xf32>
    %492 = tpu.matmul %490, %491, %cst_217 {dimension_numbers = #tpu.dot_dimension_numbers<[1], [0], [0], [1], [0, 0, 1, 1], [], []>} : vector<2x128xbf16>, vector<128x256xbf16>, vector<2x256xf32> -> vector<2x256xf32>
    %c0_218 = arith.constant 0 : index
    %c0_219 = arith.constant 0 : index
    %493 = vector.load %arg18[%c0_218, %c0_219] : memref<1x256xf32, #tpu.memory_space<vmem>>, vector<1x256xf32>
    %494 = vector.broadcast %493 : vector<1x256xf32> to vector<2x256xf32>
    %495 = arith.addf %492, %494 : vector<2x256xf32>
    %cst_220 = arith.constant dense<0xFF800000> : vector<2xf32>
    %496 = vector.multi_reduction <maximumf>, %495, %cst_220 [1] : vector<2x256xf32> to vector<2xf32>
    %497 = vector.shape_cast %496 : vector<2xf32> to vector<2x1xf32>
    %498 = tpu.iota {dimensions = array<i32: 1>} : vector<2x256xi32>
    %499 = vector.broadcast %497 : vector<2x1xf32> to vector<2x256xf32>
    %500 = arith.cmpf oeq, %495, %499 : vector<2x256xf32>
    %c256_i32_221 = arith.constant 256 : i32
    %501 = vector.broadcast %c256_i32_221 : i32 to vector<2x256xi32>
    %502 = arith.select %500, %498, %501 : vector<2x256xi1>, vector<2x256xi32>
    %cst_222 = arith.constant dense<2147483647> : vector<2xi32>
    %503 = vector.multi_reduction <minsi>, %502, %cst_222 [1] : vector<2x256xi32> to vector<2xi32>
    %504 = vector.shape_cast %503 : vector<2xi32> to vector<2x1xi32>
    %c1_223 = arith.constant 1 : index
    %c0_224 = arith.constant 0 : index
    %c0_225 = arith.constant 0 : index
    %505 = vector.load %arg19[%c1_223, %c0_224, %c0_225] : memref<2x2x1xi32, #tpu.memory_space<vmem>>, vector<1x2x1xi32>
    %506 = vector.shape_cast %505 : vector<1x2x1xi32> to vector<2x1xi32>
    %507 = vector.shape_cast %504 : vector<2x1xi32> to vector<1x2x1xi32>
    tpu.vector_store %arg19[%c1_223, %c0_224, %c0_225], %507 {strides = array<i32>} : memref<2x2x1xi32, #tpu.memory_space<vmem>>, vector<1x2x1xi32>,
    return
  }
}

</mosaic_0001>

<bundles_post_ra>
// kernel: _generate.1
= control target key start
LH: loop header
LB: loop body
LE: loop exit
PB: predicated region body
PF: predicated region fallthrough
CT: control target
= control target key end

     0   :  { %s5938_s0 = inlined_call_operand.vmem [shape: s32[16,1], index: 0, kind: input, shape index: {}]   ;;  %s5939_s1 = inlined_call_operand.vmem [shape: f32[2,2,32], index: 1, kind: input, shape index: {}]   ;;  %s5940_s2 = inlined_call_operand.hbm [shape: bf16[256,128], index: 2, kind: input, shape index: {}]   ;;  %s5941_s3 = inlined_call_operand.vmem [shape: f32[1,128], index: 3, kind: input, shape index: {}]   ;;  %s5942_s4 = inlined_call_operand.vmem [shape: f32[1,128], index: 4, kind: input, shape index: {}]   ;;  %s5943_s5 = inlined_call_operand.vmem [shape: f32[1,128], index: 5, kind: input, shape index: {}]   ;;  %s5944_s6 = inlined_call_operand.vmem [shape: f32[1,128], index: 6, kind: input, shape index: {}]   ;;  %s5945_s7 = inlined_call_operand.vmem [shape: f32[1,128], index: 7, kind: input, shape index: {}]   ;;  %s5946_s8 = inlined_call_operand.vmem [shape: f32[1,128], index: 8, kind: input, shape index: {}]   ;;  %s5947_s9 = inlined_call_operand.hbm [shape: bf16[128,384], index: 9, kind: input, shape index: {}]   ;;  %s5948_s10 = inlined_call_operand.vmem [shape: f32[1,384], index: 10, kind: input, shape index: {}]   ;;  %s5949_s11 = inlined_call_operand.hbm [shape: bf16[128,128], index: 11, kind: input, shape index: {}]   ;;  %s5950_s12 = inlined_call_operand.vmem [shape: f32[1,128], index: 12, kind: input, shape index: {}]   ;;  %s5951_s13 = inlined_call_operand.hbm [shape: bf16[128,512], index: 13, kind: input, shape index: {}]   ;;  %s5952_s14 = inlined_call_operand.vmem [shape: f32[1,512], index: 14, kind: input, shape index: {}]   ;;  %s5953_s15 = inlined_call_operand.hbm [shape: bf16[512,128], index: 15, kind: input, shape index: {}]   ;;  %s5954_s16 = inlined_call_operand.vmem [shape: f32[1,128], index: 16, kind: input, shape index: {}]   ;;  %s5955_s17 = inlined_call_operand.hbm [shape: bf16[128,256], index: 17, kind: input, shape index: {}]   ;;  %s5956_s18 = inlined_call_operand.vmem [shape: f32[1,256], index: 18, kind: input, shape index: {}]   ;;  %s5957_s19 = inlined_call_operand.vmem [shape: s32[2,2,1], index: 19, kind: output, shape index: {}]  }
   0x1   :  { %5962 = sst [smem:[#allocation18_spill]] %s5938_s0 }
   0x2   :  { %5963 = sst [smem:[#allocation19_spill]] %s5939_s1 }
   0x3   :  { %5964 = sst [smem:[#allocation20_spill]] %s5940_s2 }
   0x4   :  { %5965 = sst [smem:[#allocation21_spill]] %s5941_s3 }
   0x5   :  { %5966 = sst [smem:[#allocation22_spill]] %s5957_s19 }
   0x6   :  { %24 = vsyncpa [#allocation5], 0 }
   0x7   :  { %25 = vsyncpa [#allocation7], 0 }
   0x8   :  { %26 = vsyncpa [#allocation10], 0  ;;  %s61_s20 = sshll.u32 %s5947_s9, 4  ;;  %s62_s20 = int_to_ptr.hbm [resolvable:$true] %s61_s20 }
   0x9   :  { %27 = vsyncpa [#allocation13], 0  ;;  %s5376_s21 = smov [#allocation6]   ;;  %s91_s23 = sshll.u32 %s5951_s13, 4  ;;  %s92_s23 = int_to_ptr.hbm [resolvable:$true] %s91_s23 }
   0xa   :  { %s63_s1 = sshll.u32 %s5376_s21, 4  ;;  %s5377_s24 = smov 192   ;;  %s64_s1 = int_to_ptr.vmem [resolvable:$true] %s63_s1 }
   0xb   :  { %s5378_s25 = smov 12   ;;  %s5379_s3 = smov [#allocation9]  }
   0xc   :  { %69 = dma.hbm_to_vmem [thread:$0]  %s62_s20, 3072, %s64_s1, [#allocation7], %s5377_s24, %s5377_s24, %s5378_s25  }
   0xd   :  { %s93_s26 = sshll.u32 %s5379_s3, 4  ;;  %s5380_s27 = smov 256   ;;  %s94_s26 = int_to_ptr.vmem [resolvable:$true] %s93_s26 }
   0xe   :  { %s5381_s28 = smov 16   ;;  %s5967_s0 = sld [smem:[#allocation20_spill]] }
   0xf   :  { %99 = dma.hbm_to_vmem [thread:$0]  %s92_s23, 4096, %s94_s26, [#allocation10], %s5380_s27, %s5380_s27, %s5381_s28  }
  0x10   :  { %s5382_s21 = smov [#allocation4]   ;;  %s76_s2 = sshll.u32 %s5949_s11, 4  ;;  %s77_s2 = int_to_ptr.hbm [resolvable:$true] %s76_s2 }
  0x11   :  { %s38_s19 = sshll.u32 %s5382_s21, 4  ;;  %s5383_s20 = smov 64   ;;  %s39_s19 = int_to_ptr.vmem [resolvable:$true] %s38_s19 }
  0x12   :  { %s5384_s1 = smov 4   ;;  %s5385_s24 = smov [#allocation8]  }
  0x13   :  { %s78_s23 = sshll.u32 %s5385_s24, 4  ;;  %s106_s26 = sshll.u32 %s5953_s15, 4  ;;  %s79_s23 = int_to_ptr.vmem [resolvable:$true] %s78_s23  ;;  %s107_s26 = int_to_ptr.hbm [resolvable:$true] %s106_s26 }
  0x14   :  { %s36_s30 = sshll.u32 %s5967_s0, 4  ;;  %s121_s11 = sshll.u32 %s5955_s17, 4  ;;  %s37_s30 = int_to_ptr.hbm [resolvable:$true] %s36_s30  ;;  %s122_s11 = int_to_ptr.hbm [resolvable:$true] %s121_s11 }
  0x15   :  { %44 = dma.hbm_to_vmem [thread:$0]  %s37_s30, 2048, %s39_s19, [#allocation5], %s5383_s20, %s5383_s20, %s5384_s1  }
  0x16   :  { %84 = dma.hbm_to_vmem [thread:$0]  %s77_s2, 1024, %s79_s23, [#allocation7], %s5383_s20, %s5383_s20, %s5384_s1  }
  0x17   :  { %s5386_s9 = smov [#allocation11]   ;;  %s5387_s19 = smov [#allocation12]  }
  0x18   :  { %s108_s29 = sshll.u32 %s5386_s9, 4  ;;  %s123_s0 = sshll.u32 %s5387_s19, 4  ;;  %s109_s29 = int_to_ptr.vmem [resolvable:$true] %s108_s29  ;;  %s124_s0 = int_to_ptr.vmem [resolvable:$true] %s123_s0 }
  0x19   :  { %114 = dma.hbm_to_vmem [thread:$0]  %s107_s26, 4096, %s109_s29, [#allocation10], %s5383_s20, %s5383_s20, %s5384_s1  }
  0x1a   :  { %s5388_s15 = smov 128   ;;  %s5389_s30 = smov 8  }
  0x1b   :  { %129 = dma.hbm_to_vmem [thread:$0]  %s122_s11, 2048, %s124_s0, [#allocation13], %s5388_s15, %s5388_s15, %s5389_s30  }
  0x1c   :  { %5368 = dma.done.wait [#allocation5], 2048  }
  0x1d   :  { %5369 = vsyncadd [#allocation5], 4294965248 }
  0x1e   :  { %5370 = dma.done.wait [#allocation7], 4096  }
  0x1f   :  { %5371 = vsyncadd [#allocation7], 4294963200 }
  0x20   :  { %5372 = dma.done.wait [#allocation10], 8192  }
  0x21   :  { %5373 = vsyncadd [#allocation10], 4294959104 }
  0x22   :  { %5374 = dma.done.wait [#allocation13], 2048  }
  0x23   :  { %5375 = vsyncadd [#allocation13], 4294965248  ;;  %v5390_v0 = vmov 0   ;;  %s5968_s22 = sld [smem:[#allocation18_spill]]  ;;  %v4813_v2 = vld [vmem:[#allocation4 + $0x38] sm:$0xff]  ;;  %v4812_v4 = vld [vmem:[#allocation4 + $0x30] sm:$0xff]  ;;  %v167_v19 = vlaneseq }
  0x24   :  { %5082 = vset.pattern.permute.xlu0 %v5390_v0  ;;  %v4821_v3 = vld [vmem:[#allocation4 + $0x78] sm:$0xff]  ;;  %318 = vmatpush.bf16.msra.mxu0 %v4813_v2  ;;  %v4820_v5 = vld [vmem:[#allocation4 + $0x70] sm:$0xff]  ;;  %v4811_v7 = vld [vmem:[#allocation4 + $0x28] sm:$0xff]  ;;  %v5391_v24 = vmov 1.0|1.0   ;;  %vm572_vm6 = vcmask 1047558  }
  0x25   :  { %332 = vmatpush.bf16.msra.mxu1 %v4821_v3  ;;  %v4819_v8 = vld [vmem:[#allocation4 + $0x68] sm:$0xff]  ;;  %v4810_v9 = vld [vmem:[#allocation4 + $0x20] sm:$0xff]  ;;  %v4809_v11 = vld [vmem:[#allocation4 + $0x18] sm:$0xff]  ;;  %v5526_v21 = vand.u32 127, %v167_v19  ;;  %v5392_v32 = vmov 128.0   ;;  %s5969_s23 = sld [smem:[#allocation21_spill]] }
  0x26   :  { %v4818_v10 = vld [vmem:[#allocation4 + $0x60] sm:$0xff]  ;;  %v4817_v12 = vld [vmem:[#allocation4 + $0x58] sm:$0xff]  ;;  %v4808_v13 = vld [vmem:[#allocation4 + $0x10] sm:$0xff]  ;;  %5161 = vrcp.f32 %v5392_v32  ;;  %s5394_s25 = smov 96   ;;  %s5395_s1 = smov 32  }
  0x27   :  { %v4816_v14 = vld [vmem:[#allocation4 + $0x50] sm:$0xff]  ;;  %v4807_v15 = vld [vmem:[#allocation4 + $0x8] sm:$0xff]  ;;  %v4806_v17 = vld [vmem:[#allocation4] sm:$0xff]  ;;  %v5529_v22 = vadd.s32 128, %v5526_v21  ;;  %s5970_s26 = sld [smem:[#allocation19_spill]] }
  0x28   :  { %319 = vmatpush.bf16.msra.mxu0 %v4812_v4  ;;  %v4815_v16 = vld [vmem:[#allocation4 + $0x48] sm:$0xff]  ;;  %v4814_v18 = vld [vmem:[#allocation4 + $0x40] sm:$0xff]  ;;  %v4845_v36 = vld [vmem:[#allocation6 + $0xb0] sm:$0xf0]  ;;  %s5971_s13 = sld [smem:[#allocation22_spill]] }
  0x29   :  { %v165_v1 = vld [vmem:[%s5968_s22] sm:$0xff]  ;;  %v166_v6 = vld [vmem:[%s5968_s22 + $0x8] sm:$0xff]  ;;  %333 = vmatpush.bf16.msra.mxu1 %v4820_v5  ;;  %v3872_v55 = vld [vmem:[#allocation6 + $0x90] sm:$0xf] }
  0x2a   :  { %171 = vperm.xlu0 %5082, %v165_v1   ;;  %v3876_v35 = vld [vmem:[#allocation6 + $0xa8] sm:$0xf]  ;;  %v4844_v56 = vld [vmem:[#allocation6 + $0x98] sm:$0xf0]  ;;  %v3868_v58 = vld [vmem:[#allocation6 + $0x78] sm:$0xf] }
  0x2b   :  { %v3877_v38 = vor.u32 %v4845_v36, %v3876_v35  ;;  %v3873_v57 = vor.u32 %v4844_v56, %v3872_v55  ;;  %v4843_v59 = vld [vmem:[#allocation6 + $0x80] sm:$0xf0]  ;;  %v4836_v61 = vld [vmem:[#allocation6 + $0xac] sm:$0xf]  ;;  %v3838_v62 = vld [vmem:[#allocation6 + $0xb4] sm:$0xf0] }
  0x2c   :  { %320 = vmatpush.bf16.msra.mxu0 %v4811_v7  ;;  %v5162_v33 = vpop.eup %5161  ;;  %v3869_v60 = vor.u32 %v4843_v59, %v3868_v58  ;;  %v3844_v63 = vld [vmem:[#allocation6 + $0xb0] sm:$0xf]  ;;  %v3841_v0 = vor.u32 %v4836_v61, %v3838_v62  ;;  %v4837_v1 = vld [vmem:[#allocation6 + $0xb8] sm:$0xf0]  ;;  %v3864_v3 = vld [vmem:[#allocation6 + $0x60] sm:$0xf] }
  0x2d   :  { %334 = vmatpush.bf16.msra.mxu1 %v4819_v8  ;;  %v351_v34 = vmul.f32 128.0, %v5162_v33  ;;  %vm355_vm7 = vweird.f32 %v5162_v33  ;;  %v3845_v2 = vor.u32 %v4837_v1, %v3844_v63  ;;  %v4842_v4 = vld [vmem:[#allocation6 + $0x68] sm:$0xf0]  ;;  %v3830_v7 = vld [vmem:[#allocation6 + $0x9c] sm:$0xf0] }
  0x2e   :  { %540 = vmatpush.bf16.msra.mxu2 %v3841_v0  ;;  %v3865_v5 = vor.u32 %v4842_v4, %v3864_v3  ;;  %v3836_v8 = vld [vmem:[#allocation6 + $0x98] sm:$0xf]  ;;  %v4833_v19 = vld [vmem:[#allocation6 + $0x88] sm:$0xf0]  ;;  %v4831_v32 = vld [vmem:[#allocation6 + $0x70] sm:$0xf0] }
  0x2f   :  { %v352_v37 = vsub.f32 1.0, %v351_v34  ;;  %554 = vmatpush.bf16.msra.mxu3 %v3845_v2  ;;  %v3852_v34 = vld [vmem:[#allocation6 + $0x18] sm:$0xf]  ;;  %v4839_v35 = vld [vmem:[#allocation6 + $0x20] sm:$0xf0] }
  0x30   :  { %321 = vmatpush.bf16.msra.mxu0 %v4810_v9  ;;  %v3853_v36 = vor.u32 %v4839_v35, %v3852_v34  ;;  %v4882_v55 = vld [vmem:[#allocation9 + $0xe4] sm:$0xf]  ;;  %v4054_v56 = vld [vmem:[#allocation9 + $0xf0] sm:$0xf0]  ;;  %v4824_v59 = vld [vmem:[#allocation6 + $0x1c] sm:$0xf] }
  0x31   :  { %335 = vmatpush.bf16.msra.mxu1 %v4818_v10  ;;  %v353_v39 = vmul.f32 %v5162_v33, %v352_v37  ;;  %v4835_v10 = vld [vmem:[#allocation6 + $0xa0] sm:$0xf0]  ;;  %v4828_v37 = vld [vmem:[#allocation6 + $0x4c] sm:$0xf]  ;;  %v4057_v58 = vor.u32 %v4882_v55, %v4054_v56  ;;  %v3796_v61 = vld [vmem:[#allocation6 + $0x20] sm:$0xf] }
  0x32   :  { %174 = vperm.xlu0 %5082, %v166_v6   ;;  %v4834_v6 = vld [vmem:[#allocation6 + $0x94] sm:$0xf]  ;;  %v4825_v63 = vld [vmem:[#allocation6 + $0x28] sm:$0xf0]  ;;  %v4878_v0 = vld [vmem:[#allocation9 + $0xc4] sm:$0xf] }
  0x33   :  { %v354_v40 = vadd.f32 %v5162_v33, %v353_v39  ;;  %v3833_v9 = vor.u32 %v4834_v6, %v3830_v7  ;;  %v3812_v39 = vld [vmem:[#allocation6 + $0x50] sm:$0xf]  ;;  %v4038_v1 = vld [vmem:[#allocation9 + $0xd0] sm:$0xf0]  ;;  %v3797_v2 = vor.u32 %v4825_v63, %v3796_v61  ;;  %v3788_v7 = vld [vmem:[#allocation6 + $0x8] sm:$0xf] }
  0x34   :  { %322 = vmatpush.bf16.msra.mxu0 %v4809_v11  ;;  %v3837_v11 = vor.u32 %v4835_v10, %v3836_v8  ;;  %v4041_v3 = vor.u32 %v4878_v0, %v4038_v1  ;;  %v3782_v6 = vld [vmem:[#allocation6 + $0xc] sm:$0xf0]  ;;  %v4823_v10 = vld [vmem:[#allocation6 + $0x10] sm:$0xf0]  ;;  %v5393_v1 = vmov 0.0  }
  0x35   :  { %336 = vmatpush.bf16.msra.mxu1 %v4817_v12  ;;  %v5542_v41 = vsel %vm355_vm7, %v5162_v33, %v354_v40  ;;  %541 = vmatpush.bf16.msra.mxu2 %v3833_v9  ;;  %v3860_v12 = vld [vmem:[#allocation6 + $0x48] sm:$0xf]  ;;  %160 = vst [vmem:[#allocation2 + $0x8] sm:$0xff] %v5393_v1 }
  0x36   :  { %555 = vmatpush.bf16.msra.mxu3 %v3837_v11  ;;  %v4874_v11 = vld [vmem:[#allocation9 + $0xa4] sm:$0xf]  ;;  %159 = vst [vmem:[#allocation2 + $0x18] sm:$0xff] %v5393_v1 }
  0x37   :  { %163 = vst [vmem:[#allocation3 + $0x8] sm:$0xff] %v5393_v1 }
  0x38   :  { %323 = vmatpush.bf16.msra.mxu0 %v4808_v13  ;;  %v4841_v13 = vld [vmem:[#allocation6 + $0x50] sm:$0xf0] }
  0x39   :  { %337 = vmatpush.bf16.msra.mxu1 %v4816_v14  ;;  %v3861_v14 = vor.u32 %v4841_v13, %v3860_v12  ;;  %v4022_v12 = vld [vmem:[#allocation9 + $0xb0] sm:$0xf0]  ;;  %v3789_v13 = vor.u32 %v4823_v10, %v3788_v7  ;;  %v5146_v10 = vld [vmem:[%s5942_s4] ss:$0 sm:$0xff] }
  0x3c   :  { %324 = vmatpush.bf16.msra.mxu0 %v4807_v15  ;;  %v4832_v15 = vld [vmem:[#allocation6 + $0x7c] sm:$0xf] }
  0x3d   :  { %338 = vmatpush.bf16.msra.mxu1 %v4815_v16  ;;  %v3822_v16 = vld [vmem:[#allocation6 + $0x84] sm:$0xf0] }
  0x40   :  { %325 = vmatpush.bf16.msra.mxu0 %v4806_v17  ;;  %v3828_v17 = vld [vmem:[#allocation6 + $0x80] sm:$0xf] }
  0x41   :  { %339 = vmatpush.bf16.msra.mxu1 %v4814_v18  ;;  %v3825_v18 = vor.u32 %v4832_v15, %v3822_v16  ;;  %v4870_v16 = vld [vmem:[#allocation9 + $0x84] sm:$0xf] }
  0x43   :  { %542 = vmatpush.bf16.msra.mxu2 %v3825_v18 }
  0x44   :  { %677 = vmatpush.bf16.msrb.mxu0 %v3877_v38  ;;  %v3806_v38 = vld [vmem:[#allocation6 + $0x54] sm:$0xf0] }
  0x45   :  { %v3809_v40 = vor.u32 %v4828_v37, %v3806_v38  ;;  %v4858_v38 = vld [vmem:[#allocation9 + $0x24] sm:$0xf] }
  0x48   :  { %678 = vmatpush.bf16.msrb.mxu0 %v3873_v57 }
  0x4c   :  { %679 = vmatpush.bf16.msrb.mxu0 %v3869_v60  ;;  %v3790_v60 = vld [vmem:[#allocation6 + $0x24] sm:$0xf0] }
  0x4d   :  { %v3793_v62 = vor.u32 %v4824_v59, %v3790_v60 }
  0x50   :  { %680 = vmatpush.bf16.msrb.mxu0 %v3865_v5  ;;  %v4822_v5 = vld [vmem:[#allocation6 + $0x4] sm:$0xf] }
  0x51   :  { %v3785_v9 = vor.u32 %v4822_v5, %v3782_v6  ;;  %v5144_v5 = vld [vmem:[%s5942_s4] ss:$0 sm:$0xff] }
  0x52   :  { %v5145_v6 = vld [vmem:[%s5969_s23] ss:$0 sm:$0xff] }
  0x54   :  { %681 = vmatpush.bf16.msrb.mxu0 %v3861_v14  ;;  %v4025_v14 = vor.u32 %v4874_v11, %v4022_v12 }
  0x9c   :  { %v172_v20 = vpop.permute.xlu0 %171 }
  0x9d   :  { %vm176_vm0 = vcmp.eq.s32.totalorder %v172_v20, %v5526_v21  ;;  %vm177_vm3 = vcmp.eq.s32.totalorder %v172_v20, %v5529_v22  ;;  %v3829_v20 = vor.u32 %v4833_v19, %v3828_v17  ;;  %v4006_v17 = vld [vmem:[#allocation9 + $0x90] sm:$0xf0] }
  0x9e   :  { %v4009_v18 = vor.u32 %v4870_v16, %v4006_v17 }
  0x9f   :  { %556 = vmatpush.bf16.msra.mxu3 %v3829_v20 }
  0xa4   :  { %v175_v23 = vpop.permute.xlu0 %174 }
  0xa5   :  { %vm178_vm1 = vcmp.eq.s32.totalorder %v175_v23, %v5526_v21  ;;  %vm179_vm2 = vcmp.eq.s32.totalorder %v175_v23, %v5529_v22  ;;  %v3856_v23 = vld [vmem:[#allocation6 + $0x30] sm:$0xf] }
  0xa6   :  { %vm3778_vm4 = vmpackc.low %vm178_vm1, %vm176_vm0  ;;  %vm699_vm1 = vcmask 261120  }
  0xa7   :  { %3779 = vmatmul.msk.bf16.vlgmr.msra.gmra.mxu0 %vm3778_vm4, %v5391_v24  ;;  %vm3780_vm5 = vmpackc.low %vm179_vm2, %vm177_vm3  ;;  %3878 = vmatpush.xpose.msk.msrb.mxu1 %vm699_vm1, %v5393_v1  ;;  %vm737_vm2 = vcmask 254976  }
  0xa8   :  { %3781 = vmatmul.msk.bf16.vlgmr.msra.gmra.mxu1 %vm3780_vm5, %v5391_v24 }
  0xab   :  { %3879 = vmatpush.xpose.msk.msrb.mxu1 %vm699_vm1, %v5393_v1 }
 0x124   :  { %v327_v25 = vpop.f32.mrf.mxu0 }
 0x125   :  { %v341_v26 = vpop.f32.mrf.mxu1 }
 0x126   :  { %v342_v27 = vadd.f32 %v341_v26, %v327_v25  ;;  %v4840_v25 = vld [vmem:[#allocation6 + $0x38] sm:$0xf0] }
 0x127   :  { %v3857_v26 = vor.u32 %v4840_v25, %v3856_v23  ;;  %v4866_v23 = vld [vmem:[#allocation9 + $0x64] sm:$0xf]  ;;  %v3990_v25 = vld [vmem:[#allocation9 + $0x70] sm:$0xf0] }
 0x128   :  { %346 = vadd.xlane.f32.xlu1 %v342_v27 }
 0x129   :  { %682 = vmatpush.bf16.msrb.mxu0 %v3857_v26 }
 0x12c   :  { %v329_v28 = vpop.f32.mrf.mxu0 }
 0x12d   :  { %v343_v29 = vpop.f32.mrf.mxu1  ;;  %683 = vmatpush.bf16.msrb.mxu0 %v3853_v36 }
 0x12e   :  { %v5537_v30 = vadd.f32 %v343_v29, %v329_v28  ;;  %v3814_v28 = vld [vmem:[#allocation6 + $0x6c] sm:$0xf0]  ;;  %v3820_v29 = vld [vmem:[#allocation6 + $0x68] sm:$0xf] }
 0x12f   :  { %v3821_v33 = vor.u32 %v4831_v32, %v3820_v29  ;;  %v4862_v32 = vld [vmem:[#allocation9 + $0x44] sm:$0xf] }
 0x130   :  { %348 = vadd.xlane.f32.xlu1 %v5537_v30  ;;  %v573_v31 = vsel %vm572_vm6, %v5537_v30, 0.0 }
 0x131   :  { %574 = vadd.xlane.f32.xlu2 %v573_v31  ;;  %557 = vmatpush.bf16.msra.mxu3 %v3821_v33  ;;  %v3974_v33 = vld [vmem:[#allocation9 + $0x50] sm:$0xf0] }
 0x132   :  { %v3977_v36 = vor.u32 %v4862_v32, %v3974_v33  ;;  %v4896_v32 = vld [vmem:[#allocation11 + $0x50] sm:$0xff] }
 0x19b   :  { %v347_v42 = vpop.xlane.xlu1 %346 }
 0x19c   :  { %v357_v43 = vmul.f32 %v5542_v41, %v347_v42  ;;  %v4829_v42 = vld [vmem:[#allocation6 + $0x58] sm:$0xf0] }
 0x19e   :  { %v5545_v44 = vsub.f32 %v342_v27, %v357_v43  ;;  %v4830_v27 = vld [vmem:[#allocation6 + $0x64] sm:$0xf]  ;;  %v3813_v43 = vor.u32 %v4829_v42, %v3812_v39  ;;  %v3958_v39 = vld [vmem:[#allocation9 + $0x30] sm:$0xf0] }
 0x19f   :  { %v3817_v31 = vor.u32 %v4830_v27, %v3814_v28  ;;  %v3993_v27 = vor.u32 %v4866_v23, %v3990_v25  ;;  %v3961_v42 = vor.u32 %v4858_v38, %v3958_v39  ;;  %v4901_v25 = vld [vmem:[#allocation11 + $0x78] sm:$0xff]  ;;  %v4895_v38 = vld [vmem:[#allocation11 + $0x48] sm:$0xff] }
 0x1a0   :  { %v361_v45 = vmul.f32 %v5545_v44, %v5545_v44  ;;  %558 = vmatpush.bf16.msra.mxu3 %v3813_v43 }
 0x1a1   :  { %543 = vmatpush.bf16.msra.mxu2 %v3817_v31 }
 0x1a2   :  { %363 = vadd.xlane.f32.xlu2 %v361_v45  ;;  %v3848_v45 = vld [vmem:[#allocation6] sm:$0xf] }
 0x1a3   :  { %v349_v46 = vpop.xlane.xlu1 %348 }
 0x1a4   :  { %v358_v47 = vmul.f32 %v5542_v41, %v349_v46  ;;  %v575_v48 = vpop.xlane.xlu2 %574  ;;  %v4838_v46 = vld [vmem:[#allocation6 + $0x8] sm:$0xf0] }
 0x1a5   :  { %v576_v49 = vmul.f32 %v575_v48, %v5542_v41  ;;  %544 = vmatpush.bf16.msra.mxu2 %v3809_v40  ;;  %v4826_v48 = vld [vmem:[#allocation6 + $0x34] sm:$0xf] }
 0x1a6   :  { %v5552_v50 = vsub.f32 %v5537_v30, %v358_v47  ;;  %v3849_v47 = vor.u32 %v4838_v46, %v3848_v45  ;;  %v4854_v45 = vld [vmem:[#allocation9 + $0x4] sm:$0xf]  ;;  %v3942_v46 = vld [vmem:[#allocation9 + $0x10] sm:$0xf0] }
 0x1a7   :  { %v5555_v51 = vsub.f32 %v5537_v30, %v576_v49  ;;  %v3798_v49 = vld [vmem:[#allocation6 + $0x3c] sm:$0xf0] }
 0x1a8   :  { %v362_v52 = vmul.f32 %v5552_v50, %v5552_v50  ;;  %684 = vmatpush.bf16.msrb.mxu0 %v3849_v47 }
 0x1a9   :  { %v578_v53 = vmul.f32 %v5555_v51, %v5555_v51 }
 0x1aa   :  { %365 = vadd.xlane.f32.xlu0 %v362_v52  ;;  %v3804_v52 = vld [vmem:[#allocation6 + $0x38] sm:$0xf] }
 0x1ab   :  { %v579_v54 = vsel %vm572_vm6, %v578_v53, 0.0  ;;  %v3801_v53 = vor.u32 %v4826_v48, %v3798_v49 }
 0x1ac   :  { %580 = vadd.xlane.f32.xlu1 %v579_v54  ;;  %v4827_v54 = vld [vmem:[#allocation6 + $0x40] sm:$0xf0]  ;;  %1408 = vmatpush.bf16.msra.mxu0 %v4057_v58 }
 0x1ad   :  { %v3805_v57 = vor.u32 %v4827_v54, %v3804_v52  ;;  %545 = vmatpush.bf16.msra.mxu2 %v3801_v53  ;;  %v3945_v53 = vor.u32 %v4854_v45, %v3942_v46 }
 0x1af   :  { %559 = vmatpush.bf16.msra.mxu3 %v3805_v57 }
 0x1b0   :  { %1409 = vmatpush.bf16.msra.mxu0 %v4041_v3 }
 0x1b1   :  { %546 = vmatpush.bf16.msra.mxu2 %v3793_v62  ;;  %v5143_v62 = vld [vmem:[%s5969_s23] ss:$0 sm:$0xff] }
 0x1b3   :  { %560 = vmatpush.bf16.msra.mxu3 %v3797_v2 }
 0x1b4   :  { %1410 = vmatpush.bf16.msra.mxu0 %v4025_v14 }
 0x1b5   :  { %547 = vmatpush.bf16.msra.mxu2 %v3785_v9 }
 0x1b7   :  { %561 = vmatpush.bf16.msra.mxu3 %v3789_v13 }
 0x1b8   :  { %1411 = vmatpush.bf16.msra.mxu0 %v4009_v18  ;;  %v5148_v18 = vld [vmem:[%s5944_s6] ss:$0 sm:$0xff] }
 0x1b9   :  { %762 = vmatpush.msrb.mxu2 %v5393_v1 }
 0x1ba   :  { %783 = vrot.lane.b32.xlu2 %v5393_v1, %s5394_s25 }
 0x1bb   :  { %763 = vmatpush.msrb.mxu2 %v5393_v1 }
 0x1bc   :  { %1412 = vmatpush.bf16.msra.mxu0 %v3993_v27  ;;  %v4899_v27 = vld [vmem:[#allocation11 + $0x68] sm:$0xff] }
 0x1be   :  { %5084 = vrot.lane.b32.xlu0 %v5393_v1, %s5394_s25 }
 0x1c0   :  { %1413 = vmatpush.bf16.msra.mxu0 %v3977_v36 }
 0x1c4   :  { %1414 = vmatpush.bf16.msra.mxu0 %v3961_v42  ;;  %v622_v42 = vld [vmem:[%s5948_s10] sm:$0x7] }
 0x1c5   :  { %785 = vrot.lane.b32.xlu1 %v5393_v1, %s5394_s25  ;;  %v624_v45 = vperm.slane %v622_v42, 0  ;;  %v4849_v42 = vld [vmem:[#allocation8 + $0x18] sm:$0xff] }
 0x1c6   :  { %936 = vrot.lane.b32.xlu0 %v5393_v1, %s5383_s20 }
 0x1c8   :  { %1415 = vmatpush.bf16.msra.mxu0 %v3945_v53 }
 0x215   :  { %v364_v4 = vpop.xlane.xlu2 %363 }
 0x216   :  { %v367_v8 = vmul.f32 %v364_v4, %v5542_v41 }
 0x218   :  { %v369_v15 = vadd.f32 1e-05, %v367_v8 }
 0x21a   :  { %5163 = vrsqrt.f32 %v369_v15  ;;  %vm377_vm9 = vweird.f32 %v369_v15 }
 0x21d   :  { %v366_v19 = vpop.xlane.xlu0 %365 }
 0x21e   :  { %v368_v20 = vmul.f32 %v366_v19, %v5542_v41 }
 0x21f   :  { %v581_v26 = vpop.xlane.xlu1 %580 }
 0x220   :  { %v5164_v28 = vpop.eup %5163  ;;  %v370_v29 = vadd.f32 1e-05, %v368_v20  ;;  %v582_v31 = vmul.f32 %v581_v26, %v5542_v41  ;;  %v4900_v26 = vld [vmem:[#allocation11 + $0x70] sm:$0xff] }
 0x221   :  { %v372_v34 = vmul.f32 %v5164_v28, %v369_v15  ;;  %vm378_vm8 = vweird.f32 %v5164_v28 }
 0x222   :  { %5165 = vrsqrt.f32 %v370_v29  ;;  %v583_v35 = vadd.f32 1e-05, %v582_v31  ;;  %vm379_vm10 = vmor %vm377_vm9, %vm378_vm8  ;;  %vm387_vm12 = vweird.f32 %v370_v29  ;;  %v4897_v31 = vld [vmem:[#allocation11 + $0x58] sm:$0xff] }
 0x223   :  { %v373_v37 = vmul.f32 %v5164_v28, %v372_v34 }
 0x224   :  { %5167 = vrsqrt.f32 %v583_v35  ;;  %vm590_vm15 = vweird.f32 %v583_v35 }
 0x225   :  { %v374_v40 = vmul.f32 0.5, %v373_v37 }
 0x227   :  { %v375_v43 = vsub.f32 1.5, %v374_v40 }
 0x228   :  { %v5166_v47 = vpop.eup %5165 }
 0x229   :  { %v376_v48 = vmul.f32 %v5164_v28, %v375_v43  ;;  %v382_v49 = vmul.f32 %v5166_v47, %v370_v29  ;;  %vm388_vm11 = vweird.f32 %v5166_v47  ;;  %v438_v29 = vld [vmem:[%s5948_s10] sm:$0x7] }
 0x22a   :  { %v5168_v52 = vpop.eup %5167  ;;  %vm389_vm14 = vmor %vm387_vm12, %vm388_vm11  ;;  %v440_v33 = vperm.slane %v438_v29, 1  ;;  %v441_v34 = vperm.slane %v438_v29, 2  ;;  %v4894_v43 = vld [vmem:[#allocation11 + $0x40] sm:$0xff]  ;;  %vm1999_vm11 = vcmask 1024  }
 0x22b   :  { %v383_v54 = vmul.f32 %v5166_v47, %v382_v49  ;;  %v585_v55 = vmul.f32 %v5168_v52, %v583_v35  ;;  %v380_v58 = vsel %vm379_vm10, %v5164_v28, %v376_v48  ;;  %vm591_vm13 = vweird.f32 %v5168_v52  ;;  %v4898_v28 = vld [vmem:[#allocation11 + $0x60] sm:$0xff] }
 0x22c   :  { %v391_v61 = vmul.f32 %v380_v58, %v5545_v44  ;;  %vm592_vm0 = vmor %vm590_vm15, %vm591_vm13  ;;  %v5617_v49 = vld [vmem:[%s5952_s14] sm:$0xf] }
 0x22d   :  { %v384_v56 = vmul.f32 0.5, %v383_v54  ;;  %v586_v57 = vmul.f32 %v5168_v52, %v585_v55  ;;  %v1225_v55 = vperm.slane %v5617_v49, 1 }
 0x22e   :  { %v397_v4 = vmul.f32 %v5143_v62, %v391_v61 }
 0x22f   :  { %v385_v59 = vsub.f32 1.5, %v384_v56  ;;  %v587_v60 = vmul.f32 0.5, %v586_v57 }
 0x230   :  { %v5085_v58 = vpop.permute.xlu0 %5084 }
 0x231   :  { %v386_v63 = vmul.f32 %v5166_v47, %v385_v59  ;;  %v588_v0 = vsub.f32 1.5, %v587_v60  ;;  %v5086_v59 = vunpack.i.l.bf16 %v5085_v58 }
 0x233   :  { %v589_v44 = vmul.f32 %v5168_v52, %v588_v0  ;;  %v390_v2 = vsel %vm389_vm14, %v5166_v47, %v386_v63  ;;  %v784_v0 = vpop.permute.xlu2 %783 }
 0x234   :  { %v392_v3 = vmul.f32 %v390_v2, %v5552_v50  ;;  %v403_v50 = vadd.f32 %v5144_v5, %v397_v4 }
 0x235   :  { %v593_v7 = vsel %vm592_vm0, %v5168_v52, %v589_v44 }
 0x236   :  { %v398_v8 = vmul.f32 %v5143_v62, %v392_v3  ;;  %v594_v9 = vmul.f32 %v593_v7, %v5555_v51  ;;  %v5147_v51 = vld [vmem:[%s5943_s5] ss:$0 sm:$0xff]  ;;  %v5087_v62 = vunpack.i.h.bf16 %v5085_v58 }
 0x237   :  { %v786_v56 = vpop.permute.xlu1 %785 }
 0x238   :  { %v404_v11 = vadd.f32 %v5144_v5, %v398_v8  ;;  %v599_v12 = vmul.f32 %v5145_v6, %v594_v9  ;;  %v1183_v17 = vmul.f32 %v5147_v51, %v594_v9 }
 0x23a   :  { %v405_v13 = vpack.c.bf16 %v404_v11, %v403_v50  ;;  %v604_v14 = vadd.f32 %v5146_v10, %v599_v12  ;;  %v1188_v19 = vadd.f32 %v5148_v18, %v1183_v17 }
 0x23c   :  { %548 = vmatmul.bf16.vlgmr.msra.gmra.mxu2 %v405_v13  ;;  %562 = vmatmul.bf16.vlgmr.msra.gmra.mxu3 %v405_v13  ;;  %v605_v15 = vpack.c.bf16 %v604_v14, %v604_v14  ;;  %v1189_v20 = vpack.c.bf16 %v1188_v19, %v1188_v19  ;;  %v5640_v13 = vld [vmem:[%s5970_s26] sm:$0x3] }
 0x23e   :  { %v627_v16 = vrot.slane %v605_v15, 3  ;;  %v5599_v23 = vrot.slane %v1189_v20, 3 }
 0x240   :  { %685 = vmatmul.bf16.vlgmr.msrb.gmra.mxu0 %v627_v16 }
 0x241   :  { %1760 = vmatpush.bf16.msrb.mxu0 %v4901_v25 }
 0x245   :  { %1761 = vmatpush.bf16.msrb.mxu0 %v4900_v26 }
 0x249   :  { %1762 = vmatpush.bf16.msrb.mxu0 %v4899_v27 }
 0x24d   :  { %1763 = vmatpush.bf16.msrb.mxu0 %v4898_v28 }
 0x250   :  { %1416 = vmatmul.bf16.vlgmr.msra.gmra.mxu0 %v5599_v23 }
 0x251   :  { %1764 = vmatpush.bf16.msrb.mxu0 %v4897_v31 }
 0x255   :  { %1765 = vmatpush.bf16.msrb.mxu0 %v4896_v32  ;;  %v937_v32 = vpop.permute.xlu0 %936 }
 0x259   :  { %1766 = vmatpush.bf16.msrb.mxu0 %v4895_v38 }
 0x25d   :  { %1767 = vmatpush.bf16.msrb.mxu0 %v4894_v43 }
 0x2bd   :  { %v686_v35 = vpop.f32.mrf.mxu0 }
 0x2be   :  { %v687_v54 = vadd.f32 %v686_v35, %v624_v45  ;;  %v4848_v45 = vld [vmem:[#allocation8 + $0x10] sm:$0xff] }
 0x2bf   :  { %v549_v36 = vpop.f32.mrf.mxu2  ;;  %v563_v37 = vpop.f32.mrf.mxu3 }
 0x2c0   :  { %v550_v39 = vadd.f32 %v549_v36, %v440_v33  ;;  %v564_v40 = vadd.f32 %v563_v37, %v441_v34 }
 0x2c2   :  { %568 = vst [vmem:[#allocation2 + $0x10] sm:$0xff] %v550_v39  ;;  %932 = vrot.lane.b32.xlu0 %v550_v39, %s5383_s20  ;;  %779 = vrot.lane.b32.xlu1 %v550_v39, %s5394_s25 }
 0x2c3   :  { %570 = vst [vmem:[#allocation3] sm:$0xff] %v564_v40 }
 0x2c5   :  { %v688_v46 = vpop.f32.mrf.mxu0 }
 0x2c7   :  { %v551_v47 = vpop.f32.mrf.mxu2  ;;  %v565_v48 = vpop.f32.mrf.mxu3 }
 0x2c8   :  { %v5619_v52 = vadd.f32 %v551_v47, %v440_v33  ;;  %v566_v53 = vadd.f32 %v565_v48, %v441_v34 }
 0x2ca   :  { %569 = vst [vmem:[#allocation2] sm:$0xff] %v5619_v52  ;;  %764 = vmatpush.msrb.mxu2 %v566_v53  ;;  %781 = vrot.lane.b32.xlu2 %v5619_v52, %s5394_s25  ;;  %v5625_v57 = vpack.i.bf16 %v564_v40, %v566_v53 }
 0x2cb   :  { %571 = vst [vmem:[#allocation3 + $0x18] sm:$0xff] %v566_v53  ;;  %3880 = vmatpush.xpose.msk.msrb.mxu1 %vm699_vm1, %v5619_v52  ;;  %930 = vrot.lane.b32.xlu0 %v687_v54, %s5383_s20 }
 0x2cc   :  { %765 = vmatpush.msrb.mxu2 %v564_v40 }
 0x2cd   :  { %v1417_v60 = vpop.f32.mrf.mxu0 }
 0x2ce   :  { %3884 = vmatpush.xpose.msk.msra.mxu2 %vm699_vm1, %v786_v56  ;;  %v1418_v61 = vadd.f32 %v1417_v60, %v1225_v55 }
 0x2cf   :  { %3881 = vmatpush.xpose.msk.msrb.mxu1 %vm699_vm1, %v550_v39 }
 0x2d0   :  { %v1448_v63 = vmul.f32 %v1418_v61, %v1418_v61 }
 0x2d2   :  { %3885 = vmatpush.xpose.msk.msra.mxu2 %vm699_vm1, %v784_v0  ;;  %v1452_v44 = vmul.f32 %v1448_v63, %v1418_v61  ;;  %3882 = vmatmul.msk.f32.vlgmr.msrb.gmra.mxu1 %vm699_vm1, %v687_v54 }
 0x2d3   :  { %859 = vmatpush.msra.mxu1 %v5086_v59  ;;  %1054 = vrot.lane.b32.xlu0 %v550_v39, %s5395_s1 }
 0x2d4   :  { %v1456_v2 = vmul.f32 0.044715, %v1452_v44 }
 0x2d5   :  { %860 = vmatpush.msra.mxu1 %v5087_v62  ;;  %v1419_v3 = vpop.f32.mrf.mxu0 }
 0x2d6   :  { %v1460_v4 = vadd.f32 %v1456_v2, %v1418_v61 }
 0x2d8   :  { %v1464_v5 = vmul.f32 0.7978846, %v1460_v4 }
 0x2da   :  { %5169 = vtanh.f32 %v1464_v5 }
 0x2e0   :  { %v5170_v6 = vpop.eup %5169 }
 0x2e1   :  { %v1472_v7 = vadd.f32 1.0, %v5170_v6 }
 0x2e3   :  { %v1476_v8 = vmul.f32 0.5, %v1472_v7 }
 0x2e5   :  { %v1480_v9 = vmul.f32 %v1476_v8, %v1418_v61 }
 0x2e7   :  { %v1484_v10 = vpack.c.bf16 %v1480_v9, %v1480_v9 }
 0x2e9   :  { %1768 = vmatmul.bf16.vlgmr.msrb.gmra.mxu0 %v1484_v10 }
 0x324   :  { %v782_v50 = vpop.permute.xlu2 %781 }
 0x325   :  { %3886 = vmatpush.xpose.msk.msra.mxu2 %vm699_vm1, %v782_v50 }
 0x334   :  { %v780_v11 = vpop.permute.xlu1 %779  ;;  %v933_v34 = vpop.permute.xlu0 %932 }
 0x335   :  { %3887 = vmatpush.xpose.msk.msra.mxu2 %vm699_vm1, %v780_v11 }
 0x34f   :  { %v732_v12 = vpop.f32.mrf.mxu1 }
 0x350   :  { %v735_v14 = vmul.f32 0.17677669, %v732_v12 }
 0x352   :  { %v736_v15 = vadd.f32 %v735_v14, %v5640_v13 }
 0x354   :  { %v738_v16 = vsel %vm737_vm2, %v736_v15, -inf }
 0x355   :  { %739 = vmax.xlane.f32.xlu2 %v738_v16  ;;  %v4847_v16 = vld [vmem:[#allocation8 + $0x8] sm:$0xff] }
 0x356   :  { %923 = vmatpush.bf16.msrb.mxu3 %v4847_v16  ;;  %v4880_v16 = vld [vmem:[#allocation9 + $0xcc] sm:$0xf0] }
 0x366   :  { %v5644_v51 = vpop.f32.mrf.mxu0 }
 0x36d   :  { %777 = vrot.lane.b32.xlu2 %v687_v54, %s5394_s25 }
 0x36e   :  { %v1771_v17 = vpop.f32.mrf.mxu0 }
 0x375   :  { %938 = vrot.lane.b32.xlu2 %v5393_v1, %s5383_s20 }
 0x37d   :  { %5089 = vrot.lane.b32.xlu2 %v5625_v57, %s5394_s25 }
 0x385   :  { %934 = vrot.lane.b32.xlu2 %v5619_v52, %s5383_s20 }
 0x38d   :  { %1060 = vrot.lane.b32.xlu2 %v5393_v1, %s5395_s1 }
 0x395   :  { %1058 = vrot.lane.b32.xlu2 %v5393_v1, %s5395_s1 }
 0x39d   :  { %1052 = vrot.lane.b32.xlu2 %v687_v54, %s5395_s1  ;;  %v931_v54 = vpop.permute.xlu0 %930 }
 0x3a5   :  { %v1055_v56 = vpop.permute.xlu0 %1054 }
 0x3c8   :  { %v740_v18 = vpop.xlane.xlu2 %739 }
 0x3c9   :  { %v741_v19 = vsub.f32 %v736_v15, %v740_v18  ;;  %v4846_v18 = vld [vmem:[#allocation8] sm:$0xff] }
 0x3ca   :  { %924 = vmatpush.bf16.msrb.mxu3 %v4846_v18  ;;  %v4062_v18 = vld [vmem:[#allocation9 + $0xf8] sm:$0xf0] }
 0x3cb   :  { %v742_v20 = vmul.f32 1.442695, %v741_v19 }
 0x3cd   :  { %5171 = vpow2.f32 %v742_v20 }
 0x3d0   :  { %v778_v25 = vpop.permute.xlu2 %777 }
 0x3d3   :  { %v5172_v26 = vpop.eup %5171 }
 0x3d4   :  { %3883 = vmatmul.msk.f32.vlgmr.msrb.gmra.mxu2 %vm699_vm1, %v5172_v26  ;;  %v744_v44 = vsel %vm737_vm2, %v5172_v26, 0.0 }
 0x3d5   :  { %895 = vmatpush.bf16.msrb.mxu2 %v4849_v42 }
 0x3d8   :  { %v939_v27 = vpop.permute.xlu2 %938 }
 0x3d9   :  { %896 = vmatpush.bf16.msrb.mxu2 %v4848_v45 }
 0x3dc   :  { %3888 = vmatmul.msk.f32.vlgmr.msra.gmra.mxu2 %vm699_vm1, %v778_v25 }
 0x3e0   :  { %v5090_v28 = vpop.permute.xlu2 %5089 }
 0x3e1   :  { %v5091_v29 = vunpack.i.l.bf16 %v5090_v28  ;;  %v5092_v31 = vunpack.i.h.bf16 %v5090_v28 }
 0x3e3   :  { %861 = vmatpush.msra.mxu1 %v5091_v29 }
 0x3e5   :  { %862 = vmatpush.msra.mxu1 %v5092_v31  ;;  %v4060_v31 = vld [vmem:[#allocation9 + $0xe8] sm:$0xf] }
 0x3e7   :  { %3908 = vmatpush.xpose.msk.msrb.mxu1 %vm699_vm1, %v939_v27 }
 0x3e8   :  { %v935_v33 = vpop.permute.xlu2 %934 }
 0x3eb   :  { %3909 = vmatpush.xpose.msk.msrb.mxu1 %vm699_vm1, %v937_v32  ;;  %v4885_v32 = vld [vmem:[#allocation9 + $0xf4] sm:$0xf0] }
 0x3ef   :  { %3910 = vmatpush.xpose.msk.msrb.mxu1 %vm699_vm1, %v935_v33 }
 0x3f0   :  { %v1061_v47 = vpop.permute.xlu2 %1060 }
 0x3f3   :  { %3911 = vmatpush.xpose.msk.msrb.mxu1 %vm699_vm1, %v933_v34 }
 0x3f8   :  { %v1059_v53 = vpop.permute.xlu2 %1058 }
 0x400   :  { %v1053_v58 = vpop.permute.xlu2 %1052 }
 0x457   :  { %v5664_v35 = vpop.f32.mrf.mxu2 }
 0x45f   :  { %v814_v36 = vpop.f32.mrf.mxu2 }
 0x460   :  { %v817_v37 = vmul.f32 0.17677669, %v814_v36  ;;  %v4061_v36 = vor.u32 %v4885_v32, %v4060_v31  ;;  %v4004_v32 = vld [vmem:[#allocation9 + $0x80] sm:$0xf] }
 0x462   :  { %v818_v38 = vadd.f32 %v817_v37, %v5640_v13 }
 0x464   :  { %v819_v39 = vsel %vm737_vm2, %v818_v38, -inf }
 0x465   :  { %820 = vmax.xlane.f32.xlu1 %v819_v39  ;;  %v4881_v39 = vld [vmem:[#allocation9 + $0xd4] sm:$0xf0] }
 0x47e   :  { %1056 = vrot.lane.b32.xlu1 %v5619_v52, %s5395_s1 }
 0x486   :  { %5094 = vrot.lane.b32.xlu1 %v5393_v1, %s5383_s20 }
 0x48e   :  { %5099 = vrot.lane.b32.xlu1 %v5625_v57, %s5383_s20 }
 0x4d8   :  { %v821_v40 = vpop.xlane.xlu1 %820 }
 0x4d9   :  { %v822_v43 = vsub.f32 %v818_v38, %v821_v40  ;;  %v4044_v38 = vld [vmem:[#allocation9 + $0xc8] sm:$0xf] }
 0x4db   :  { %v823_v46 = vmul.f32 1.442695, %v822_v43  ;;  %v4045_v43 = vor.u32 %v4881_v39, %v4044_v38  ;;  %v3988_v38 = vld [vmem:[#allocation9 + $0x60] sm:$0xf]  ;;  %v4868_v39 = vld [vmem:[#allocation9 + $0x6c] sm:$0xf0] }
 0x4dd   :  { %5173 = vpow2.f32 %v823_v46 }
 0x4e3   :  { %v5174_v48 = vpop.eup %5173 }
 0x4e4   :  { %3889 = vmatmul.msk.f32.vlgmr.msra.gmra.mxu1 %vm699_vm1, %v5174_v48  ;;  %v825_v52 = vsel %vm737_vm2, %v5174_v48, 0.0  ;;  %v4877_v48 = vld [vmem:[#allocation9 + $0xb4] sm:$0xf0] }
 0x4e5   :  { %826 = vadd.xlane.f32.xlu0 %v825_v52  ;;  %3923 = vmatpush.xpose.msk.msra.mxu1 %vm699_vm1, %v1061_v47  ;;  %v4028_v47 = vld [vmem:[#allocation9 + $0xa8] sm:$0xf] }
 0x4e6   :  { %v4029_v52 = vor.u32 %v4877_v48, %v4028_v47  ;;  %v4867_v48 = vld [vmem:[#allocation9 + $0x6c] sm:$0xf] }
 0x4e9   :  { %3924 = vmatpush.xpose.msk.msra.mxu1 %vm699_vm1, %v1059_v53  ;;  %v4012_v53 = vld [vmem:[#allocation9 + $0x88] sm:$0xf] }
 0x4ec   :  { %3912 = vmatmul.msk.f32.vlgmr.msrb.gmra.mxu1 %vm699_vm1, %v931_v54  ;;  %v4873_v54 = vld [vmem:[#allocation9 + $0x94] sm:$0xf0] }
 0x4f0   :  { %v1057_v55 = vpop.permute.xlu1 %1056 }
 0x4f1   :  { %3925 = vmatpush.xpose.msk.msra.mxu1 %vm699_vm1, %v1057_v55  ;;  %v4013_v55 = vor.u32 %v4873_v54, %v4012_v53  ;;  %v3956_v54 = vld [vmem:[#allocation9 + $0x20] sm:$0xf] }
 0x4f5   :  { %3926 = vmatpush.xpose.msk.msra.mxu1 %vm699_vm1, %v1055_v56 }
 0x4f8   :  { %v5095_v59 = vpop.permute.xlu1 %5094  ;;  %3927 = vmatmul.msk.f32.vlgmr.msra.gmra.mxu1 %vm699_vm1, %v1053_v58  ;;  %v3996_v58 = vld [vmem:[#allocation9 + $0x68] sm:$0xf] }
 0x4f9   :  { %v5097_v60 = vunpack.i.h.bf16 %v5095_v59  ;;  %v5096_v61 = vunpack.i.l.bf16 %v5095_v59  ;;  %5104 = vrot.lane.b32.xlu0 %v5393_v1, %s5395_s1  ;;  %v4869_v59 = vld [vmem:[#allocation9 + $0x74] sm:$0xf0] }
 0x4fb   :  { %1008 = vmatpush.msra.mxu2 %v5096_v61  ;;  %v3997_v61 = vor.u32 %v4869_v59, %v3996_v58  ;;  %v3982_v59 = vld [vmem:[#allocation9 + $0x58] sm:$0xf0] }
 0x4fd   :  { %1009 = vmatpush.msra.mxu2 %v5097_v60 }
 0x500   :  { %v5100_v62 = vpop.permute.xlu1 %5099 }
 0x501   :  { %v5101_v63 = vunpack.i.l.bf16 %v5100_v62  ;;  %v5102_v0 = vunpack.i.h.bf16 %v5100_v62  ;;  %v3980_v62 = vld [vmem:[#allocation9 + $0x48] sm:$0xf] }
 0x503   :  { %1010 = vmatpush.msra.mxu2 %v5101_v63  ;;  %v4865_v63 = vld [vmem:[#allocation9 + $0x54] sm:$0xf0] }
 0x505   :  { %1011 = vmatpush.msra.mxu2 %v5102_v0  ;;  %v3981_v0 = vor.u32 %v4865_v63, %v3980_v62  ;;  %v4859_v63 = vld [vmem:[#allocation9 + $0x2c] sm:$0xf] }
 0x523   :  { %745 = vadd.xlane.f32.xlu0 %v744_v44  ;;  %v3964_v44 = vld [vmem:[#allocation9 + $0x28] sm:$0xf] }
 0x558   :  { %v827_v2 = vpop.xlane.xlu0 %826 }
 0x559   :  { %5175 = vrcp.f32 %v827_v2  ;;  %v4861_v2 = vld [vmem:[#allocation9 + $0x34] sm:$0xf0] }
 0x55f   :  { %v5176_v3 = vpop.eup %5175 }
 0x561   :  { %v864_v4 = vpop.f32.mrf.mxu1 }
 0x562   :  { %v868_v5 = vmul.f32 %v5176_v3, %v864_v4  ;;  %v3965_v3 = vor.u32 %v4861_v2, %v3964_v44  ;;  %v3948_v4 = vld [vmem:[#allocation9 + $0x8] sm:$0xf] }
 0x564   :  { %v869_v6 = vpack.c.bf16 %v868_v5, %v868_v5  ;;  %v4857_v5 = vld [vmem:[#allocation9 + $0x14] sm:$0xf0] }
 0x566   :  { %3898 = vmatmul.msk.bf16.vlgmr.msrb.gmra.mxu2 %vm699_vm1, %v869_v6  ;;  %v3949_v6 = vor.u32 %v4857_v5, %v3948_v4  ;;  %v3950_v4 = vld [vmem:[#allocation9 + $0x18] sm:$0xf0] }
 0x567   :  { %v4909_v5 = vld [vmem:[#allocation11 + $0xb8] sm:$0xff] }
 0x569   :  { %v967_v7 = vpop.f32.mrf.mxu1 }
 0x56a   :  { %v970_v1 = vmul.f32 0.17677669, %v967_v7  ;;  %v4851_v7 = vld [vmem:[#allocation8 + $0x28] sm:$0xff] }
 0x56b   :  { %v5105_v8 = vpop.permute.xlu0 %5104  ;;  %1044 = vmatpush.bf16.msra.mxu3 %v4851_v7 }
 0x56c   :  { %v971_v9 = vadd.f32 %v970_v1, %v5640_v13  ;;  %v5107_v10 = vunpack.i.h.bf16 %v5105_v8  ;;  %v5106_v50 = vunpack.i.l.bf16 %v5105_v8 }
 0x56e   :  { %v972_v11 = vsel %vm737_vm2, %v971_v9, -inf  ;;  %1130 = vmatpush.msrb.mxu1 %v5106_v50  ;;  %v4052_v50 = vld [vmem:[#allocation9 + $0xe0] sm:$0xf] }
 0x56f   :  { %973 = vmax.xlane.f32.xlu2 %v972_v11  ;;  %v4884_v11 = vld [vmem:[#allocation9 + $0xec] sm:$0xf0] }
 0x570   :  { %1131 = vmatpush.msrb.mxu1 %v5107_v10  ;;  %v4850_v10 = vld [vmem:[#allocation8 + $0x20] sm:$0xff] }
 0x571   :  { %1045 = vmatpush.bf16.msra.mxu3 %v4850_v10  ;;  %v4907_v10 = vld [vmem:[#allocation11 + $0xa8] sm:$0xff] }
 0x575   :  { %v1089_v12 = vpop.f32.mrf.mxu1 }
 0x576   :  { %v1092_v14 = vmul.f32 0.17677669, %v1089_v12  ;;  %v4053_v12 = vor.u32 %v4884_v11, %v4052_v50 }
 0x578   :  { %v1093_v15 = vadd.f32 %v1092_v14, %v5640_v13  ;;  %v4853_v14 = vld [vmem:[#allocation8 + $0x38] sm:$0xff] }
 0x579   :  { %1166 = vmatpush.bf16.msrb.mxu2 %v4853_v14  ;;  %v4906_v14 = vld [vmem:[#allocation11 + $0xa0] sm:$0xff] }
 0x57a   :  { %v1094_v17 = vsel %vm737_vm2, %v1093_v15, -inf }
 0x57b   :  { %1095 = vmax.xlane.f32.xlu1 %v1094_v17  ;;  %v4883_v17 = vld [vmem:[#allocation9 + $0xec] sm:$0xf] }
 0x587   :  { %5109 = vrot.lane.b32.xlu2 %v5625_v57, %s5395_s1 }
 0x596   :  { %v746_v19 = vpop.xlane.xlu0 %745 }
 0x597   :  { %5177 = vrcp.f32 %v746_v19 }
 0x59d   :  { %v5178_v20 = vpop.eup %5177 }
 0x59e   :  { %v771_v25 = vmul.f32 %v5178_v20, %v5664_v35  ;;  %v4852_v20 = vld [vmem:[#allocation8 + $0x30] sm:$0xff] }
 0x59f   :  { %1167 = vmatpush.bf16.msrb.mxu2 %v4852_v20  ;;  %v4904_v20 = vld [vmem:[#allocation11 + $0x90] sm:$0xff] }
 0x5a0   :  { %v772_v26 = vpack.c.bf16 %v771_v25, %v771_v25  ;;  %v4065_v25 = vor.u32 %v4883_v17, %v4062_v18  ;;  %v4905_v18 = vld [vmem:[#allocation11 + $0x98] sm:$0xff] }
 0x5a2   :  { %3907 = vmatmul.msk.bf16.vlgmr.msrb.gmra.mxu3 %vm699_vm1, %v772_v26  ;;  %v4020_v26 = vld [vmem:[#allocation9 + $0xa0] sm:$0xf] }
 0x5a3   :  { %1395 = vmatpush.bf16.msrb.mxu3 %v4053_v12 }
 0x5e2   :  { %v974_v27 = vpop.xlane.xlu2 %973 }
 0x5e3   :  { %v975_v13 = vsub.f32 %v971_v9, %v974_v27  ;;  %v4876_v27 = vld [vmem:[#allocation9 + $0xac] sm:$0xf0] }
 0x5e5   :  { %v976_v28 = vmul.f32 1.442695, %v975_v13  ;;  %v4021_v13 = vor.u32 %v4876_v27, %v4020_v26  ;;  %v4903_v26 = vld [vmem:[#allocation11 + $0x88] sm:$0xff]  ;;  %v4902_v27 = vld [vmem:[#allocation11 + $0x80] sm:$0xff] }
 0x5e7   :  { %5179 = vpow2.f32 %v976_v28  ;;  %v4879_v28 = vld [vmem:[#allocation9 + $0xcc] sm:$0xf] }
 0x5e9   :  { %v898_v29 = vpop.f32.mrf.mxu2 }
 0x5ea   :  { %v5110_v33 = vpop.permute.xlu2 %5109 }
 0x5eb   :  { %v5111_v34 = vunpack.i.l.bf16 %v5110_v33  ;;  %v5112_v57 = vunpack.i.h.bf16 %v5110_v33  ;;  %v4872_v33 = vld [vmem:[#allocation9 + $0x8c] sm:$0xf0] }
 0x5ed   :  { %v5180_v37 = vpop.eup %5179  ;;  %1132 = vmatpush.msrb.mxu1 %v5111_v34  ;;  %v4005_v34 = vor.u32 %v4872_v33, %v4004_v32 }
 0x5ee   :  { %v1096_v40 = vpop.xlane.xlu1 %1095  ;;  %3913 = vmatmul.msk.f32.vlgmr.msra.gmra.mxu2 %vm699_vm1, %v5180_v37  ;;  %v978_v35 = vsel %vm737_vm2, %v5180_v37, 0.0  ;;  %v4030_v37 = vld [vmem:[#allocation9 + $0xb8] sm:$0xf0] }
 0x5ef   :  { %v1097_v42 = vsub.f32 %v1093_v15, %v1096_v40  ;;  %979 = vadd.xlane.f32.xlu2 %v978_v35  ;;  %1133 = vmatpush.msrb.mxu1 %v5112_v57  ;;  %v4036_v15 = vld [vmem:[#allocation9 + $0xc0] sm:$0xf]  ;;  %v3989_v40 = vor.u32 %v4868_v39, %v3988_v38  ;;  %v4871_v35 = vld [vmem:[#allocation9 + $0x8c] sm:$0xf] }
 0x5f0   :  { %v4037_v19 = vor.u32 %v4880_v16, %v4036_v15  ;;  %1434 = vmatpush.bf16.msra.mxu2 %v4065_v25 }
 0x5f1   :  { %1421 = vmatpush.bf16.msra.mxu1 %v4061_v36  ;;  %v1098_v45 = vmul.f32 1.442695, %v1097_v42  ;;  %v900_v46 = vpop.f32.mrf.mxu2  ;;  %v4875_v36 = vld [vmem:[#allocation9 + $0xac] sm:$0xf]  ;;  %v4014_v42 = vld [vmem:[#allocation9 + $0x98] sm:$0xf0] }
 0x5f2   :  { %1396 = vmatpush.bf16.msrb.mxu3 %v4037_v19  ;;  %v4033_v57 = vor.u32 %v4875_v36, %v4030_v37  ;;  %v4864_v46 = vld [vmem:[#allocation9 + $0x4c] sm:$0xf0] }
 0x5f3   :  { %5181 = vpow2.f32 %v1098_v45  ;;  %v3972_v45 = vld [vmem:[#allocation9 + $0x40] sm:$0xf] }
 0x5f4   :  { %v3973_v47 = vor.u32 %v4864_v46, %v3972_v45  ;;  %v4917_v45 = vld [vmem:[#allocation11 + $0xf8] sm:$0xff]  ;;  %v4916_v46 = vld [vmem:[#allocation11 + $0xf0] sm:$0xff] }
 0x5f5   :  { %1422 = vmatpush.bf16.msra.mxu1 %v4045_v43  ;;  %v4017_v43 = vor.u32 %v4871_v35, %v4014_v42  ;;  %v4893_v42 = vld [vmem:[#allocation11 + $0x38] sm:$0xff] }
 0x5f6   :  { %1397 = vmatpush.bf16.msrb.mxu3 %v4021_v13  ;;  %v1226_v13 = vperm.slane %v5617_v49, 2 }
 0x5f9   :  { %1423 = vmatpush.bf16.msra.mxu1 %v4029_v52  ;;  %v5182_v56 = vpop.eup %5181  ;;  %v3998_v52 = vld [vmem:[#allocation9 + $0x78] sm:$0xf0] }
 0x5fa   :  { %3928 = vmatmul.msk.f32.vlgmr.msrb.gmra.mxu1 %vm699_vm1, %v5182_v56  ;;  %v1100_v60 = vsel %vm737_vm2, %v5182_v56, 0.0  ;;  %1398 = vmatpush.bf16.msrb.mxu3 %v4005_v34  ;;  %v4001_v53 = vor.u32 %v4867_v48, %v3998_v52  ;;  %v4863_v56 = vld [vmem:[#allocation9 + $0x4c] sm:$0xf]  ;;  %v4889_v52 = vld [vmem:[#allocation11 + $0x18] sm:$0xff] }
 0x5fb   :  { %1101 = vadd.xlane.f32.xlu1 %v1100_v60  ;;  %v3940_v60 = vld [vmem:[#allocation9] sm:$0xf]  ;;  %v3985_v62 = vor.u32 %v4863_v56, %v3982_v59  ;;  %v4915_v48 = vld [vmem:[#allocation11 + $0xe8] sm:$0xff] }
 0x5fc   :  { %v4887_v59 = vld [vmem:[#allocation11 + $0x8] sm:$0xff] }
 0x5fd   :  { %1424 = vmatpush.bf16.msra.mxu1 %v4013_v55  ;;  %v4860_v55 = vld [vmem:[#allocation9 + $0x2c] sm:$0xf0] }
 0x5fe   :  { %1399 = vmatpush.bf16.msrb.mxu3 %v3989_v40  ;;  %v3957_v58 = vor.u32 %v4860_v55, %v3956_v54  ;;  %v4888_v54 = vld [vmem:[#allocation11 + $0x10] sm:$0xff] }
 0x601   :  { %1425 = vmatpush.bf16.msra.mxu1 %v3997_v61  ;;  %v4856_v61 = vld [vmem:[#allocation9 + $0xc] sm:$0xf0] }
 0x602   :  { %1400 = vmatpush.bf16.msrb.mxu3 %v3973_v47  ;;  %v3941_v44 = vor.u32 %v4856_v61, %v3940_v60  ;;  %v4890_v47 = vld [vmem:[#allocation11 + $0x20] sm:$0xff]  ;;  %v4912_v60 = vld [vmem:[#allocation11 + $0xd0] sm:$0xff] }
 0x603   :  { %v4886_v61 = vld [vmem:[#allocation11] sm:$0xff] }
 0x605   :  { %1426 = vmatpush.bf16.msra.mxu1 %v3981_v0  ;;  %v3966_v0 = vld [vmem:[#allocation9 + $0x38] sm:$0xf0] }
 0x606   :  { %1401 = vmatpush.bf16.msrb.mxu3 %v3957_v58  ;;  %v3969_v2 = vor.u32 %v4859_v63, %v3966_v0  ;;  %v4913_v58 = vld [vmem:[#allocation11 + $0xd8] sm:$0xff]  ;;  %v4911_v0 = vld [vmem:[#allocation11 + $0xc8] sm:$0xff] }
 0x609   :  { %1427 = vmatpush.bf16.msra.mxu1 %v3965_v3  ;;  %v4855_v3 = vld [vmem:[#allocation9 + $0xc] sm:$0xf] }
 0x60a   :  { %1402 = vmatpush.bf16.msrb.mxu3 %v3941_v44 }
 0x60d   :  { %1428 = vmatpush.bf16.msra.mxu1 %v3949_v6  ;;  %v3953_v6 = vor.u32 %v4855_v3, %v3950_v4  ;;  %v1224_v3 = vperm.slane %v5617_v49, 0 }
 0x610   :  { %1429 = vmatmul.bf16.vlgmr.msra.gmra.mxu1 %v5599_v23 }
 0x611   :  { %1773 = vmatpush.bf16.msrb.mxu1 %v4909_v5 }
 0x625   :  { %v926_v1 = vpop.f32.mrf.mxu3 }
 0x626   :  { %v5699_v8 = vadd.f32 %v926_v1, %v898_v29  ;;  %v4046_v29 = vld [vmem:[#allocation9 + $0xd8] sm:$0xf0]  ;;  %v4908_v1 = vld [vmem:[#allocation11 + $0xb0] sm:$0xff] }
 0x627   :  { %v4049_v31 = vor.u32 %v4879_v28, %v4046_v29  ;;  %1774 = vmatpush.bf16.msrb.mxu1 %v4908_v1 }
 0x629   :  { %1435 = vmatpush.bf16.msra.mxu2 %v4049_v31 }
 0x62b   :  { %1775 = vmatpush.bf16.msrb.mxu1 %v4907_v10 }
 0x62d   :  { %v928_v9 = vpop.f32.mrf.mxu3  ;;  %1436 = vmatpush.bf16.msra.mxu2 %v4033_v57 }
 0x62f   :  { %1776 = vmatpush.bf16.msrb.mxu1 %v4906_v14 }
 0x631   :  { %1437 = vmatpush.bf16.msra.mxu2 %v4017_v43  ;;  %v4892_v43 = vld [vmem:[#allocation11 + $0x30] sm:$0xff] }
 0x633   :  { %1777 = vmatpush.bf16.msrb.mxu1 %v4905_v18 }
 0x635   :  { %1438 = vmatpush.bf16.msra.mxu2 %v4001_v53  ;;  %v4914_v53 = vld [vmem:[#allocation11 + $0xe0] sm:$0xff] }
 0x637   :  { %1778 = vmatpush.bf16.msrb.mxu1 %v4904_v20 }
 0x639   :  { %1439 = vmatpush.bf16.msra.mxu2 %v3985_v62 }
 0x63b   :  { %1779 = vmatpush.bf16.msrb.mxu1 %v4903_v26 }
 0x63d   :  { %1440 = vmatpush.bf16.msra.mxu2 %v3969_v2  ;;  %v4910_v2 = vld [vmem:[#allocation11 + $0xc0] sm:$0xff] }
 0x63f   :  { %1780 = vmatpush.bf16.msrb.mxu1 %v4902_v27 }
 0x641   :  { %1441 = vmatpush.bf16.msra.mxu2 %v3953_v6 }
 0x662   :  { %v980_v7 = vpop.xlane.xlu2 %979 }
 0x663   :  { %5183 = vrcp.f32 %v980_v7  ;;  %v1227_v7 = vperm.slane %v5617_v49, 3 }
 0x669   :  { %v5184_v50 = vpop.eup %5183 }
 0x66e   :  { %v1102_v9 = vpop.xlane.xlu1 %1101 }
 0x66f   :  { %5185 = vrcp.f32 %v1102_v9 }
 0x671   :  { %v1013_v11 = vpop.f32.mrf.mxu2 }
 0x672   :  { %v1017_v12 = vmul.f32 %v5184_v50, %v1013_v11 }
 0x674   :  { %v1018_v15 = vpack.c.bf16 %v1017_v12, %v1017_v12 }
 0x675   :  { %v5186_v16 = vpop.eup %5185 }
 0x676   :  { %3922 = vmatmul.msk.bf16.vlgmr.msra.gmra.mxu3 %vm699_vm1, %v1018_v15 }
 0x677   :  { %v1135_v17 = vpop.f32.mrf.mxu1  ;;  %1747 = vmatpush.bf16.msra.mxu3 %v4893_v42 }
 0x678   :  { %v1139_v19 = vmul.f32 %v5186_v16, %v1135_v17 }
 0x67a   :  { %v1140_v25 = vpack.c.bf16 %v1139_v19, %v1139_v19 }
 0x67b   :  { %1748 = vmatpush.bf16.msra.mxu3 %v4892_v43 }
 0x67c   :  { %3937 = vmatmul.msk.bf16.vlgmr.msrb.gmra.mxu2 %vm699_vm1, %v1140_v25 }
 0x67d   :  { %1786 = vmatpush.bf16.msrb.mxu2 %v4917_v45 }
 0x681   :  { %1787 = vmatpush.bf16.msrb.mxu2 %v4916_v46 }
 0x685   :  { %1788 = vmatpush.bf16.msrb.mxu2 %v4915_v48 }
 0x686   :  { %1403 = vmatmul.bf16.vlgmr.msrb.gmra.mxu3 %v5599_v23 }
 0x689   :  { %1789 = vmatpush.bf16.msrb.mxu2 %v4914_v53 }
 0x68c   :  { %1442 = vmatmul.bf16.vlgmr.msra.gmra.mxu2 %v5599_v23  ;;  %v4891_v23 = vld [vmem:[#allocation11 + $0x28] sm:$0xff] }
 0x68d   :  { %v1430_v28 = vpop.f32.mrf.mxu1  ;;  %1749 = vmatpush.bf16.msra.mxu3 %v4891_v23  ;;  %1790 = vmatpush.bf16.msrb.mxu2 %v4913_v58 }
 0x68e   :  { %v1431_v29 = vadd.f32 %v1430_v28, %v1226_v13 }
 0x690   :  { %v1449_v31 = vmul.f32 %v1431_v29, %v1431_v29 }
 0x691   :  { %1750 = vmatpush.bf16.msra.mxu3 %v4890_v47  ;;  %1791 = vmatpush.bf16.msrb.mxu2 %v4912_v60  ;;  %v4252_v60 = vld [vmem:[#allocation12 + $0x70] sm:$0xf] }
 0x692   :  { %v1453_v32 = vmul.f32 %v1449_v31, %v1431_v29 }
 0x694   :  { %v1457_v33 = vmul.f32 0.044715, %v1453_v32 }
 0x695   :  { %v1432_v34 = vpop.f32.mrf.mxu1  ;;  %1751 = vmatpush.bf16.msra.mxu3 %v4889_v52  ;;  %1792 = vmatpush.bf16.msrb.mxu2 %v4911_v0 }
 0x696   :  { %v1461_v36 = vadd.f32 %v1457_v33, %v1431_v29 }
 0x698   :  { %v1465_v37 = vmul.f32 0.7978846, %v1461_v36 }
 0x699   :  { %1752 = vmatpush.bf16.msra.mxu3 %v4888_v54  ;;  %1793 = vmatpush.bf16.msrb.mxu2 %v4910_v2  ;;  %v4931_v2 = vld [vmem:[#allocation12 + $0x64] sm:$0xf0] }
 0x69a   :  { %5187 = vtanh.f32 %v1465_v37  ;;  %v5149_v37 = vld [vmem:[%s5950_s12] ss:$0 sm:$0xff] }
 0x69d   :  { %1753 = vmatpush.bf16.msra.mxu3 %v4887_v59 }
 0x6a0   :  { %v5188_v57 = vpop.eup %5187 }
 0x6a1   :  { %v1473_v38 = vadd.f32 1.0, %v5188_v57  ;;  %1754 = vmatpush.bf16.msra.mxu3 %v4886_v61  ;;  %v5150_v57 = vld [vmem:[%s5954_s16] ss:$0 sm:$0xff]  ;;  %v4933_v61 = vld [vmem:[#allocation12 + $0x74] sm:$0xf0] }
 0x6a3   :  { %v1477_v39 = vmul.f32 0.5, %v1473_v38 }
 0x6a5   :  { %v1481_v40 = vmul.f32 %v1477_v39, %v1431_v29 }
 0x6a7   :  { %v1485_v35 = vpack.c.bf16 %v1481_v40, %v1481_v40 }
 0x6a9   :  { %1781 = vmatmul.bf16.vlgmr.msrb.gmra.mxu1 %v1485_v35 }
 0x6f9   :  { %v1047_v55 = vpop.f32.mrf.mxu3 }
 0x6fa   :  { %v1051_v56 = vadd.f32 %v1047_v55, %v5699_v8 }
 0x6ff   :  { %v1169_v62 = vpop.f32.mrf.mxu2 }
 0x700   :  { %v1173_v63 = vadd.f32 %v1169_v62, %v1051_v56  ;;  %v4932_v62 = vld [vmem:[#allocation12 + $0x74] sm:$0xf] }
 0x701   :  { %v1049_v44 = vpop.f32.mrf.mxu3 }
 0x702   :  { %v1178_v39 = vadd.f32 %v5149_v37, %v1173_v63  ;;  %v4254_v63 = vld [vmem:[#allocation12 + $0x78] sm:$0xf0]  ;;  %v4244_v44 = vld [vmem:[#allocation12 + $0x60] sm:$0xf] }
 0x703   :  { %v4257_v0 = vor.u32 %v4932_v62, %v4254_v63 }
 0x704   :  { %v1800_v42 = vrot.slane %v1178_v39, 2  ;;  %v4919_v39 = vld [vmem:[#allocation12 + $0x4] sm:$0xf0] }
 0x705   :  { %1958 = vmatpush.bf16.msra.mxu0 %v4257_v0 }
 0x706   :  { %v1802_v48 = vadd.f32 %v1800_v42, %v5537_v30  ;;  %v4253_v30 = vor.u32 %v4933_v61, %v4252_v60  ;;  %v4198_v42 = vld [vmem:[#allocation12 + $0x8] sm:$0xf0]  ;;  %v5152_v61 = vld [vmem:[%s5946_s8] ss:$0 sm:$0xff] }
 0x707   :  { %v1171_v4 = vpop.f32.mrf.mxu2 }
 0x708   :  { %1945 = vmatpush.bf16.msrb.mxu3 %v4253_v30  ;;  %v4245_v4 = vor.u32 %v4931_v2, %v4244_v44  ;;  %v1856_v44 = vld [vmem:[%s5956_s18] sm:$0x3] }
 0x709   :  { %v1404_v8 = vpop.f32.mrf.mxu3 }
 0x70a   :  { %v1405_v5 = vadd.f32 %v1404_v8, %v1224_v3  ;;  %v4930_v3 = vld [vmem:[#allocation12 + $0x64] sm:$0xf]  ;;  %v4246_v8 = vld [vmem:[#allocation12 + $0x68] sm:$0xf0] }
 0x70c   :  { %v1447_v6 = vmul.f32 %v1405_v5, %v1405_v5  ;;  %1946 = vmatpush.bf16.msrb.mxu3 %v4245_v4  ;;  %v1858_v4 = vperm.slane %v1856_v44, 0 }
 0x70e   :  { %v1451_v1 = vmul.f32 %v1447_v6, %v1405_v5  ;;  %v4236_v6 = vld [vmem:[#allocation12 + $0x50] sm:$0xf] }
 0x70f   :  { %v1443_v9 = vpop.f32.mrf.mxu2 }
 0x710   :  { %v1455_v10 = vmul.f32 0.044715, %v1451_v1  ;;  %v1444_v50 = vadd.f32 %v1443_v9, %v1227_v7  ;;  %v4929_v7 = vld [vmem:[#allocation12 + $0x54] sm:$0xf0]  ;;  %v4928_v1 = vld [vmem:[#allocation12 + $0x54] sm:$0xf] }
 0x711   :  { %v1406_v11 = vpop.f32.mrf.mxu3  ;;  %v4237_v9 = vor.u32 %v4929_v7, %v4236_v6 }
 0x712   :  { %v1459_v12 = vadd.f32 %v1455_v10, %v1405_v5  ;;  %v1450_v14 = vmul.f32 %v1444_v50, %v1444_v50  ;;  %v4238_v10 = vld [vmem:[#allocation12 + $0x58] sm:$0xf0]  ;;  %v4228_v11 = vld [vmem:[#allocation12 + $0x40] sm:$0xf] }
 0x713   :  { %1947 = vmatpush.bf16.msrb.mxu3 %v4237_v9 }
 0x714   :  { %v1463_v15 = vmul.f32 0.7978846, %v1459_v12  ;;  %v1454_v16 = vmul.f32 %v1450_v14, %v1444_v50  ;;  %v4927_v12 = vld [vmem:[#allocation12 + $0x44] sm:$0xf0]  ;;  %v4926_v14 = vld [vmem:[#allocation12 + $0x44] sm:$0xf] }
 0x716   :  { %5189 = vtanh.f32 %v1463_v15  ;;  %v1458_v17 = vmul.f32 0.044715, %v1454_v16  ;;  %v4229_v15 = vor.u32 %v4927_v12, %v4228_v11  ;;  %v4230_v16 = vld [vmem:[#allocation12 + $0x48] sm:$0xf0] }
 0x717   :  { %v1445_v18 = vpop.f32.mrf.mxu2 }
 0x718   :  { %v1462_v19 = vadd.f32 %v1458_v17, %v1444_v50  ;;  %v4233_v17 = vor.u32 %v4926_v14, %v4230_v16  ;;  %1948 = vmatpush.bf16.msrb.mxu3 %v4229_v15  ;;  %v4220_v18 = vld [vmem:[#allocation12 + $0x30] sm:$0xf] }
 0x71a   :  { %v1466_v20 = vmul.f32 0.7978846, %v1462_v19  ;;  %v4925_v19 = vld [vmem:[#allocation12 + $0x34] sm:$0xf0] }
 0x71c   :  { %v5190_v25 = vpop.eup %5189  ;;  %5191 = vtanh.f32 %v1466_v20  ;;  %v4924_v20 = vld [vmem:[#allocation12 + $0x34] sm:$0xf] }
 0x71d   :  { %v1471_v26 = vadd.f32 1.0, %v5190_v25  ;;  %v4221_v25 = vor.u32 %v4925_v19, %v4220_v18  ;;  %v4941_v19 = vld [vmem:[#allocation4 + $0x38] sm:$0xff] }
 0x71e   :  { %2137 = vmatpush.bf16.msra.mxu1 %v4941_v19  ;;  %v4967_v19 = vld [vmem:[#allocation6 + $0x88] sm:$0xf0] }
 0x71f   :  { %v1475_v27 = vmul.f32 0.5, %v1471_v26  ;;  %v4222_v26 = vld [vmem:[#allocation12 + $0x38] sm:$0xf0]  ;;  %1949 = vmatpush.bf16.msrb.mxu3 %v4221_v25  ;;  %v4940_v25 = vld [vmem:[#allocation4 + $0x30] sm:$0xff] }
 0x721   :  { %v1479_v13 = vmul.f32 %v1475_v27, %v1405_v5  ;;  %v4249_v5 = vor.u32 %v4930_v3, %v4246_v8  ;;  %v4225_v27 = vor.u32 %v4924_v20, %v4222_v26  ;;  %v1859_v3 = vperm.slane %v1856_v44, 1  ;;  %v4949_v20 = vld [vmem:[#allocation4 + $0x78] sm:$0xff]  ;;  %v4948_v26 = vld [vmem:[#allocation4 + $0x70] sm:$0xff] }
 0x722   :  { %v5192_v49 = vpop.eup %5191  ;;  %2150 = vmatpush.bf16.msra.mxu2 %v4949_v20  ;;  %2138 = vmatpush.bf16.msra.mxu1 %v4940_v25 }
 0x723   :  { %v1483_v28 = vpack.c.bf16 %v1479_v13, %v1479_v13  ;;  %v1474_v29 = vadd.f32 1.0, %v5192_v49  ;;  %1959 = vmatpush.bf16.msra.mxu0 %v4249_v5  ;;  %v4212_v13 = vld [vmem:[#allocation12 + $0x20] sm:$0xf]  ;;  %v4923_v49 = vld [vmem:[#allocation12 + $0x24] sm:$0xf0] }
 0x725   :  { %1755 = vmatmul.bf16.vlgmr.msra.gmra.mxu3 %v1483_v28  ;;  %v1478_v32 = vmul.f32 0.5, %v1474_v29  ;;  %v4922_v28 = vld [vmem:[#allocation12 + $0x24] sm:$0xf]  ;;  %v4213_v29 = vor.u32 %v4923_v49, %v4212_v13  ;;  %v4947_v13 = vld [vmem:[#allocation4 + $0x68] sm:$0xff] }
 0x726   :  { %v1782_v31 = vpop.f32.mrf.mxu1  ;;  %2151 = vmatpush.bf16.msra.mxu2 %v4948_v26  ;;  %v4938_v49 = vld [vmem:[#allocation4 + $0x20] sm:$0xff] }
 0x727   :  { %v1482_v33 = vmul.f32 %v1478_v32, %v1444_v50  ;;  %v4241_v50 = vor.u32 %v4928_v1, %v4238_v10  ;;  %1950 = vmatpush.bf16.msrb.mxu3 %v4213_v29  ;;  %v4937_v29 = vld [vmem:[#allocation4 + $0x18] sm:$0xff]  ;;  %v4378_v26 = vld [vmem:[#allocation6 + $0x60] sm:$0xf] }
 0x729   :  { %v1486_v34 = vpack.c.bf16 %v1482_v33, %v1482_v33  ;;  %1960 = vmatpush.bf16.msra.mxu0 %v4241_v50  ;;  %v4204_v33 = vld [vmem:[#allocation12 + $0x10] sm:$0xf] }
 0x72a   :  { %2152 = vmatpush.bf16.msra.mxu2 %v4947_v13  ;;  %v4962_v13 = vld [vmem:[#allocation6 + $0x64] sm:$0xf] }
 0x72b   :  { %1794 = vmatmul.bf16.vlgmr.msrb.gmra.mxu2 %v1486_v34  ;;  %v4921_v34 = vld [vmem:[#allocation12 + $0x14] sm:$0xf0] }
 0x72c   :  { %v4205_v37 = vor.u32 %v4921_v34, %v4204_v33  ;;  %v4944_v33 = vld [vmem:[#allocation4 + $0x50] sm:$0xff]  ;;  %v4935_v34 = vld [vmem:[#allocation4 + $0x8] sm:$0xff] }
 0x72d   :  { %1961 = vmatpush.bf16.msra.mxu0 %v4233_v17 }
 0x72e   :  { %v1784_v36 = vpop.f32.mrf.mxu1  ;;  %1951 = vmatpush.bf16.msrb.mxu3 %v4205_v37 }
 0x72f   :  { %v4920_v36 = vld [vmem:[#allocation12 + $0x14] sm:$0xf] }
 0x731   :  { %1962 = vmatpush.bf16.msra.mxu0 %v4225_v27  ;;  %v4939_v27 = vld [vmem:[#allocation4 + $0x28] sm:$0xff] }
 0x732   :  { %2139 = vmatpush.bf16.msra.mxu1 %v4939_v27  ;;  %v4963_v27 = vld [vmem:[#allocation6 + $0x68] sm:$0xf0] }
 0x736   :  { %2140 = vmatpush.bf16.msra.mxu1 %v4938_v49  ;;  %v4379_v49 = vor.u32 %v4963_v27, %v4378_v26 }
 0x73a   :  { %2141 = vmatpush.bf16.msra.mxu1 %v4937_v29  ;;  %v4386_v29 = vld [vmem:[#allocation6 + $0x68] sm:$0xf] }
 0x7a8   :  { %v1756_v38 = vpop.f32.mrf.mxu3 }
 0x7a9   :  { %v1757_v40 = vadd.f32 %v5150_v57, %v1756_v38  ;;  %v4206_v57 = vld [vmem:[#allocation12 + $0x18] sm:$0xf0]  ;;  %v4196_v38 = vld [vmem:[#allocation12] sm:$0xf] }
 0x7ab   :  { %v1770_v35 = vadd.f32 %v5644_v51, %v1757_v40  ;;  %v4209_v40 = vor.u32 %v4920_v36, %v4206_v57  ;;  %v4943_v36 = vld [vmem:[#allocation4 + $0x48] sm:$0xff] }
 0x7ad   :  { %v1783_v43 = vadd.f32 %v1782_v31, %v1770_v35  ;;  %v4214_v31 = vld [vmem:[#allocation12 + $0x28] sm:$0xf0]  ;;  %v4918_v35 = vld [vmem:[#allocation12 + $0x4] sm:$0xf] }
 0x7ae   :  { %v1795_v45 = vpop.f32.mrf.mxu2  ;;  %v4217_v32 = vor.u32 %v4922_v28, %v4214_v31  ;;  %v4946_v28 = vld [vmem:[#allocation4 + $0x60] sm:$0xff]  ;;  %v4945_v31 = vld [vmem:[#allocation4 + $0x58] sm:$0xff] }
 0x7af   :  { %v1796_v23 = vadd.f32 %v1795_v45, %v1783_v43  ;;  %v4197_v43 = vor.u32 %v4919_v39, %v4196_v38  ;;  %v4201_v45 = vor.u32 %v4918_v35, %v4198_v42  ;;  %2153 = vmatpush.bf16.msra.mxu2 %v4946_v28  ;;  %v4942_v35 = vld [vmem:[#allocation4 + $0x40] sm:$0xff]  ;;  %v5741_v42 = vld [vmem:[#allocation2 + $0x8] sm:$0xff]  ;;  %v4380_v28 = vld [vmem:[#allocation6 + $0x6c] sm:$0xf0] }
 0x7b0   :  { %v1758_v46 = vpop.f32.mrf.mxu3  ;;  %1963 = vmatpush.bf16.msra.mxu0 %v4217_v32  ;;  %v4936_v32 = vld [vmem:[#allocation4 + $0x10] sm:$0xff] }
 0x7b1   :  { %v1804_v47 = vrot.slane %v1796_v23, 2  ;;  %1952 = vmatpush.bf16.msrb.mxu3 %v4197_v43  ;;  %2142 = vmatpush.bf16.msra.mxu1 %v4936_v32  ;;  %v4383_v32 = vor.u32 %v4962_v13, %v4380_v28 }
 0x7b3   :  { %v1806_v52 = vadd.f32 %v1804_v47, %v1802_v48  ;;  %2154 = vmatpush.bf16.msra.mxu2 %v4945_v31  ;;  %v4964_v31 = vld [vmem:[#allocation6 + $0x70] sm:$0xf0] }
 0x7b4   :  { %1964 = vmatpush.bf16.msra.mxu0 %v4209_v40  ;;  %v4934_v40 = vld [vmem:[#allocation4] sm:$0xff] }
 0x7b5   :  { %v1807_v53 = vsel %vm572_vm6, %v1806_v52, 0.0  ;;  %2143 = vmatpush.bf16.msra.mxu1 %v4935_v34  ;;  %v4366_v34 = vld [vmem:[#allocation6 + $0x48] sm:$0xf] }
 0x7b6   :  { %v1797_v54 = vpop.f32.mrf.mxu2  ;;  %1808 = vadd.xlane.f32.xlu1 %v1807_v53 }
 0x7b7   :  { %2155 = vmatpush.bf16.msra.mxu2 %v4944_v33  ;;  %v4387_v33 = vor.u32 %v4964_v31, %v4386_v29 }
 0x7b8   :  { %1965 = vmatpush.bf16.msra.mxu0 %v4201_v45 }
 0x7b9   :  { %2144 = vmatpush.bf16.msra.mxu1 %v4934_v40  ;;  %v4961_v40 = vld [vmem:[#allocation6 + $0x58] sm:$0xf0] }
 0x7bb   :  { %2156 = vmatpush.bf16.msra.mxu2 %v4943_v36  ;;  %v4960_v36 = vld [vmem:[#allocation6 + $0x50] sm:$0xf0] }
 0x7bf   :  { %2157 = vmatpush.bf16.msra.mxu2 %v4942_v35 }
 0x7c3   :  { %4425 = vmatpush.xpose.msk.msrb.mxu2 %vm699_vm1, %v5741_v42 }
 0x829   :  { %v1809_v55 = vpop.xlane.xlu1 %1808 }
 0x82a   :  { %v1810_v56 = vmul.f32 %v1809_v55, %v5542_v41 }
 0x82c   :  { %v5719_v58 = vsub.f32 %v1806_v52, %v1810_v56 }
 0x82e   :  { %v1812_v51 = vmul.f32 %v5719_v58, %v5719_v58 }
 0x830   :  { %v1813_v59 = vsel %vm572_vm6, %v1812_v51, 0.0  ;;  %v5151_v51 = vld [vmem:[%s5945_s7] ss:$0 sm:$0xff]  ;;  %vm1971_vm6 = vcmask 1041408  }
 0x831   :  { %1814 = vadd.xlane.f32.xlu1 %v1813_v59 }
 0x8a4   :  { %v1815_v23 = vpop.xlane.xlu1 %1814 }
 0x8a5   :  { %v1816_v46 = vmul.f32 %v1815_v23, %v5542_v41 }
 0x8a7   :  { %v1817_v47 = vadd.f32 1e-05, %v1816_v46 }
 0x8a9   :  { %5193 = vrsqrt.f32 %v1817_v47  ;;  %vm1824_vm4 = vweird.f32 %v1817_v47 }
 0x8af   :  { %v5194_v48 = vpop.eup %5193 }
 0x8b0   :  { %v1819_v52 = vmul.f32 %v5194_v48, %v1817_v47  ;;  %vm1825_vm3 = vweird.f32 %v5194_v48 }
 0x8b1   :  { %vm1826_vm5 = vmor %vm1824_vm4, %vm1825_vm3 }
 0x8b2   :  { %v1820_v53 = vmul.f32 %v5194_v48, %v1819_v52 }
 0x8b4   :  { %v1821_v54 = vmul.f32 0.5, %v1820_v53 }
 0x8b6   :  { %v1822_v55 = vsub.f32 1.5, %v1821_v54 }
 0x8b8   :  { %v1823_v56 = vmul.f32 %v5194_v48, %v1822_v55 }
 0x8ba   :  { %v1827_v59 = vsel %vm1826_vm5, %v5194_v48, %v1823_v56 }
 0x8bb   :  { %v1828_v60 = vmul.f32 %v1827_v59, %v5719_v58  ;;  %v4972_v59 = vld [vmem:[#allocation6 + $0xb0] sm:$0xf0] }
 0x8bd   :  { %v1833_v62 = vmul.f32 %v5151_v51, %v1828_v60  ;;  %v4414_v51 = vld [vmem:[#allocation6 + $0xa8] sm:$0xf]  ;;  %v4971_v60 = vld [vmem:[#allocation6 + $0xac] sm:$0xf] }
 0x8bf   :  { %v1838_v30 = vadd.f32 %v5152_v61, %v1833_v62  ;;  %v4415_v61 = vor.u32 %v4972_v59, %v4414_v51  ;;  %v4416_v62 = vld [vmem:[#allocation6 + $0xb4] sm:$0xf0]  ;;  %v4954_v59 = vld [vmem:[#allocation6 + $0x20] sm:$0xf0] }
 0x8c0   :  { %v4342_v51 = vld [vmem:[#allocation6 + $0x18] sm:$0xf] }
 0x8c1   :  { %v1839_v63 = vpack.c.bf16 %v1838_v30, %v1838_v30  ;;  %v4422_v30 = vld [vmem:[#allocation6 + $0xb0] sm:$0xf]  ;;  %2364 = vmatpush.bf16.msra.mxu3 %v4415_v61  ;;  %v4343_v61 = vor.u32 %v4954_v59, %v4342_v51 }
 0x8c3   :  { %v1863_v0 = vrot.slane %v1839_v63, 3  ;;  %v4419_v63 = vor.u32 %v4971_v60, %v4416_v62  ;;  %v4953_v60 = vld [vmem:[#allocation6 + $0x1c] sm:$0xf]  ;;  %v4344_v62 = vld [vmem:[#allocation6 + $0x24] sm:$0xf0] }
 0x8c5   :  { %1953 = vmatmul.bf16.vlgmr.msrb.gmra.mxu3 %v1863_v0  ;;  %1966 = vmatmul.bf16.vlgmr.msra.gmra.mxu0 %v1863_v0 }
 0x8c6   :  { %2377 = vmatpush.bf16.msrb.mxu0 %v4419_v63  ;;  %v4347_v63 = vor.u32 %v4953_v60, %v4344_v62 }
 0x942   :  { %v1967_v2 = vpop.f32.mrf.mxu0 }
 0x943   :  { %v1968_v8 = vadd.f32 %v1967_v2, %v1859_v3 }
 0x945   :  { %v1973_v1 = vsel %vm1971_vm6, %v1968_v8, -inf }
 0x948   :  { %v1954_v5 = vpop.f32.mrf.mxu3 }
 0x949   :  { %v1955_v58 = vadd.f32 %v1954_v5, %v1858_v4  ;;  %v4402_v5 = vld [vmem:[#allocation6 + $0x90] sm:$0xf] }
 0x94a   :  { %v1969_v6 = vpop.f32.mrf.mxu0 }
 0x94b   :  { %v1972_v7 = vsel %vm1971_vm6, %v1955_v58, -inf  ;;  %v4968_v6 = vld [vmem:[#allocation6 + $0x94] sm:$0xf] }
 0x94c   :  { %v1974_v9 = vmax.f32 %v1972_v7, %v1973_v1  ;;  %v4404_v1 = vld [vmem:[#allocation6 + $0x9c] sm:$0xf0] }
 0x94e   :  { %1975 = vmax.xlane.f32.xlu1 %v1974_v9  ;;  %v4410_v9 = vld [vmem:[#allocation6 + $0x98] sm:$0xf] }
 0x950   :  { %v1956_v10 = vpop.f32.mrf.mxu3 }
 0x951   :  { %v4970_v10 = vld [vmem:[#allocation6 + $0xa0] sm:$0xf0] }
 0x9c1   :  { %v1976_v50 = vpop.xlane.xlu1 %1975 }
 0x9c2   :  { %vm1977_vm7 = vcmp.eq.f32.partialorder %v1955_v58, %v1976_v50  ;;  %vm1978_vm8 = vcmp.eq.f32.partialorder %v1968_v8, %v1976_v50  ;;  %v4969_v58 = vld [vmem:[#allocation6 + $0x98] sm:$0xf0]  ;;  %v4407_v50 = vor.u32 %v4968_v6, %v4404_v1  ;;  %v4952_v6 = vld [vmem:[#allocation6 + $0x10] sm:$0xf0] }
 0x9c3   :  { %v1979_v11 = vsel %vm1977_vm7, %v5526_v21, 256  ;;  %v1980_v12 = vsel %vm1978_vm8, %v5529_v22, 256  ;;  %v4403_v7 = vor.u32 %v4969_v58, %v4402_v5  ;;  %v4332_v5 = vld [vmem:[#allocation6 + $0xc] sm:$0xf0]  ;;  %v4338_v58 = vld [vmem:[#allocation6 + $0x8] sm:$0xf] }
 0x9c4   :  { %v1981_v14 = vsel %vm1971_vm6, %v1979_v11, 2147483647  ;;  %v1982_v15 = vsel %vm1971_vm6, %v1980_v12, 2147483647  ;;  %v4411_v11 = vor.u32 %v4970_v10, %v4410_v9  ;;  %2378 = vmatpush.bf16.msrb.mxu0 %v4407_v50  ;;  %v4390_v12 = vld [vmem:[#allocation6 + $0x78] sm:$0xf]  ;;  %v4339_v1 = vor.u32 %v4952_v6, %v4338_v58 }
 0x9c5   :  { %vm1983_vm9 = vcmp.lt.s32.totalorder %v1981_v14, %v1982_v15  ;;  %2365 = vmatpush.bf16.msra.mxu3 %v4403_v7 }
 0x9c6   :  { %v1984_v16 = vsel %vm1983_vm9, %v1981_v14, %v1982_v15  ;;  %v4966_v14 = vld [vmem:[#allocation6 + $0x80] sm:$0xf0]  ;;  %v4965_v15 = vld [vmem:[#allocation6 + $0x7c] sm:$0xf] }
 0x9c7   :  { %v1986_v17 = vshra.s32 %v1984_v16, 16  ;;  %v1985_v37 = vand.u32 65535, %v1984_v16  ;;  %v4391_v16 = vor.u32 %v4966_v14, %v4390_v12 }
 0x9c9   :  { %v1988_v18 = vcvt.s32.f32 %v1986_v17  ;;  %v1987_v38 = vcvt.s32.f32 %v1985_v37  ;;  %v4392_v17 = vld [vmem:[#allocation6 + $0x84] sm:$0xf0]  ;;  %2366 = vmatpush.bf16.msra.mxu3 %v4391_v16  ;;  %v4959_v37 = vld [vmem:[#allocation6 + $0x4c] sm:$0xf] }
 0x9ca   :  { %v4395_v20 = vor.u32 %v4965_v15, %v4392_v17 }
 0x9cb   :  { %1989 = vmin.xlane.f32.xlu0 %v1988_v18 }
 0x9cc   :  { %2379 = vmatpush.bf16.msrb.mxu0 %v4395_v20 }
 0x9cd   :  { %2367 = vmatpush.bf16.msra.mxu3 %v4379_v49  ;;  %v2228_v49 = vld [vmem:[%s5948_s10] sm:$0x7] }
 0x9ce   :  { %v2231_v28 = vperm.slane %v2228_v49, 1  ;;  %v2232_v29 = vperm.slane %v2228_v49, 2 }
 0x9d0   :  { %2380 = vmatpush.bf16.msrb.mxu0 %v4383_v32 }
 0xa3e   :  { %v1990_v57 = vpop.xlane.xlu0 %1989 }
 0xa3f   :  { %vm1991_vm10 = vcmp.eq.f32.partialorder %v1988_v18, %v1990_v57  ;;  %v1996_v43 = vcvt.f32.s32 %v1990_v57  ;;  %v4398_v18 = vld [vmem:[#allocation6 + $0x80] sm:$0xf]  ;;  %v4367_v57 = vor.u32 %v4960_v36, %v4366_v34  ;;  %v2230_v34 = vperm.slane %v2228_v49, 0  ;;  %v4977_v49 = vld [vmem:[#allocation8 + $0x18] sm:$0xff] }
 0xa40   :  { %v1992_v39 = vsel %vm1991_vm10, %v1987_v38, inf  ;;  %v4399_v25 = vor.u32 %v4967_v19, %v4398_v18  ;;  %v4368_v38 = vld [vmem:[#allocation6 + $0x54] sm:$0xf0]  ;;  %v5153_v18 = vld [vmem:[%s5969_s23] ss:$0 sm:$0xff] }
 0xa41   :  { %1993 = vmin.xlane.f32.xlu1 %v1992_v39  ;;  %v1997_v23 = vshll.u32 %v1996_v43, 16  ;;  %v4374_v39 = vld [vmem:[#allocation6 + $0x50] sm:$0xf]  ;;  %v4371_v35 = vor.u32 %v4959_v37, %v4368_v38  ;;  %2368 = vmatpush.bf16.msra.mxu3 %v4367_v57 }
 0xa42   :  { %v4375_v43 = vor.u32 %v4961_v40, %v4374_v39  ;;  %v2410_v40 = vld [vmem:[#allocation3 + $0x18] sm:$0xff] }
 0xa43   :  { %2381 = vmatpush.bf16.msrb.mxu0 %v4371_v35 }
 0xab4   :  { %v1994_v45 = vpop.xlane.xlu1 %1993 }
 0xab5   :  { %v1995_v46 = vcvt.f32.s32 %v1994_v45  ;;  %v4354_v45 = vld [vmem:[#allocation6 + $0x30] sm:$0xf] }
 0xab7   :  { %v1998_v47 = vadd.s32 %v1997_v23, %v1995_v46  ;;  %v4957_v23 = vld [vmem:[#allocation6 + $0x38] sm:$0xf0]  ;;  %v4956_v46 = vld [vmem:[#allocation6 + $0x34] sm:$0xf] }
 0xab9   :  { %2000 = vst.msk [vmem:[%s5971_s13] sm:$0x3] %vm1999_vm11, %v1998_v47  ;;  %vm2001_vm12 = vcmp.eq.s32.totalorder %v1998_v47, %v5526_v21  ;;  %vm2002_vm13 = vcmp.eq.s32.totalorder %v1998_v47, %v5529_v22  ;;  %v4355_v47 = vor.u32 %v4957_v23, %v4354_v45  ;;  %v2409_v45 = vld [vmem:[#allocation3] sm:$0xff] }
 0xaba   :  { %vm4324_vm14 = vmpackc.low %vm2001_vm12, %vm2001_vm12  ;;  %v5787_v23 = vpack.i.bf16 %v2409_v45, %v2410_v40 }
 0xabb   :  { %4325 = vmatmul.msk.bf16.vlgmr.msra.gmra.mxu1 %vm4324_vm14, %v5391_v24  ;;  %vm4326_vm15 = vmpackc.low %vm2002_vm13, %vm2002_vm13  ;;  %2369 = vmatpush.bf16.msra.mxu3 %v4355_v47 }
 0xabc   :  { %4327 = vmatmul.msk.bf16.vlgmr.msra.gmra.mxu2 %vm4326_vm15, %v5391_v24  ;;  %v4973_v24 = vld [vmem:[#allocation6 + $0xb8] sm:$0xf0] }
 0xabd   :  { %v4423_v0 = vor.u32 %v4973_v24, %v4422_v30  ;;  %v4350_v30 = vld [vmem:[#allocation6 + $0x20] sm:$0xf]  ;;  %v4955_v24 = vld [vmem:[#allocation6 + $0x28] sm:$0xf0] }
 0xabf   :  { %2390 = vmatpush.bf16.msrb.mxu1 %v4423_v0  ;;  %v4351_v0 = vor.u32 %v4955_v24, %v4350_v30  ;;  %2370 = vmatpush.bf16.msra.mxu3 %v4343_v61 }
 0xac3   :  { %2391 = vmatpush.bf16.msrb.mxu1 %v4411_v11 }
 0xac7   :  { %2392 = vmatpush.bf16.msrb.mxu1 %v4399_v25  ;;  %v5154_v25 = vld [vmem:[%s5942_s4] ss:$0 sm:$0xff] }
 0xacb   :  { %2393 = vmatpush.bf16.msrb.mxu1 %v4387_v33 }
 0xacf   :  { %2394 = vmatpush.bf16.msrb.mxu1 %v4375_v43  ;;  %v2406_v43 = vld [vmem:[#allocation2] sm:$0xff] }
 0xb38   :  { %v2146_v48 = vpop.f32.mrf.mxu1 }
 0xb3f   :  { %v2159_v52 = vpop.f32.mrf.mxu2 }
 0xb40   :  { %v5753_v53 = vadd.f32 %v2159_v52, %v2146_v48  ;;  %v2148_v54 = vpop.f32.mrf.mxu1  ;;  %v4356_v48 = vld [vmem:[#allocation6 + $0x3c] sm:$0xf0]  ;;  %v4362_v52 = vld [vmem:[#allocation6 + $0x38] sm:$0xf] }
 0xb41   :  { %v4958_v54 = vld [vmem:[#allocation6 + $0x40] sm:$0xf0] }
 0xb42   :  { %v2163_v55 = vsel %vm1971_vm6, %v5753_v53, 0.0 }
 0xb43   :  { %2164 = vadd.xlane.f32.xlu2 %v2163_v55  ;;  %v4359_v55 = vor.u32 %v4956_v46, %v4356_v48  ;;  %v2405_v46 = vld [vmem:[#allocation2 + $0x10] sm:$0xff] }
 0xb45   :  { %2382 = vmatpush.bf16.msrb.mxu0 %v4359_v55 }
 0xb47   :  { %v2161_v56 = vpop.f32.mrf.mxu2 }
 0xb48   :  { %v4363_v56 = vor.u32 %v4958_v54, %v4362_v52 }
 0xb49   :  { %2383 = vmatpush.bf16.msrb.mxu0 %v4347_v63  ;;  %v5816_v63 = vld [vmem:[%s5970_s26 + $0x2] sm:$0x3] }
 0xb4a   :  { %2395 = vmatpush.bf16.msrb.mxu1 %v4363_v56 }
 0xb4e   :  { %2396 = vmatpush.bf16.msrb.mxu1 %v4351_v0 }
 0xb52   :  { %2397 = vmatpush.bf16.msrb.mxu1 %v4339_v1 }
 0xb5b   :  { %2499 = vrot.lane.b32.xlu2 %v5741_v42, %s5394_s25 }
 0xbb6   :  { %v2165_v44 = vpop.xlane.xlu2 %2164 }
 0xbb7   :  { %v2166_v2 = vmul.f32 %v2165_v44, %v5542_v41  ;;  %v4330_v44 = vld [vmem:[#allocation6] sm:$0xf] }
 0xbb9   :  { %v5761_v3 = vsub.f32 %v5753_v53, %v2166_v2  ;;  %v4951_v2 = vld [vmem:[#allocation6 + $0x8] sm:$0xf0] }
 0xbbb   :  { %v2168_v4 = vmul.f32 %v5761_v3, %v5761_v3 }
 0xbbd   :  { %v2169_v8 = vsel %vm1971_vm6, %v2168_v4, 0.0  ;;  %v4950_v4 = vld [vmem:[#allocation6 + $0x4] sm:$0xf] }
 0xbbe   :  { %2170 = vadd.xlane.f32.xlu0 %v2169_v8  ;;  %v4331_v8 = vor.u32 %v4951_v2, %v4330_v44  ;;  %v4335_v7 = vor.u32 %v4950_v4, %v4332_v5  ;;  %v2500_v52 = vpop.permute.xlu2 %2499 }
 0xbc0   :  { %2371 = vmatpush.bf16.msra.mxu3 %v4331_v8  ;;  %2384 = vmatpush.bf16.msrb.mxu0 %v4335_v7 }
 0xbc4   :  { %2609 = vmatpush.bf16.msra.mxu0 %v4977_v49  ;;  %v5155_v49 = vld [vmem:[%s5943_s5] ss:$0 sm:$0xff] }
 0xc31   :  { %v2171_v9 = vpop.xlane.xlu0 %2170 }
 0xc32   :  { %v2172_v10 = vmul.f32 %v2171_v9, %v5542_v41 }
 0xc34   :  { %v2173_v50 = vadd.f32 1e-05, %v2172_v10 }
 0xc36   :  { %5195 = vrsqrt.f32 %v2173_v50  ;;  %vm2180_vm3 = vweird.f32 %v2173_v50 }
 0xc3c   :  { %v5196_v11 = vpop.eup %5195 }
 0xc3d   :  { %v2175_v12 = vmul.f32 %v5196_v11, %v2173_v50  ;;  %vm2181_vm0 = vweird.f32 %v5196_v11 }
 0xc3e   :  { %vm2182_vm4 = vmor %vm2180_vm3, %vm2181_vm0 }
 0xc3f   :  { %v2176_v14 = vmul.f32 %v5196_v11, %v2175_v12 }
 0xc41   :  { %v2177_v15 = vmul.f32 0.5, %v2176_v14 }
 0xc43   :  { %v2178_v16 = vsub.f32 1.5, %v2177_v15 }
 0xc45   :  { %v2179_v17 = vmul.f32 %v5196_v11, %v2178_v16 }
 0xc47   :  { %v2183_v19 = vsel %vm2182_vm4, %v5196_v11, %v2179_v17 }
 0xc48   :  { %v5771_v20 = vmul.f32 %v2183_v19, %v5761_v3 }
 0xc4a   :  { %v2189_v26 = vmul.f32 %v5153_v18, %v5771_v20 }
 0xc4c   :  { %v2194_v27 = vadd.f32 %v5154_v25, %v2189_v26 }
 0xc4e   :  { %v2195_v13 = vpack.c.bf16 %v2194_v27, %v2194_v27 }
 0xc50   :  { %2372 = vmatmul.bf16.vlgmr.msra.gmra.mxu3 %v2195_v13  ;;  %2385 = vmatmul.bf16.vlgmr.msrb.gmra.mxu0 %v2195_v13 }
 0xc51   :  { %2398 = vmatmul.bf16.vlgmr.msrb.gmra.mxu1 %v2195_v13  ;;  %v4975_v13 = vld [vmem:[#allocation8 + $0x8] sm:$0xff] }
 0xc52   :  { %2637 = vmatpush.bf16.msra.mxu1 %v4975_v13  ;;  %v4505_v13 = vld [vmem:[#allocation9 + $0x30] sm:$0xf0] }
 0xccd   :  { %v2386_v31 = vpop.f32.mrf.mxu0 }
 0xcce   :  { %v2387_v3 = vadd.f32 %v2386_v31, %v2231_v28  ;;  %v2399_v32 = vpop.f32.mrf.mxu1  ;;  %v4974_v28 = vld [vmem:[#allocation8] sm:$0xff] }
 0xccf   :  { %v2400_v33 = vadd.f32 %v2399_v32, %v2232_v29  ;;  %v4976_v29 = vld [vmem:[#allocation8 + $0x10] sm:$0xff]  ;;  %2638 = vmatpush.bf16.msra.mxu1 %v4974_v28 }
 0xcd0   :  { %2403 = vst [vmem:[#allocation2 + $0x18] sm:$0x3] %v2387_v3  ;;  %2610 = vmatpush.bf16.msra.mxu0 %v4976_v29  ;;  %v4982_v29 = vld [vmem:[#allocation9 + $0x4] sm:$0xf] }
 0xcd1   :  { %2404 = vst [vmem:[#allocation3 + $0x8] sm:$0x3] %v2400_v33 }
 0xcd3   :  { %v2373_v36 = vpop.f32.mrf.mxu3 }
 0xcd4   :  { %v5780_v37 = vadd.f32 %v2373_v36, %v2230_v34 }
 0xcd5   :  { %v2388_v57 = vpop.f32.mrf.mxu0 }
 0xcd6   :  { %v2401_v38 = vpop.f32.mrf.mxu1  ;;  %2491 = vrot.lane.b32.xlu2 %v5780_v37, %s5394_s25 }
 0xcd7   :  { %v2407_v39 = vld [vmem:[#allocation2 + $0x18] sm:$0xff] }
 0xcd8   :  { %2497 = vrot.lane.b32.xlu0 %v2407_v39, %s5394_s25  ;;  %4426 = vmatpush.xpose.msk.msrb.mxu2 %vm699_vm1, %v2407_v39  ;;  %v2411_v47 = vld [vmem:[#allocation3 + $0x8] sm:$0xff] }
 0xcd9   :  { %v5798_v48 = vpack.i.bf16 %v2411_v47, %v5741_v42 }
 0xcdb   :  { %v2375_v35 = vpop.f32.mrf.mxu3 }
 0xcdc   :  { %4427 = vmatpush.xpose.msk.msrb.mxu2 %vm699_vm1, %v2406_v43 }
 0xcde   :  { %5119 = vrot.lane.b32.xlu2 %v5787_v23, %s5394_s25 }
 0xce0   :  { %2493 = vrot.lane.b32.xlu0 %v2405_v46, %s5394_s25  ;;  %4428 = vmatpush.xpose.msk.msrb.mxu2 %vm699_vm1, %v2405_v46 }
 0xce3   :  { %4429 = vmatmul.msk.f32.vlgmr.msrb.gmra.mxu2 %vm699_vm1, %v5780_v37 }
 0xce4   :  { %2476 = vmatpush.msra.mxu2 %v5741_v42 }
 0xce6   :  { %2477 = vmatpush.msra.mxu2 %v2411_v47  ;;  %2650 = vrot.lane.b32.xlu2 %v2407_v39, %s5383_s20 }
 0xce8   :  { %2478 = vmatpush.msra.mxu2 %v2410_v40  ;;  %5114 = vrot.lane.b32.xlu0 %v5798_v48, %s5394_s25 }
 0xcea   :  { %2479 = vmatpush.msra.mxu2 %v2409_v45 }
 0xcec   :  { %4431 = vmatpush.xpose.msk.msrb.mxu2 %vm699_vm1, %v2500_v52 }
 0xcee   :  { %2648 = vrot.lane.b32.xlu2 %v2406_v43, %s5383_s20 }
 0xcf0   :  { %2652 = vrot.lane.b32.xlu0 %v5741_v42, %s5383_s20 }
 0xcf6   :  { %2646 = vrot.lane.b32.xlu2 %v2405_v46, %s5383_s20 }
 0xcfe   :  { %2644 = vrot.lane.b32.xlu2 %v5780_v37, %s5383_s20 }
 0xd06   :  { %2772 = vrot.lane.b32.xlu2 %v2407_v39, %s5395_s1 }
 0xd0e   :  { %2770 = vrot.lane.b32.xlu2 %v2406_v43, %s5395_s1 }
 0xd16   :  { %2768 = vrot.lane.b32.xlu2 %v2405_v46, %s5395_s1 }
 0xd30   :  { %v2492_v55 = vpop.permute.xlu2 %2491 }
 0xd38   :  { %v5120_v60 = vpop.permute.xlu2 %5119 }
 0xd39   :  { %v5121_v62 = vunpack.i.l.bf16 %v5120_v60  ;;  %v5122_v30 = vunpack.i.h.bf16 %v5120_v60 }
 0xd40   :  { %v2651_v6 = vpop.permute.xlu2 %2650 }
 0xd48   :  { %v2649_v7 = vpop.permute.xlu2 %2648 }
 0xd4a   :  { %v2498_v54 = vpop.permute.xlu0 %2497 }
 0xd4b   :  { %4432 = vmatpush.xpose.msk.msrb.mxu2 %vm699_vm1, %v2498_v54 }
 0xd50   :  { %v2647_v10 = vpop.permute.xlu2 %2646 }
 0xd52   :  { %v2494_v56 = vpop.permute.xlu0 %2493 }
 0xd58   :  { %v2645_v50 = vpop.permute.xlu2 %2644 }
 0xd5a   :  { %v5115_v51 = vpop.permute.xlu0 %5114 }
 0xd5b   :  { %v5116_v59 = vunpack.i.l.bf16 %v5115_v51  ;;  %v5117_v61 = vunpack.i.h.bf16 %v5115_v51 }
 0xd5d   :  { %2573 = vmatpush.msrb.mxu3 %v5116_v59 }
 0xd5f   :  { %2574 = vmatpush.msrb.mxu3 %v5117_v61  ;;  %v5010_v61 = vld [vmem:[#allocation9 + $0xe4] sm:$0xf] }
 0xd60   :  { %v2773_v27 = vpop.permute.xlu2 %2772 }
 0xd61   :  { %2575 = vmatpush.msrb.mxu3 %v5121_v62  ;;  %v4601_v62 = vld [vmem:[#allocation9 + $0xf0] sm:$0xf0] }
 0xd62   :  { %v2653_v9 = vpop.permute.xlu0 %2652 }
 0xd63   :  { %2576 = vmatpush.msrb.mxu3 %v5122_v30 }
 0xd66   :  { %v2447_v24 = vpop.f32.mrf.mxu2 }
 0xd67   :  { %v2450_v0 = vmul.f32 0.17677669, %v2447_v24 }
 0xd68   :  { %v2771_v31 = vpop.permute.xlu2 %2770 }
 0xd69   :  { %v2451_v44 = vadd.f32 %v5816_v63, %v2450_v0 }
 0xd6b   :  { %v2452_v2 = vsel %vm737_vm2, %v2451_v44, -inf }
 0xd6c   :  { %2453 = vmax.xlane.f32.xlu1 %v2452_v2  ;;  %v4585_v2 = vld [vmem:[#allocation9 + $0xd0] sm:$0xf0] }
 0xd70   :  { %v2769_v33 = vpop.permute.xlu2 %2768 }
 0xd85   :  { %2495 = vrot.lane.b32.xlu1 %v2406_v43, %s5394_s25 }
 0xddf   :  { %v2454_v4 = vpop.xlane.xlu1 %2453 }
 0xde0   :  { %v2455_v8 = vsub.f32 %v2451_v44, %v2454_v4  ;;  %v5006_v44 = vld [vmem:[#allocation9 + $0xc4] sm:$0xf] }
 0xde2   :  { %v2456_v5 = vmul.f32 1.442695, %v2455_v8  ;;  %v4588_v8 = vor.u32 %v5006_v44, %v4585_v2  ;;  %v5026_v2 = vld [vmem:[#allocation11 + $0x60] sm:$0xff] }
 0xde4   :  { %5197 = vpow2.f32 %v2456_v5  ;;  %v5002_v5 = vld [vmem:[#allocation9 + $0xa4] sm:$0xf] }
 0xdea   :  { %v5198_v58 = vpop.eup %5197 }
 0xdeb   :  { %4430 = vmatmul.msk.f32.vlgmr.msra.gmra.mxu2 %vm699_vm1, %v5198_v58  ;;  %v2458_v26 = vsel %vm737_vm2, %v5198_v58, 0.0  ;;  %v4569_v58 = vld [vmem:[#allocation9 + $0xb0] sm:$0xf0] }
 0xdf7   :  { %v2496_v1 = vpop.permute.xlu1 %2495 }
 0xdf8   :  { %4433 = vmatpush.xpose.msk.msrb.mxu2 %vm699_vm1, %v2496_v1  ;;  %v4553_v1 = vld [vmem:[#allocation9 + $0x90] sm:$0xf0] }
 0xdfc   :  { %4434 = vmatpush.xpose.msk.msrb.mxu2 %vm699_vm1, %v2494_v56 }
 0xdff   :  { %4435 = vmatmul.msk.f32.vlgmr.msrb.gmra.mxu2 %vm699_vm1, %v2492_v55 }
 0xe00   :  { %4455 = vmatpush.xpose.msk.msra.mxu2 %vm699_vm1, %v2653_v9 }
 0xe04   :  { %4456 = vmatpush.xpose.msk.msra.mxu2 %vm699_vm1, %v2651_v6  ;;  %v4572_v6 = vor.u32 %v5002_v5, %v4569_v58 }
 0xe08   :  { %4457 = vmatpush.xpose.msk.msra.mxu2 %vm699_vm1, %v2649_v7  ;;  %v4998_v7 = vld [vmem:[#allocation9 + $0x84] sm:$0xf] }
 0xe0c   :  { %4458 = vmatpush.xpose.msk.msra.mxu2 %vm699_vm1, %v2647_v10 }
 0xe0f   :  { %4459 = vmatmul.msk.f32.vlgmr.msra.gmra.mxu2 %vm699_vm1, %v2645_v50  ;;  %v4556_v50 = vor.u32 %v4998_v7, %v4553_v1  ;;  %v4487_v7 = vld [vmem:[#allocation9] sm:$0xf]  ;;  %v4984_v1 = vld [vmem:[#allocation9 + $0xc] sm:$0xf0] }
 0xe6e   :  { %v2481_v11 = vpop.f32.mrf.mxu2 }
 0xe82   :  { %v2528_v12 = vpop.f32.mrf.mxu2 }
 0xe83   :  { %v2531_v14 = vmul.f32 0.17677669, %v2528_v12  ;;  %v4994_v12 = vld [vmem:[#allocation9 + $0x64] sm:$0xf] }
 0xe85   :  { %v2532_v15 = vadd.f32 %v5816_v63, %v2531_v14  ;;  %v4537_v14 = vld [vmem:[#allocation9 + $0x70] sm:$0xf0] }
 0xe87   :  { %v2533_v16 = vsel %vm737_vm2, %v2532_v15, -inf }
 0xe88   :  { %2534 = vmax.xlane.f32.xlu1 %v2533_v16  ;;  %v4990_v16 = vld [vmem:[#allocation9 + $0x44] sm:$0xf] }
 0xe92   :  { %v2681_v17 = vpop.f32.mrf.mxu2 }
 0xe93   :  { %v2684_v18 = vmul.f32 0.17677669, %v2681_v17  ;;  %v4521_v17 = vld [vmem:[#allocation9 + $0x50] sm:$0xf0] }
 0xe95   :  { %v2685_v19 = vadd.f32 %v5816_v63, %v2684_v18 }
 0xe97   :  { %v2686_v25 = vsel %vm737_vm2, %v2685_v19, -inf }
 0xe98   :  { %2687 = vmax.xlane.f32.xlu2 %v2686_v25  ;;  %v4524_v25 = vor.u32 %v4990_v16, %v4521_v17  ;;  %v5022_v17 = vld [vmem:[#allocation11 + $0x40] sm:$0xff] }
 0xea1   :  { %2774 = vrot.lane.b32.xlu1 %v5741_v42, %s5395_s1 }
 0xeb0   :  { %5134 = vrot.lane.b32.xlu2 %v5798_v48, %s5395_s1 }
 0xecb   :  { %2459 = vadd.xlane.f32.xlu1 %v2458_v26 }
 0xee4   :  { %5139 = vrot.lane.b32.xlu1 %v5787_v23, %s5395_s1 }
 0xefb   :  { %v2535_v42 = vpop.xlane.xlu1 %2534 }
 0xefc   :  { %v2536_v3 = vsub.f32 %v2532_v15, %v2535_v42  ;;  %v4540_v15 = vor.u32 %v4994_v12, %v4537_v14  ;;  %v2897_v42 = vmul.f32 %v5155_v49, %v5771_v20  ;;  %v5012_v20 = vld [vmem:[#allocation9 + $0xec] sm:$0xf0]  ;;  %v5023_v12 = vld [vmem:[#allocation11 + $0x48] sm:$0xff] }
 0xefe   :  { %v2537_v32 = vmul.f32 1.442695, %v2536_v3  ;;  %v5156_v3 = vld [vmem:[%s5944_s6] ss:$0 sm:$0xff] }
 0xf00   :  { %5199 = vpow2.f32 %v2537_v32 }
 0xf06   :  { %v5200_v34 = vpop.eup %5199 }
 0xf07   :  { %4436 = vmatmul.msk.f32.vlgmr.msrb.gmra.mxu3 %vm699_vm1, %v5200_v34  ;;  %v2539_v36 = vsel %vm737_vm2, %v5200_v34, 0.0 }
 0xf08   :  { %2540 = vadd.xlane.f32.xlu0 %v2539_v36 }
 0xf0b   :  { %v2688_v57 = vpop.xlane.xlu2 %2687 }
 0xf0c   :  { %v2689_v38 = vsub.f32 %v2685_v19, %v2688_v57 }
 0xf0e   :  { %v2690_v39 = vmul.f32 1.442695, %v2689_v38  ;;  %v4979_v38 = vld [vmem:[#allocation8 + $0x28] sm:$0xff] }
 0xf10   :  { %5201 = vpow2.f32 %v2690_v39  ;;  %v4978_v39 = vld [vmem:[#allocation8 + $0x20] sm:$0xff] }
 0xf13   :  { %v5135_v40 = vpop.permute.xlu2 %5134  ;;  %v2775_v46 = vpop.permute.xlu1 %2774 }
 0xf14   :  { %v5136_v35 = vunpack.i.l.bf16 %v5135_v40  ;;  %v5137_v45 = vunpack.i.h.bf16 %v5135_v40  ;;  %4470 = vmatpush.xpose.msk.msrb.mxu0 %vm699_vm1, %v2775_v46  ;;  %v4599_v40 = vld [vmem:[#allocation9 + $0xe0] sm:$0xf] }
 0xf16   :  { %v5843_v43 = vpop.eup %5201  ;;  %2844 = vmatpush.msrb.mxu1 %v5136_v35  ;;  %v4600_v35 = vor.u32 %v5012_v20, %v4599_v40 }
 0xf17   :  { %v2692_v47 = vsel %vm737_vm2, %v5843_v43, 0.0 }
 0xf18   :  { %2693 = vadd.xlane.f32.xlu2 %v2692_v47  ;;  %2845 = vmatpush.msrb.mxu1 %v5137_v45  ;;  %v5008_v45 = vld [vmem:[#allocation9 + $0xcc] sm:$0xf0]  ;;  %v4567_v47 = vld [vmem:[#allocation9 + $0xa0] sm:$0xf] }
 0xf19   :  { %4471 = vmatpush.xpose.msk.msrb.mxu0 %vm699_vm1, %v2773_v27  ;;  %v4986_v27 = vld [vmem:[#allocation9 + $0x24] sm:$0xf] }
 0xf1a   :  { %v4508_v28 = vor.u32 %v4986_v27, %v4505_v13  ;;  %v4607_v27 = vld [vmem:[#allocation9 + $0xe8] sm:$0xf]  ;;  %v5013_v13 = vld [vmem:[#allocation9 + $0xf4] sm:$0xf0] }
 0xf1c   :  { %2766 = vrot.lane.b32.xlu0 %v5780_v37, %s5395_s1 }
 0xf1d   :  { %4472 = vmatpush.xpose.msk.msrb.mxu0 %vm699_vm1, %v2771_v31  ;;  %v4489_v31 = vld [vmem:[#allocation9 + $0x10] sm:$0xf0] }
 0xf1e   :  { %v4492_v32 = vor.u32 %v4982_v29, %v4489_v31  ;;  %v5009_v29 = vld [vmem:[#allocation9 + $0xd4] sm:$0xf0] }
 0xf21   :  { %4473 = vmatpush.xpose.msk.msrb.mxu0 %vm699_vm1, %v2769_v33  ;;  %v2902_v33 = vadd.f32 %v5156_v3, %v2897_v42 }
 0xf23   :  { %v5869_v34 = vpack.c.bf16 %v2902_v33, %v2902_v33  ;;  %v5005_v33 = vld [vmem:[#allocation9 + $0xb4] sm:$0xf0] }
 0xf24   :  { %5124 = vrot.lane.b32.xlu0 %v5798_v48, %s5383_s20 }
 0xf2c   :  { %5129 = vrot.lane.b32.xlu0 %v5787_v23, %s5383_s20  ;;  %v4604_v23 = vor.u32 %v5010_v61, %v4601_v62  ;;  %v4996_v61 = vld [vmem:[#allocation9 + $0x6c] sm:$0xf0] }
 0xf3e   :  { %v2460_v52 = vpop.xlane.xlu1 %2459 }
 0xf3f   :  { %5203 = vrcp.f32 %v2460_v52  ;;  %v5004_v52 = vld [vmem:[#allocation9 + $0xac] sm:$0xf0] }
 0xf45   :  { %v5204_v54 = vpop.eup %5203 }
 0xf46   :  { %v2485_v55 = vmul.f32 %v5204_v54, %v2481_v11  ;;  %v4568_v54 = vor.u32 %v5004_v52, %v4567_v47 }
 0xf48   :  { %v2486_v56 = vpack.c.bf16 %v2485_v55, %v2485_v55  ;;  %v5029_v55 = vld [vmem:[#allocation11 + $0x78] sm:$0xff] }
 0xf4a   :  { %4454 = vmatmul.msk.bf16.vlgmr.msra.gmra.mxu1 %vm699_vm1, %v2486_v56  ;;  %v4551_v56 = vld [vmem:[#allocation9 + $0x80] sm:$0xf] }
 0xf56   :  { %v5140_v51 = vpop.permute.xlu1 %5139 }
 0xf57   :  { %v5141_v59 = vunpack.i.l.bf16 %v5140_v51  ;;  %v5142_v37 = vunpack.i.h.bf16 %v5140_v51  ;;  %v5000_v51 = vld [vmem:[#allocation9 + $0x8c] sm:$0xf0] }
 0xf59   :  { %2846 = vmatpush.msrb.mxu1 %v5141_v59  ;;  %v4552_v59 = vor.u32 %v5000_v51, %v4551_v56  ;;  %v5001_v56 = vld [vmem:[#allocation9 + $0x94] sm:$0xf0] }
 0xf5b   :  { %2847 = vmatpush.msrb.mxu1 %v5142_v37  ;;  %v5028_v37 = vld [vmem:[#allocation11 + $0x70] sm:$0xff] }
 0xf7b   :  { %v2541_v60 = vpop.xlane.xlu0 %2540 }
 0xf7c   :  { %5205 = vrcp.f32 %v2541_v60  ;;  %v4535_v60 = vld [vmem:[#allocation9 + $0x60] sm:$0xf] }
 0xf82   :  { %v5206_v48 = vpop.eup %5205 }
 0xf8a   :  { %v2578_v30 = vpop.f32.mrf.mxu3 }
 0xf8b   :  { %v2582_v24 = vmul.f32 %v5206_v48, %v2578_v30  ;;  %v4536_v48 = vor.u32 %v4996_v61, %v4535_v60  ;;  %v2694_v14 = vpop.xlane.xlu2 %2693  ;;  %v4527_v61 = vld [vmem:[#allocation9 + $0x48] sm:$0xf] }
 0xf8c   :  { %5207 = vrcp.f32 %v2694_v14 }
 0xf8d   :  { %v2583_v0 = vpack.c.bf16 %v2582_v24, %v2582_v24  ;;  %v5027_v24 = vld [vmem:[#allocation11 + $0x68] sm:$0xff] }
 0xf8e   :  { %v2767_v4 = vpop.permute.xlu0 %2766 }
 0xf8f   :  { %4445 = vmatmul.msk.bf16.vlgmr.msra.gmra.mxu0 %vm699_vm1, %v2583_v0  ;;  %v4992_v0 = vld [vmem:[#allocation9 + $0x4c] sm:$0xf0] }
 0xf90   :  { %3119 = vmatpush.bf16.msra.mxu0 %v4604_v23  ;;  %v4519_v23 = vld [vmem:[#allocation9 + $0x40] sm:$0xf] }
 0xf91   :  { %v4520_v44 = vor.u32 %v4992_v0, %v4519_v23  ;;  %v4989_v23 = vld [vmem:[#allocation9 + $0x34] sm:$0xf0] }
 0xf94   :  { %3120 = vmatpush.bf16.msra.mxu0 %v4588_v8  ;;  %v4988_v8 = vld [vmem:[#allocation9 + $0x2c] sm:$0xf0] }
 0xf96   :  { %v5125_v9 = vpop.permute.xlu0 %5124 }
 0xf97   :  { %v5126_v10 = vunpack.i.l.bf16 %v5125_v9  ;;  %v5127_v11 = vunpack.i.h.bf16 %v5125_v9  ;;  %v4488_v9 = vor.u32 %v4984_v1, %v4487_v7  ;;  %v5020_v7 = vld [vmem:[#allocation11 + $0x30] sm:$0xff] }
 0xf98   :  { %3121 = vmatpush.bf16.msra.mxu0 %v4572_v6  ;;  %v5025_v6 = vld [vmem:[#allocation11 + $0x58] sm:$0xff] }
 0xf99   :  { %2722 = vmatpush.msra.mxu3 %v5126_v10  ;;  %v5024_v10 = vld [vmem:[#allocation11 + $0x50] sm:$0xff] }
 0xf9b   :  { %2723 = vmatpush.msra.mxu3 %v5127_v11 }
 0xf9c   :  { %3122 = vmatpush.bf16.msra.mxu0 %v4556_v50 }
 0xf9e   :  { %v5130_v18 = vpop.permute.xlu0 %5129 }
 0xf9f   :  { %v5131_v19 = vunpack.i.l.bf16 %v5130_v18  ;;  %4474 = vmatmul.msk.f32.vlgmr.msrb.gmra.mxu0 %vm699_vm1, %v2767_v4  ;;  %v5132_v26 = vunpack.i.h.bf16 %v5130_v18  ;;  %v4503_v4 = vld [vmem:[#allocation9 + $0x20] sm:$0xf] }
 0xfa0   :  { %3123 = vmatpush.bf16.msra.mxu0 %v4540_v15  ;;  %v4504_v58 = vor.u32 %v4988_v8, %v4503_v4  ;;  %v5882_v18 = vld [vmem:[%s5952_s14] sm:$0xf] }
 0xfa1   :  { %2724 = vmatpush.msra.mxu3 %v5131_v19  ;;  %v5208_v19 = vpop.eup %5207  ;;  %v2939_v49 = vperm.slane %v5882_v18, 1 }
 0xfa3   :  { %2725 = vmatpush.msra.mxu3 %v5132_v26 }
 0xfa4   :  { %3124 = vmatpush.bf16.msra.mxu0 %v4524_v25  ;;  %4460 = vmatmul.msk.f32.vlgmr.msra.gmra.mxu3 %vm699_vm1, %v5843_v43  ;;  %v4583_v43 = vld [vmem:[#allocation9 + $0xc0] sm:$0xf] }
 0xfa5   :  { %2758 = vmatpush.bf16.msrb.mxu3 %v4979_v38  ;;  %v4584_v46 = vor.u32 %v5008_v45, %v4583_v43 }
 0xfa8   :  { %3125 = vmatpush.bf16.msra.mxu0 %v4508_v28  ;;  %v4608_v28 = vor.u32 %v5013_v13, %v4607_v27  ;;  %v2938_v27 = vperm.slane %v5882_v18, 0  ;;  %v4609_v13 = vld [vmem:[#allocation9 + $0xf8] sm:$0xf0] }
 0xfa9   :  { %2759 = vmatpush.bf16.msrb.mxu3 %v4978_v39 }
 0xfaa   :  { %3132 = vmatpush.bf16.msra.mxu1 %v4608_v28 }
 0xfac   :  { %3126 = vmatpush.bf16.msra.mxu0 %v4492_v32  ;;  %v4575_v32 = vld [vmem:[#allocation9 + $0xa8] sm:$0xf] }
 0xfad   :  { %3106 = vmatpush.bf16.msra.mxu3 %v4600_v35  ;;  %v4576_v38 = vor.u32 %v5005_v33, %v4575_v32 }
 0xfaf   :  { %3127 = vmatmul.bf16.vlgmr.msra.gmra.mxu0 %v5869_v34 }
 0xfb0   :  { %3471 = vmatpush.bf16.msrb.mxu0 %v5029_v55  ;;  %v4559_v55 = vld [vmem:[#allocation9 + $0x88] sm:$0xf] }
 0xfb1   :  { %3107 = vmatpush.bf16.msra.mxu3 %v4584_v46  ;;  %v4560_v51 = vor.u32 %v5001_v56, %v4559_v55  ;;  %v4999_v55 = vld [vmem:[#allocation9 + $0x8c] sm:$0xf]  ;;  %v4561_v56 = vld [vmem:[#allocation9 + $0x98] sm:$0xf0] }
 0xfb4   :  { %3472 = vmatpush.bf16.msrb.mxu0 %v5028_v37  ;;  %v4997_v37 = vld [vmem:[#allocation9 + $0x74] sm:$0xf0] }
 0xfb5   :  { %3108 = vmatpush.bf16.msra.mxu3 %v4568_v54 }
 0xfb8   :  { %3473 = vmatpush.bf16.msrb.mxu0 %v5027_v24  ;;  %v4511_v24 = vld [vmem:[#allocation9 + $0x28] sm:$0xf] }
 0xfb9   :  { %3109 = vmatpush.bf16.msra.mxu3 %v4552_v59  ;;  %v4543_v59 = vld [vmem:[#allocation9 + $0x68] sm:$0xf]  ;;  %v4512_v0 = vor.u32 %v4989_v23, %v4511_v24  ;;  %v4529_v24 = vld [vmem:[#allocation9 + $0x58] sm:$0xf0] }
 0xfba   :  { %v4544_v60 = vor.u32 %v4997_v37, %v4543_v59  ;;  %v5037_v59 = vld [vmem:[#allocation11 + $0xb8] sm:$0xff]  ;;  %v4995_v37 = vld [vmem:[#allocation9 + $0x6c] sm:$0xf] }
 0xfbc   :  { %3474 = vmatpush.bf16.msrb.mxu0 %v5026_v2  ;;  %v4985_v2 = vld [vmem:[#allocation9 + $0x14] sm:$0xf0] }
 0xfbd   :  { %3110 = vmatpush.bf16.msra.mxu3 %v4536_v48 }
 0xfc0   :  { %3475 = vmatpush.bf16.msrb.mxu0 %v5025_v6 }
 0xfc1   :  { %3111 = vmatpush.bf16.msra.mxu3 %v4520_v44  ;;  %v4495_v44 = vld [vmem:[#allocation9 + $0x8] sm:$0xf] }
 0xfc2   :  { %v4496_v4 = vor.u32 %v4985_v2, %v4495_v44  ;;  %v4987_v44 = vld [vmem:[#allocation9 + $0x2c] sm:$0xf]  ;;  %v4513_v2 = vld [vmem:[#allocation9 + $0x38] sm:$0xf0] }
 0xfc4   :  { %3476 = vmatpush.bf16.msrb.mxu0 %v5024_v10  ;;  %v5019_v10 = vld [vmem:[#allocation11 + $0x28] sm:$0xff] }
 0xfc5   :  { %3112 = vmatpush.bf16.msra.mxu3 %v4504_v58  ;;  %v5021_v58 = vld [vmem:[#allocation11 + $0x38] sm:$0xff] }
 0xfc7   :  { %v2640_v36 = vpop.f32.mrf.mxu1 }
 0xfc8   :  { %3477 = vmatpush.bf16.msrb.mxu0 %v5023_v12  ;;  %v5016_v12 = vld [vmem:[#allocation11 + $0x10] sm:$0xff] }
 0xfc9   :  { %3113 = vmatpush.bf16.msra.mxu3 %v4488_v9 }
 0xfcc   :  { %3478 = vmatpush.bf16.msrb.mxu0 %v5022_v17  ;;  %v5014_v17 = vld [vmem:[#allocation11] sm:$0xff] }
 0xfcf   :  { %v2642_v57 = vpop.f32.mrf.mxu1 }
0x100c   :  { %v2612_v62 = vpop.f32.mrf.mxu0 }
0x100d   :  { %v5872_v30 = vadd.f32 %v2640_v36, %v2612_v62  ;;  %v4993_v62 = vld [vmem:[#allocation9 + $0x54] sm:$0xf0] }
0x100e   :  { %v4528_v48 = vor.u32 %v4993_v62, %v4527_v61  ;;  %v5036_v62 = vld [vmem:[#allocation11 + $0xb0] sm:$0xff] }
0x1014   :  { %v2614_v5 = vpop.f32.mrf.mxu0 }
0x101c   :  { %v2803_v50 = vpop.f32.mrf.mxu0 }
0x101d   :  { %v2806_v11 = vmul.f32 0.17677669, %v2803_v50  ;;  %v5018_v50 = vld [vmem:[#allocation11 + $0x20] sm:$0xff] }
0x101f   :  { %v5875_v15 = vadd.f32 %v5816_v63, %v2806_v11  ;;  %v4591_v63 = vld [vmem:[#allocation9 + $0xc8] sm:$0xf]  ;;  %v5017_v11 = vld [vmem:[#allocation11 + $0x18] sm:$0xff] }
0x1020   :  { %v4592_v42 = vor.u32 %v5009_v29, %v4591_v63  ;;  %v4980_v63 = vld [vmem:[#allocation8 + $0x30] sm:$0xff] }
0x1021   :  { %v2808_v16 = vsel %vm737_vm2, %v5875_v15, -inf }
0x1022   :  { %2809 = vmax.xlane.f32.xlu0 %v2808_v16  ;;  %3133 = vmatpush.bf16.msra.mxu1 %v4592_v42  ;;  %v5015_v16 = vld [vmem:[#allocation11 + $0x8] sm:$0xff] }
0x1026   :  { %3134 = vmatpush.bf16.msra.mxu1 %v4576_v38 }
0x1027   :  { %v2727_v25 = vpop.f32.mrf.mxu3 }
0x1028   :  { %v2731_v26 = vmul.f32 %v5208_v19, %v2727_v25  ;;  %v4981_v25 = vld [vmem:[#allocation8 + $0x38] sm:$0xff] }
0x1029   :  { %2880 = vmatpush.bf16.msrb.mxu2 %v4981_v25 }
0x102a   :  { %v2732_v31 = vpack.c.bf16 %v2731_v26, %v2731_v26  ;;  %3135 = vmatpush.bf16.msra.mxu1 %v4560_v51  ;;  %v5011_v26 = vld [vmem:[#allocation9 + $0xec] sm:$0xf]  ;;  %v4564_v51 = vor.u32 %v4999_v55, %v4561_v56 }
0x102c   :  { %v3128_v3 = vpop.f32.mrf.mxu0  ;;  %4469 = vmatmul.msk.bf16.vlgmr.msrb.gmra.mxu3 %vm699_vm1, %v2732_v31 }
0x102d   :  { %v3129_v36 = vadd.f32 %v3128_v3, %v2939_v49  ;;  %3458 = vmatpush.bf16.msrb.mxu3 %v5021_v58  ;;  %v4612_v49 = vor.u32 %v5011_v26, %v4609_v13  ;;  %2881 = vmatpush.bf16.msrb.mxu2 %v4980_v63  ;;  %v4497_v58 = vld [vmem:[#allocation9 + $0x18] sm:$0xf0] }
0x102e   :  { %3136 = vmatpush.bf16.msra.mxu1 %v4544_v60  ;;  %v4545_v60 = vld [vmem:[#allocation9 + $0x78] sm:$0xf0] }
0x102f   :  { %v3159_v57 = vmul.f32 %v3129_v36, %v3129_v36  ;;  %v4548_v61 = vor.u32 %v4995_v37, %v4545_v60 }
0x1031   :  { %v3163_v39 = vmul.f32 %v3159_v57, %v3129_v36  ;;  %3459 = vmatpush.bf16.msrb.mxu3 %v5020_v7  ;;  %3145 = vmatpush.bf16.msra.mxu2 %v4612_v49  ;;  %v5033_v7 = vld [vmem:[#allocation11 + $0x98] sm:$0xff] }
0x1032   :  { %3137 = vmatpush.bf16.msra.mxu1 %v4528_v48  ;;  %v4991_v48 = vld [vmem:[#allocation9 + $0x4c] sm:$0xf] }
0x1033   :  { %v3167_v40 = vmul.f32 0.044715, %v3163_v39  ;;  %v4532_v23 = vor.u32 %v4991_v48, %v4529_v24 }
0x1034   :  { %v3130_v20 = vpop.f32.mrf.mxu0 }
0x1035   :  { %v3171_v35 = vadd.f32 %v3167_v40, %v3129_v36  ;;  %3460 = vmatpush.bf16.msrb.mxu3 %v5019_v10  ;;  %v5031_v10 = vld [vmem:[#allocation11 + $0x88] sm:$0xff] }
0x1036   :  { %3138 = vmatpush.bf16.msra.mxu1 %v4512_v0  ;;  %v5035_v0 = vld [vmem:[#allocation11 + $0xa8] sm:$0xff] }
0x1037   :  { %v3175_v43 = vmul.f32 0.7978846, %v3171_v35 }
0x1039   :  { %5209 = vtanh.f32 %v3175_v43  ;;  %3461 = vmatpush.bf16.msrb.mxu3 %v5018_v50  ;;  %v5007_v43 = vld [vmem:[#allocation9 + $0xcc] sm:$0xf]  ;;  %v5030_v50 = vld [vmem:[#allocation11 + $0x80] sm:$0xff] }
0x103a   :  { %3139 = vmatpush.bf16.msra.mxu1 %v4496_v4  ;;  %v4516_v4 = vor.u32 %v4987_v44, %v4513_v2 }
0x103c   :  { %3114 = vmatmul.bf16.vlgmr.msra.gmra.mxu3 %v5869_v34 }
0x103d   :  { %3462 = vmatpush.bf16.msrb.mxu3 %v5017_v11 }
0x103f   :  { %v5210_v45 = vpop.eup %5209 }
0x1040   :  { %v3183_v46 = vadd.f32 1.0, %v5210_v45  ;;  %v4593_v45 = vld [vmem:[#allocation9 + $0xd8] sm:$0xf0] }
0x1041   :  { %3463 = vmatpush.bf16.msrb.mxu3 %v5016_v12 }
0x1042   :  { %v3187_v47 = vmul.f32 0.5, %v3183_v46  ;;  %v5003_v46 = vld [vmem:[#allocation9 + $0xac] sm:$0xf] }
0x1044   :  { %v3191_v52 = vmul.f32 %v3187_v47, %v3129_v36  ;;  %v4596_v47 = vor.u32 %v5007_v43, %v4593_v45  ;;  %v5039_v45 = vld [vmem:[#allocation11 + $0xc8] sm:$0xff] }
0x1045   :  { %3464 = vmatpush.bf16.msrb.mxu3 %v5015_v16 }
0x1046   :  { %v3195_v54 = vpack.c.bf16 %v3191_v52, %v3191_v52  ;;  %v4577_v52 = vld [vmem:[#allocation9 + $0xb8] sm:$0xf0]  ;;  %3146 = vmatpush.bf16.msra.mxu2 %v4596_v47  ;;  %v5038_v47 = vld [vmem:[#allocation11 + $0xc0] sm:$0xff] }
0x1048   :  { %3479 = vmatmul.bf16.vlgmr.msrb.gmra.mxu0 %v3195_v54  ;;  %v4580_v54 = vor.u32 %v5003_v46, %v4577_v52  ;;  %v2941_v52 = vperm.slane %v5882_v18, 3 }
0x1049   :  { %3465 = vmatpush.bf16.msrb.mxu3 %v5014_v17  ;;  %v2940_v17 = vperm.slane %v5882_v18, 2 }
0x104a   :  { %3147 = vmatpush.bf16.msra.mxu2 %v4580_v54  ;;  %v5157_v54 = vld [vmem:[%s5954_s16] ss:$0 sm:$0xff] }
0x104e   :  { %3148 = vmatpush.bf16.msra.mxu2 %v4564_v51 }
0x1052   :  { %3149 = vmatpush.bf16.msra.mxu2 %v4548_v61 }
0x1056   :  { %3150 = vmatpush.bf16.msra.mxu2 %v4532_v23 }
0x105a   :  { %3151 = vmatpush.bf16.msra.mxu2 %v4516_v4 }
0x1095   :  { %v2810_v8 = vpop.xlane.xlu0 %2809 }
0x1096   :  { %v2811_v5 = vsub.f32 %v5875_v15, %v2810_v8  ;;  %v5034_v8 = vld [vmem:[#allocation11 + $0xa0] sm:$0xff] }
0x1098   :  { %v2812_v6 = vmul.f32 1.442695, %v2811_v5  ;;  %v4983_v5 = vld [vmem:[#allocation9 + $0xc] sm:$0xf] }
0x109a   :  { %5211 = vpow2.f32 %v2812_v6  ;;  %v4500_v6 = vor.u32 %v4983_v5, %v4497_v58  ;;  %v5158_v5 = vld [vmem:[%s5950_s12] ss:$0 sm:$0xff] }
0x109c   :  { %3152 = vmatpush.bf16.msra.mxu2 %v4500_v6 }
0x10a0   :  { %v5212_v1 = vpop.eup %5211 }
0x10a1   :  { %4475 = vmatmul.msk.f32.vlgmr.msrb.gmra.mxu1 %vm699_vm1, %v5212_v1  ;;  %v2814_v9 = vsel %vm737_vm2, %v5212_v1, 0.0  ;;  %v5032_v1 = vld [vmem:[#allocation11 + $0x90] sm:$0xff] }
0x10a2   :  { %2815 = vadd.xlane.f32.xlu1 %v2814_v9  ;;  %3484 = vmatpush.bf16.msrb.mxu1 %v5037_v59 }
0x10a6   :  { %3485 = vmatpush.bf16.msrb.mxu1 %v5036_v62 }
0x10a9   :  { %3140 = vmatmul.bf16.vlgmr.msra.gmra.mxu1 %v5869_v34 }
0x10aa   :  { %3486 = vmatpush.bf16.msrb.mxu1 %v5035_v0 }
0x10ae   :  { %3487 = vmatpush.bf16.msrb.mxu1 %v5034_v8 }
0x10af   :  { %v2761_v14 = vpop.f32.mrf.mxu3 }
0x10b0   :  { %v5892_v15 = vadd.f32 %v2761_v14, %v5872_v30 }
0x10b2   :  { %3488 = vmatpush.bf16.msrb.mxu1 %v5033_v7 }
0x10b6   :  { %3489 = vmatpush.bf16.msrb.mxu1 %v5032_v1 }
0x10b7   :  { %v2763_v19 = vpop.f32.mrf.mxu3 }
0x10ba   :  { %3490 = vmatpush.bf16.msrb.mxu1 %v5031_v10 }
0x10be   :  { %3491 = vmatpush.bf16.msrb.mxu1 %v5030_v50  ;;  %v4799_v50 = vld [vmem:[#allocation12 + $0x70] sm:$0xf] }
0x10bf   :  { %v3115_v28 = vpop.f32.mrf.mxu3 }
0x10c0   :  { %v3116_v29 = vadd.f32 %v3115_v28, %v2938_v27 }
0x10c2   :  { %v3158_v31 = vmul.f32 %v3116_v29, %v3116_v29 }
0x10c4   :  { %v3162_v30 = vmul.f32 %v3158_v31, %v3116_v29 }
0x10c5   :  { %v5895_v42 = vpop.f32.mrf.mxu0 }
0x10c6   :  { %v3166_v3 = vmul.f32 0.044715, %v3162_v30 }
0x10c7   :  { %v3117_v32 = vpop.f32.mrf.mxu3 }
0x10c8   :  { %v3170_v33 = vadd.f32 %v3166_v3, %v3116_v29 }
0x10ca   :  { %v3174_v36 = vmul.f32 0.7978846, %v3170_v33 }
0x10cc   :  { %5213 = vtanh.f32 %v3174_v36 }
0x10cd   :  { %v3482_v57 = vpop.f32.mrf.mxu0 }
0x10ce   :  { %v5045_v57 = vld [vmem:[#allocation11 + $0xf8] sm:$0xff] }
0x10d2   :  { %v5214_v38 = vpop.eup %5213 }
0x10d3   :  { %v3182_v39 = vadd.f32 1.0, %v5214_v38  ;;  %v5044_v38 = vld [vmem:[#allocation11 + $0xf0] sm:$0xff] }
0x10d5   :  { %v3186_v40 = vmul.f32 0.5, %v3182_v39  ;;  %v5043_v39 = vld [vmem:[#allocation11 + $0xe8] sm:$0xff] }
0x10d7   :  { %v3190_v20 = vmul.f32 %v3186_v40, %v3116_v29  ;;  %v5042_v40 = vld [vmem:[#allocation11 + $0xe0] sm:$0xff] }
0x10d9   :  { %v3194_v35 = vpack.c.bf16 %v3190_v20, %v3190_v20  ;;  %v5041_v20 = vld [vmem:[#allocation11 + $0xd8] sm:$0xff] }
0x10db   :  { %3466 = vmatmul.bf16.vlgmr.msrb.gmra.mxu3 %v3194_v35 }
0x1115   :  { %v2816_v9 = vpop.xlane.xlu1 %2815 }
0x1116   :  { %5215 = vrcp.f32 %v2816_v9 }
0x111c   :  { %v5216_v11 = vpop.eup %5215 }
0x111e   :  { %v2849_v12 = vpop.f32.mrf.mxu1 }
0x111f   :  { %v2853_v14 = vmul.f32 %v5216_v11, %v2849_v12  ;;  %v5061_v11 = vld [vmem:[#allocation12 + $0x74] sm:$0xf0]  ;;  %v5060_v12 = vld [vmem:[#allocation12 + $0x74] sm:$0xf] }
0x1121   :  { %v2854_v16 = vpack.c.bf16 %v2853_v14, %v2853_v14  ;;  %v4800_v14 = vor.u32 %v5061_v11, %v4799_v50  ;;  %v5159_v11 = vld [vmem:[%s5945_s7] ss:$0 sm:$0xff] }
0x1123   :  { %4484 = vmatmul.msk.bf16.vlgmr.msrb.gmra.mxu2 %vm699_vm1, %v2854_v16  ;;  %v4801_v16 = vld [vmem:[#allocation12 + $0x78] sm:$0xf0]  ;;  %3647 = vmatpush.bf16.msra.mxu3 %v4800_v14 }
0x1124   :  { %3497 = vmatpush.bf16.msrb.mxu2 %v5045_v57 }
0x1126   :  { %v3141_v19 = vpop.f32.mrf.mxu1 }
0x1127   :  { %v3142_v25 = vadd.f32 %v3141_v19, %v2940_v17  ;;  %v4804_v17 = vor.u32 %v5060_v12, %v4801_v16 }
0x1128   :  { %3498 = vmatpush.bf16.msrb.mxu2 %v5044_v38  ;;  %v4775_v38 = vld [vmem:[#allocation12 + $0x40] sm:$0xf] }
0x1129   :  { %v3160_v26 = vmul.f32 %v3142_v25, %v3142_v25  ;;  %3660 = vmatpush.bf16.msra.mxu0 %v4804_v17 }
0x112b   :  { %v3164_v27 = vmul.f32 %v3160_v26, %v3142_v25 }
0x112c   :  { %3499 = vmatpush.bf16.msrb.mxu2 %v5043_v39  ;;  %v5055_v39 = vld [vmem:[#allocation12 + $0x44] sm:$0xf0] }
0x112d   :  { %v3168_v13 = vmul.f32 0.044715, %v3164_v27 }
0x112e   :  { %v3143_v63 = vpop.f32.mrf.mxu1 }
0x112f   :  { %v3172_v49 = vadd.f32 %v3168_v13, %v3142_v25  ;;  %v4791_v13 = vld [vmem:[#allocation12 + $0x60] sm:$0xf]  ;;  %v5059_v63 = vld [vmem:[#allocation12 + $0x64] sm:$0xf0] }
0x1130   :  { %3500 = vmatpush.bf16.msrb.mxu2 %v5042_v40  ;;  %v5054_v40 = vld [vmem:[#allocation12 + $0x44] sm:$0xf] }
0x1131   :  { %v3176_v28 = vmul.f32 0.7978846, %v3172_v49  ;;  %v5058_v49 = vld [vmem:[#allocation12 + $0x64] sm:$0xf] }
0x1133   :  { %5217 = vtanh.f32 %v3176_v28  ;;  %3153 = vmatmul.bf16.vlgmr.msra.gmra.mxu2 %v5869_v34  ;;  %v5040_v34 = vld [vmem:[#allocation11 + $0xd0] sm:$0xff]  ;;  %v4792_v28 = vor.u32 %v5059_v63, %v4791_v13 }
0x1134   :  { %3501 = vmatpush.bf16.msrb.mxu2 %v5041_v20  ;;  %v4776_v20 = vor.u32 %v5055_v39, %v4775_v38 }
0x1135   :  { %3648 = vmatpush.bf16.msra.mxu3 %v4792_v28 }
0x1138   :  { %3502 = vmatpush.bf16.msrb.mxu2 %v5040_v34 }
0x1139   :  { %v5218_v29 = vpop.eup %5217 }
0x113a   :  { %v3184_v31 = vadd.f32 1.0, %v5218_v29  ;;  %v4793_v29 = vld [vmem:[#allocation12 + $0x68] sm:$0xf0] }
0x113c   :  { %v3188_v30 = vmul.f32 0.5, %v3184_v31  ;;  %3503 = vmatpush.bf16.msrb.mxu2 %v5039_v45  ;;  %v4796_v31 = vor.u32 %v5058_v49, %v4793_v29  ;;  %v5053_v45 = vld [vmem:[#allocation12 + $0x34] sm:$0xf0] }
0x113e   :  { %v3192_v3 = vmul.f32 %v3188_v30, %v3142_v25  ;;  %3661 = vmatpush.bf16.msra.mxu0 %v4796_v31  ;;  %v4783_v30 = vld [vmem:[#allocation12 + $0x50] sm:$0xf] }
0x1140   :  { %v3196_v32 = vpack.c.bf16 %v3192_v3, %v3192_v3  ;;  %3504 = vmatpush.bf16.msrb.mxu2 %v5038_v47  ;;  %v5057_v3 = vld [vmem:[#allocation12 + $0x54] sm:$0xf0] }
0x1142   :  { %3492 = vmatmul.bf16.vlgmr.msrb.gmra.mxu1 %v3196_v32  ;;  %v5056_v32 = vld [vmem:[#allocation12 + $0x54] sm:$0xf] }
0x115e   :  { %v3467_v33 = vpop.f32.mrf.mxu3 }
0x115f   :  { %v3468_v59 = vadd.f32 %v5157_v54, %v3467_v33  ;;  %v4784_v33 = vor.u32 %v5057_v3, %v4783_v30 }
0x1161   :  { %3649 = vmatpush.bf16.msra.mxu3 %v4784_v33 }
0x1165   :  { %3650 = vmatpush.bf16.msra.mxu3 %v4776_v20 }
0x1166   :  { %v3469_v36 = vpop.f32.mrf.mxu3 }
0x1167   :  { %v4785_v36 = vld [vmem:[#allocation12 + $0x58] sm:$0xf0] }
0x1168   :  { %v4788_v57 = vor.u32 %v5056_v32, %v4785_v36 }
0x116a   :  { %3662 = vmatpush.bf16.msra.mxu0 %v4788_v57 }
0x11a6   :  { %v2883_v35 = vpop.f32.mrf.mxu2 }
0x11a7   :  { %v2887_v43 = vadd.f32 %v2883_v35, %v5892_v15  ;;  %v3481_v15 = vadd.f32 %v5895_v42, %v3468_v59  ;;  %v4777_v35 = vld [vmem:[#allocation12 + $0x48] sm:$0xf0] }
0x11a8   :  { %v4780_v34 = vor.u32 %v5054_v40, %v4777_v35 }
0x11a9   :  { %v2892_v58 = vadd.f32 %v5158_v5, %v2887_v43  ;;  %v4767_v43 = vld [vmem:[#allocation12 + $0x30] sm:$0xf] }
0x11aa   :  { %3663 = vmatpush.bf16.msra.mxu0 %v4780_v34  ;;  %v4768_v47 = vor.u32 %v5053_v45, %v4767_v43 }
0x11ab   :  { %v3510_v42 = vadd.f32 %v2892_v58, %v5753_v53 }
0x11ac   :  { %3651 = vmatpush.bf16.msra.mxu3 %v4768_v47 }
0x11ae   :  { %v2885_v46 = vpop.f32.mrf.mxu2 }
0x11af   :  { %v5052_v46 = vld [vmem:[#allocation12 + $0x34] sm:$0xf] }
0x11b6   :  { %v3154_v55 = vpop.f32.mrf.mxu2 }
0x11b7   :  { %v3155_v56 = vadd.f32 %v3154_v55, %v2941_v52  ;;  %v4769_v52 = vld [vmem:[#allocation12 + $0x38] sm:$0xf0]  ;;  %v4759_v55 = vld [vmem:[#allocation12 + $0x20] sm:$0xf] }
0x11b8   :  { %v4772_v54 = vor.u32 %v5052_v46, %v4769_v52 }
0x11b9   :  { %v3161_v51 = vmul.f32 %v3155_v56, %v3155_v56 }
0x11ba   :  { %3664 = vmatpush.bf16.msra.mxu0 %v4772_v54 }
0x11bb   :  { %v3165_v37 = vmul.f32 %v3161_v51, %v3155_v56  ;;  %v5050_v51 = vld [vmem:[#allocation12 + $0x24] sm:$0xf] }
0x11bd   :  { %v3169_v60 = vmul.f32 0.044715, %v3165_v37  ;;  %v4761_v37 = vld [vmem:[#allocation12 + $0x28] sm:$0xf0] }
0x11be   :  { %v3156_v61 = vpop.f32.mrf.mxu2 }
0x11bf   :  { %v3173_v62 = vadd.f32 %v3169_v60, %v3155_v56  ;;  %v3493_v48 = vpop.f32.mrf.mxu1  ;;  %v4764_v60 = vor.u32 %v5050_v51, %v4761_v37  ;;  %v4751_v61 = vld [vmem:[#allocation12 + $0x10] sm:$0xf] }
0x11c0   :  { %v3494_v24 = vadd.f32 %v3493_v48, %v3481_v15  ;;  %v5049_v15 = vld [vmem:[#allocation12 + $0x14] sm:$0xf0] }
0x11c1   :  { %v3177_v23 = vmul.f32 0.7978846, %v3173_v62  ;;  %3665 = vmatpush.bf16.msra.mxu0 %v4764_v60  ;;  %v5048_v62 = vld [vmem:[#allocation12 + $0x14] sm:$0xf]  ;;  %v4752_v48 = vor.u32 %v5049_v15, %v4751_v61 }
0x11c3   :  { %5219 = vtanh.f32 %v3177_v23  ;;  %v4743_v23 = vld [vmem:[#allocation12] sm:$0xf] }
0x11c7   :  { %v3495_v0 = vpop.f32.mrf.mxu1 }
0x11c8   :  { %v5047_v0 = vld [vmem:[#allocation12 + $0x4] sm:$0xf0] }
0x11c9   :  { %v5220_v18 = vpop.eup %5219 }
0x11ca   :  { %v3185_v44 = vadd.f32 1.0, %v5220_v18 }
0x11cc   :  { %v3189_v2 = vmul.f32 0.5, %v3185_v44  ;;  %v5046_v44 = vld [vmem:[#allocation12 + $0x4] sm:$0xf] }
0x11ce   :  { %v3193_v4 = vmul.f32 %v3189_v2, %v3155_v56  ;;  %v5051_v56 = vld [vmem:[#allocation12 + $0x24] sm:$0xf0]  ;;  %v4745_v2 = vld [vmem:[#allocation12 + $0x8] sm:$0xf0] }
0x11cf   :  { %v4760_v59 = vor.u32 %v5051_v56, %v4759_v55 }
0x11d0   :  { %v3197_v8 = vpack.c.bf16 %v3193_v4, %v3193_v4  ;;  %v4744_v4 = vor.u32 %v5047_v0, %v4743_v23 }
0x11d1   :  { %3652 = vmatpush.bf16.msra.mxu3 %v4760_v59 }
0x11d2   :  { %3505 = vmatmul.bf16.vlgmr.msrb.gmra.mxu2 %v3197_v8  ;;  %v4748_v8 = vor.u32 %v5046_v44, %v4745_v2 }
0x11d5   :  { %3653 = vmatpush.bf16.msra.mxu3 %v4752_v48 }
0x11d9   :  { %3654 = vmatpush.bf16.msra.mxu3 %v4744_v4 }
0x1255   :  { %v3506_v6 = vpop.f32.mrf.mxu2 }
0x1256   :  { %v3507_v7 = vadd.f32 %v3506_v6, %v3494_v24  ;;  %v4753_v24 = vld [vmem:[#allocation12 + $0x18] sm:$0xf0] }
0x1257   :  { %v4756_v18 = vor.u32 %v5048_v62, %v4753_v24 }
0x1258   :  { %v3511_v1 = vadd.f32 %v3510_v42, %v3507_v7 }
0x1259   :  { %3666 = vmatpush.bf16.msra.mxu0 %v4756_v18 }
0x125a   :  { %v3512_v9 = vsel %vm1971_vm6, %v3511_v1, 0.0 }
0x125b   :  { %3513 = vadd.xlane.f32.xlu0 %v3512_v9 }
0x125d   :  { %v3508_v10 = vpop.f32.mrf.mxu2  ;;  %3667 = vmatpush.bf16.msra.mxu0 %v4748_v8 }
0x12ce   :  { %v3514_v19 = vpop.xlane.xlu0 %3513 }
0x12cf   :  { %v3515_v25 = vmul.f32 %v3514_v19, %v5542_v41 }
0x12d1   :  { %v5912_v26 = vsub.f32 %v3511_v1, %v3515_v25  ;;  %v3561_v25 = vld [vmem:[%s5956_s18] sm:$0x3] }
0x12d2   :  { %v3563_v13 = vperm.slane %v3561_v25, 0 }
0x12d3   :  { %v3517_v53 = vmul.f32 %v5912_v26, %v5912_v26 }
0x12d5   :  { %v3518_v27 = vsel %vm1971_vm6, %v3517_v53, 0.0 }
0x12d6   :  { %3519 = vadd.xlane.f32.xlu0 %v3518_v27  ;;  %v3564_v27 = vperm.slane %v3561_v25, 1 }
0x1349   :  { %v3520_v5 = vpop.xlane.xlu0 %3519 }
0x134a   :  { %v3521_v58 = vmul.f32 %v3520_v5, %v5542_v41  ;;  %v5160_v41 = vld [vmem:[%s5946_s8] ss:$0 sm:$0xff] }
0x134c   :  { %v3522_v6 = vadd.f32 1e-05, %v3521_v58 }
0x134e   :  { %5221 = vrsqrt.f32 %v3522_v6  ;;  %vm3529_vm2 = vweird.f32 %v3522_v6 }
0x1354   :  { %v5222_v7 = vpop.eup %5221 }
0x1355   :  { %v3524_v42 = vmul.f32 %v5222_v7, %v3522_v6  ;;  %vm3530_vm1 = vweird.f32 %v5222_v7 }
0x1356   :  { %vm3531_vm5 = vmor %vm3529_vm2, %vm3530_vm1 }
0x1357   :  { %v3525_v1 = vmul.f32 %v5222_v7, %v3524_v42 }
0x1359   :  { %v3526_v9 = vmul.f32 0.5, %v3525_v1 }
0x135b   :  { %v3527_v10 = vsub.f32 1.5, %v3526_v9 }
0x135d   :  { %v3528_v50 = vmul.f32 %v5222_v7, %v3527_v10 }
0x135f   :  { %v3532_v12 = vsel %vm3531_vm5, %v5222_v7, %v3528_v50 }
0x1360   :  { %v3533_v14 = vmul.f32 %v3532_v12, %v5912_v26 }
0x1362   :  { %v3538_v16 = vmul.f32 %v5159_v11, %v3533_v14 }
0x1364   :  { %v3543_v17 = vadd.f32 %v5160_v41, %v3538_v16 }
0x1366   :  { %v3544_v19 = vpack.c.bf16 %v3543_v17, %v3543_v17 }
0x1368   :  { %3655 = vmatmul.bf16.vlgmr.msra.gmra.mxu3 %v3544_v19  ;;  %3668 = vmatmul.bf16.vlgmr.msra.gmra.mxu0 %v3544_v19 }
0x13e5   :  { %v3669_v53 = vpop.f32.mrf.mxu0 }
0x13e6   :  { %v3670_v63 = vadd.f32 %v3669_v53, %v3564_v27 }
0x13e8   :  { %v3674_v31 = vsel %vm1971_vm6, %v3670_v63, -inf }
0x13eb   :  { %v3656_v49 = vpop.f32.mrf.mxu3 }
0x13ec   :  { %v3657_v28 = vadd.f32 %v3656_v49, %v3563_v13 }
0x13ed   :  { %v3671_v26 = vpop.f32.mrf.mxu0 }
0x13ee   :  { %v3673_v29 = vsel %vm1971_vm6, %v3657_v28, -inf }
0x13ef   :  { %v3675_v30 = vmax.f32 %v3673_v29, %v3674_v31 }
0x13f1   :  { %3676 = vmax.xlane.f32.xlu0 %v3675_v30 }
0x13f3   :  { %v3658_v3 = vpop.f32.mrf.mxu3 }
0x1464   :  { %v3677_v32 = vpop.xlane.xlu0 %3676 }
0x1465   :  { %vm3678_vm7 = vcmp.eq.f32.partialorder %v3657_v28, %v3677_v32  ;;  %vm3679_vm8 = vcmp.eq.f32.partialorder %v3670_v63, %v3677_v32 }
0x1466   :  { %v3680_v33 = vsel %vm3678_vm7, %v5526_v21, 256  ;;  %v3681_v36 = vsel %vm3679_vm8, %v5529_v22, 256 }
0x1467   :  { %v3682_v57 = vsel %vm1971_vm6, %v3680_v33, 2147483647  ;;  %v3683_v38 = vsel %vm1971_vm6, %v3681_v36, 2147483647 }
0x1468   :  { %vm3684_vm9 = vcmp.lt.s32.totalorder %v3682_v57, %v3683_v38 }
0x1469   :  { %v3685_v39 = vsel %vm3684_vm9, %v3682_v57, %v3683_v38 }
0x146a   :  { %v3687_v40 = vshra.s32 %v3685_v39, 16  ;;  %v3686_v35 = vand.u32 65535, %v3685_v39 }
0x146c   :  { %v3689_v20 = vcvt.s32.f32 %v3687_v40  ;;  %v3688_v43 = vcvt.s32.f32 %v3686_v35 }
0x146e   :  { %3690 = vmin.xlane.f32.xlu0 %v3689_v20 }
0x14e1   :  { %v3691_v34 = vpop.xlane.xlu0 %3690 }
0x14e2   :  { %vm3692_vm10 = vcmp.eq.f32.partialorder %v3689_v20, %v3691_v34  ;;  %v3697_v46 = vcvt.f32.s32 %v3691_v34 }
0x14e3   :  { %v3693_v45 = vsel %vm3692_vm10, %v3688_v43, inf }
0x14e4   :  { %3694 = vmin.xlane.f32.xlu0 %v3693_v45  ;;  %v3698_v21 = vshll.u32 %v3697_v46, 16 }
0x1557   :  { %v3695_v47 = vpop.xlane.xlu0 %3694 }
0x1558   :  { %v3696_v52 = vcvt.f32.s32 %v3695_v47 }
0x155a   :  { %v3699_v22 = vadd.s32 %v3698_v21, %v3696_v52 }
0x155c   :  { %4805 = vst.msk [vmem:[%s5971_s13 + $0x2] sm:$0x3] %vm1999_vm11, %v3699_v22 }
0x155d   :  { %3706 = vsyncpa [#allocation5], 1 }
0x155e   :  { %3707 = vsyncpa [#allocation7], 1 }
0x155f   :  { %3708 = vsyncpa [#allocation10], 1 }
0x1560   :  { %3709 = vsyncpa [#allocation13], 1 }

</bundles_post_ra>
